<compile_context>
chip_gen: v6e
topology: v6e:2x2x1
jax: 0.10.0
libtpu: 0.0.40
codegen_flags: <defaults>
</compile_context>

<pallas_src>
import jax
import jax.numpy as jnp
from jax.experimental import pallas as pl
from jax.experimental.pallas import tpu as pltpu


def _sigmoid(x):
    # 1 / (1 + exp(-x)) with the reciprocal on the EUP.
    return pl.reciprocal(1.0 + jnp.exp(-x), approx=True)


def tgat_kernel(x_ref, xT_ref, mask_ref,
                wl3_ref, bl3_ref, wr3_ref, br3_ref, att3_ref,
                wle_ref, blcb_ref,
                w1fr_ref, w1hr_ref, b1r_ref,
                w1fu_ref, w1hu_ref, b1u_ref,
                w2f_ref, w2h_ref, b2_ref,
                h_ref):
    N, T = x_ref.shape
    H = wl3_ref.shape[0]
    HID = h_ref.shape[1]

    # Hoist every load out of the recurrence (all operands are tiny & VMEM-resident).
    x = x_ref[...]                              # [N, T]   (x_t as a column)
    xT = xT_ref[...]                            # [T, N]   (x_t as a row)
    mask = mask_ref[...]                        # [N, N]   additive mask: 0 / -1e30
    wl3 = wl3_ref[...]                          # [H, 1, C]
    bl3 = bl3_ref[...]
    wr3 = wr3_ref[...]
    br3 = br3_ref[...]
    att_b = att3_ref[...][:, :, None, :]        # [H, 1, 1, C]
    wle = wle_ref[...]                          # [H, HID]   (w_l masked per head)
    blcb = blcb_ref[...]                        # [1, HID]   (b_l + conv bias)
    w1fr = w1fr_ref[...]; w1hr = w1hr_ref[...]; b1r = b1r_ref[...]
    w1fu = w1fu_ref[...]; w1hu = w1hu_ref[...]; b1u = b1u_ref[...]
    w2f = w2f_ref[...]; w2h = w2h_ref[...]; b2 = b2_ref[...]

    h = jnp.zeros((N, HID), jnp.float32)

    # T is static -> fully unrolled, straight-line recurrence (static slices only).
    for t in range(T):
        xt_col = x[:, t:t + 1].reshape(1, N, 1)     # x_t on the sublane axis
        xt_row = xT[t:t + 1, :].reshape(1, 1, N)    # x_t on the lane axis

        # ---------------- GATv2Conv (in_channels == 1), all heads at once ----
        xlh = xt_col * wl3 + bl3                    # [H, N, C]  lin_l(x) per head
        xrh = xt_col * wr3 + br3                    # [H, N, C]  lin_r(x) per head

        pair = xrh[:, :, None, :] + xlh[:, None, :, :]      # [H, Ntgt, Nsrc, C]
        pair = jnp.where(pair > 0, pair, 0.2 * pair)        # leaky_relu(0.2)
        score = jnp.sum(pair * att_b, axis=-1)              # [H, N, N]
        score = score + mask[None, :, :]                    # mask non-edges (add)
        score = score - jnp.max(score, axis=-1, keepdims=True)
        ex = jnp.exp(score)
        inv_den = pl.reciprocal(jnp.sum(ex, axis=-1, keepdims=True), approx=True)
        alpha = ex * inv_den                                # softmax over sources

        # rank-1 aggregation: alpha @ lin_l(x) == (alpha @ x_t) * w_l + b_l
        agg = jnp.sum(alpha * xt_row, axis=-1, keepdims=True)   # [H, N, 1]
        conv = blcb
        for hh in range(H):                                     # H is tiny & static
            conv = conv + agg[hh] * wle[hh:hh + 1, :]           # [N,1]*[1,HID]
        f = _sigmoid(conv)                                      # [N, HID]

        # ---------------- GRU-style gating (concat/slice-free) ---------------
        r = _sigmoid(jnp.dot(f, w1fr, preferred_element_type=jnp.float32)
                     + jnp.dot(h, w1hr, preferred_element_type=jnp.float32) + b1r)
        u = _sigmoid(jnp.dot(f, w1fu, preferred_element_type=jnp.float32)
                     + jnp.dot(h, w1hu, preferred_element_type=jnp.float32) + b1u)
        c = jnp.tanh(jnp.dot(f, w2f, preferred_element_type=jnp.float32)
                     + jnp.dot(r * h, w2h, preferred_element_type=jnp.float32) + b2)
        h = u * h + (1.0 - u) * c

    h_ref[...] = h      # single store at the end of the fused time loop


@jax.jit
def tgat_pallas(x, adj, params):
    """x: [N, T] f32; adj: [N, N] f32 mask, adj[target, source] with self-loops."""
    N, T = x.shape
    heads, head_dim = params["att"].shape
    hid = heads * head_dim

    wl, bl = params["wl"], params["bl"]
    wr, br = params["wr"], params["br"]
    att, cb = params["att"], params["cb"]
    w1, b1 = params["w1"], params["b1"]
    w2, b2 = params["w2"], params["b2"]

    # Head-major per-head weights (leading-axis indexing in-kernel, no lane slices).
    wl3 = wl.reshape(heads, 1, head_dim)
    bl3 = bl.reshape(heads, 1, head_dim)
    wr3 = wr.reshape(heads, 1, head_dim)
    br3 = br.reshape(heads, 1, head_dim)
    att3 = att.reshape(heads, 1, head_dim)

    # Rank-1 aggregation helpers: conv_out = sum_h (alpha_h @ x_t) * wle[h] + blcb
    col_head = jnp.repeat(jnp.arange(heads), head_dim)                       # [HID]
    expand = (jnp.arange(heads)[:, None] == col_head[None, :]).astype(jnp.float32)
    wle = expand * wl                                                        # [H, HID]
    blcb = bl + cb                                                           # [1, HID]

    # Additive edge mask: 0 on edges / self-loops, -1e30 elsewhere.
    # NOTE: relies on self-loops guaranteeing >=1 unmasked source per target row.
    mask_bias = (adj - 1.0) * 1e30

    # Concat-free GRU weight blocks.
    w1fr, w1fu = w1[:hid, :hid], w1[:hid, hid:]
    w1hr, w1hu = w1[hid:, :hid], w1[hid:, hid:]
    b1r, b1u = b1[:, :hid], b1[:, hid:]
    w2f, w2h = w2[:hid, :], w2[hid:, :]

    operands = (x, jnp.transpose(x), mask_bias,
                wl3, bl3, wr3, br3, att3, wle, blcb,
                w1fr, w1hr, b1r, w1fu, w1hu, b1u, w2f, w2h, b2)

    vmem = pl.BlockSpec(memory_space=pltpu.MemorySpace.VMEM)
    return pl.pallas_call(
        tgat_kernel,
        out_shape=jax.ShapeDtypeStruct((N, hid), jnp.float32),
        in_specs=[vmem] * len(operands),
        out_specs=vmem,
    )(*operands)


def init_params(key, hid_channels, heads):
    assert hid_channels % heads == 0, "incorrect number heads"
    head_dim = hid_channels // heads
    ks = jax.random.split(key, 10)
    s = 0.2
    return {
        # GATv2Conv(1, head_dim, heads=heads, concat=True)
        "wl": s * jax.random.normal(ks[0], (1, hid_channels), jnp.float32),
        "bl": s * jax.random.normal(ks[1], (1, hid_channels), jnp.float32),
        "wr": s * jax.random.normal(ks[2], (1, hid_channels), jnp.float32),
        "br": s * jax.random.normal(ks[3], (1, hid_channels), jnp.float32),
        "att": s * jax.random.normal(ks[4], (heads, head_dim), jnp.float32),
        "cb": s * jax.random.normal(ks[5], (1, hid_channels), jnp.float32),
        # linear1: Linear(2*hid, 2*hid), linear2: Linear(2*hid, hid) (stored transposed)
        "w1": s * jax.random.normal(ks[6], (2 * hid_channels, 2 * hid_channels), jnp.float32),
        "b1": s * jax.random.normal(ks[7], (1, 2 * hid_channels), jnp.float32),
        "w2": s * jax.random.normal(ks[8], (2 * hid_channels, hid_channels), jnp.float32),
        "b2": s * jax.random.normal(ks[9], (1, hid_channels), jnp.float32),
    }


def tgat_reference(x, adj, params):
    """Pure-JAX reference of the PyTorch forward (for validation)."""
    N, T = x.shape
    heads, head_dim = params["att"].shape
    hid = heads * head_dim
    h = jnp.zeros((N, hid), jnp.float32)
    for t in range(T):
        xt = x[:, t:t + 1]
        xl = xt * params["wl"] + params["bl"]
        xr = xt * params["wr"] + params["br"]
        outs = []
        for hh in range(heads):
            lo, hi = hh * head_dim, (hh + 1) * head_dim
            xl_h, xr_h = xl[:, lo:hi], xr[:, lo:hi]
            pair = xr_h[:, None, :] + xl_h[None, :, :]
            pair = jnp.where(pair > 0, pair, 0.2 * pair)
            score = jnp.sum(pair * params["att"][hh][None, None, :], -1)
            score = jnp.where(adj > 0.0, score, -1e30)
            score = score - jnp.max(score, axis=1, keepdims=True)
            ex = jnp.exp(score)
            alpha = ex / jnp.sum(ex, axis=1, keepdims=True)
            outs.append(alpha @ xl_h)
        f = jax.nn.sigmoid(jnp.concatenate(outs, 1) + params["cb"])
        cat1 = jnp.concatenate([f, h], 1)
        ru = jax.nn.sigmoid(cat1 @ params["w1"] + params["b1"])
        r, u = ru[:, :hid], ru[:, hid:]
        cat2 = jnp.concatenate([f, r * h], 1)
        c = jnp.tanh(cat2 @ params["w2"] + params["b2"])
        h = u * h + (1.0 - u) * c
    return h


if __name__ == "__main__":
    key = jax.random.PRNGKey(0)
    N, T = 8, 4            # batch_nodes, pre_len
    HID, HEADS = 32, 2     # hid_channels, heads (concat=True -> per-head dim 16)

    kx, kw, kp = jax.random.split(key, 3)
    x = jax.random.normal(kx, (N, T), jnp.float32)

    # deterministic bidirectional ring graph
    src = jnp.concatenate([jnp.arange(N), jnp.arange(N)])
    dst = jnp.concatenate([(jnp.arange(N) + 1) % N, (jnp.arange(N) - 1) % N])
    edge_index = jnp.stack([src, dst]).astype(jnp.int32)              # [2, E]
    edge_weight = jax.random.uniform(kw, (edge_index.shape[1],))      # unused (as in PyTorch)

    # dense adjacency mask: adj[target, source]; GATv2Conv adds self-loops
    adj = jnp.zeros((N, N), jnp.float32).at[dst, src].set(1.0)
    adj = adj.at[jnp.arange(N), jnp.arange(N)].set(1.0)

    params = init_params(kp, HID, HEADS)

    h = tgat_pallas(x, adj, params)
    jax.block_until_ready(h)

    h_ref = tgat_reference(x, adj, params)
    assert h.shape == (N, HID)
    assert jnp.allclose(h, h_ref, atol=1e-2, rtol=1e-2), \
        float(jnp.max(jnp.abs(h - h_ref)))
    print("KERNEL_OK")
</pallas_src>

<mosaic_0001>
module attributes {stable_mosaic.version = 11 : i64} {
  func.func @tgat_kernel(%arg0: memref<8x4xf32, #tpu.memory_space<vmem>>, %arg1: memref<4x8xf32, #tpu.memory_space<vmem>>, %arg2: memref<8x8xf32, #tpu.memory_space<vmem>>, %arg3: memref<2x1x16xf32, #tpu.memory_space<vmem>>, %arg4: memref<2x1x16xf32, #tpu.memory_space<vmem>>, %arg5: memref<2x1x16xf32, #tpu.memory_space<vmem>>, %arg6: memref<2x1x16xf32, #tpu.memory_space<vmem>>, %arg7: memref<2x1x16xf32, #tpu.memory_space<vmem>>, %arg8: memref<2x32xf32, #tpu.memory_space<vmem>>, %arg9: memref<1x32xf32, #tpu.memory_space<vmem>>, %arg10: memref<32x32xf32, #tpu.memory_space<vmem>>, %arg11: memref<32x32xf32, #tpu.memory_space<vmem>>, %arg12: memref<1x32xf32, #tpu.memory_space<vmem>>, %arg13: memref<32x32xf32, #tpu.memory_space<vmem>>, %arg14: memref<32x32xf32, #tpu.memory_space<vmem>>, %arg15: memref<1x32xf32, #tpu.memory_space<vmem>>, %arg16: memref<32x32xf32, #tpu.memory_space<vmem>>, %arg17: memref<32x32xf32, #tpu.memory_space<vmem>>, %arg18: memref<1x32xf32, #tpu.memory_space<vmem>>, %arg19: memref<8x32xf32, #tpu.memory_space<vmem>>) attributes {dimension_semantics = [], scalar_prefetch = 0 : i64, scratch_operands = 0 : i64, tpu.core_type = #tpu.core_type<tc>} {
    %c0 = arith.constant 0 : index
    %c0_0 = arith.constant 0 : index
    %0 = vector.load %arg0[%c0, %c0_0] : memref<8x4xf32, #tpu.memory_space<vmem>>, vector<8x4xf32>
    %c0_1 = arith.constant 0 : index
    %c0_2 = arith.constant 0 : index
    %1 = vector.load %arg1[%c0_1, %c0_2] : memref<4x8xf32, #tpu.memory_space<vmem>>, vector<4x8xf32>
    %c0_3 = arith.constant 0 : index
    %c0_4 = arith.constant 0 : index
    %2 = vector.load %arg2[%c0_3, %c0_4] : memref<8x8xf32, #tpu.memory_space<vmem>>, vector<8x8xf32>
    %c0_5 = arith.constant 0 : index
    %c0_6 = arith.constant 0 : index
    %c0_7 = arith.constant 0 : index
    %3 = vector.load %arg3[%c0_5, %c0_6, %c0_7] : memref<2x1x16xf32, #tpu.memory_space<vmem>>, vector<2x1x16xf32>
    %c0_8 = arith.constant 0 : index
    %c0_9 = arith.constant 0 : index
    %c0_10 = arith.constant 0 : index
    %4 = vector.load %arg4[%c0_8, %c0_9, %c0_10] : memref<2x1x16xf32, #tpu.memory_space<vmem>>, vector<2x1x16xf32>
    %c0_11 = arith.constant 0 : index
    %c0_12 = arith.constant 0 : index
    %c0_13 = arith.constant 0 : index
    %5 = vector.load %arg5[%c0_11, %c0_12, %c0_13] : memref<2x1x16xf32, #tpu.memory_space<vmem>>, vector<2x1x16xf32>
    %c0_14 = arith.constant 0 : index
    %c0_15 = arith.constant 0 : index
    %c0_16 = arith.constant 0 : index
    %6 = vector.load %arg6[%c0_14, %c0_15, %c0_16] : memref<2x1x16xf32, #tpu.memory_space<vmem>>, vector<2x1x16xf32>
    %c0_17 = arith.constant 0 : index
    %c0_18 = arith.constant 0 : index
    %c0_19 = arith.constant 0 : index
    %7 = vector.load %arg7[%c0_17, %c0_18, %c0_19] : memref<2x1x16xf32, #tpu.memory_space<vmem>>, vector<2x1x16xf32>
    %8 = vector.shape_cast %7 : vector<2x1x16xf32> to vector<2x1x1x16xf32>
    %c0_20 = arith.constant 0 : index
    %c0_21 = arith.constant 0 : index
    %9 = vector.load %arg8[%c0_20, %c0_21] : memref<2x32xf32, #tpu.memory_space<vmem>>, vector<2x32xf32>
    %c0_22 = arith.constant 0 : index
    %c0_23 = arith.constant 0 : index
    %10 = vector.load %arg9[%c0_22, %c0_23] : memref<1x32xf32, #tpu.memory_space<vmem>>, vector<1x32xf32>
    %c0_24 = arith.constant 0 : index
    %c0_25 = arith.constant 0 : index
    %11 = vector.load %arg10[%c0_24, %c0_25] : memref<32x32xf32, #tpu.memory_space<vmem>>, vector<32x32xf32>
    %c0_26 = arith.constant 0 : index
    %c0_27 = arith.constant 0 : index
    %12 = vector.load %arg11[%c0_26, %c0_27] : memref<32x32xf32, #tpu.memory_space<vmem>>, vector<32x32xf32>
    %c0_28 = arith.constant 0 : index
    %c0_29 = arith.constant 0 : index
    %13 = vector.load %arg12[%c0_28, %c0_29] : memref<1x32xf32, #tpu.memory_space<vmem>>, vector<1x32xf32>
    %c0_30 = arith.constant 0 : index
    %c0_31 = arith.constant 0 : index
    %14 = vector.load %arg13[%c0_30, %c0_31] : memref<32x32xf32, #tpu.memory_space<vmem>>, vector<32x32xf32>
    %c0_32 = arith.constant 0 : index
    %c0_33 = arith.constant 0 : index
    %15 = vector.load %arg14[%c0_32, %c0_33] : memref<32x32xf32, #tpu.memory_space<vmem>>, vector<32x32xf32>
    %c0_34 = arith.constant 0 : index
    %c0_35 = arith.constant 0 : index
    %16 = vector.load %arg15[%c0_34, %c0_35] : memref<1x32xf32, #tpu.memory_space<vmem>>, vector<1x32xf32>
    %c0_36 = arith.constant 0 : index
    %c0_37 = arith.constant 0 : index
    %17 = vector.load %arg16[%c0_36, %c0_37] : memref<32x32xf32, #tpu.memory_space<vmem>>, vector<32x32xf32>
    %c0_38 = arith.constant 0 : index
    %c0_39 = arith.constant 0 : index
    %18 = vector.load %arg17[%c0_38, %c0_39] : memref<32x32xf32, #tpu.memory_space<vmem>>, vector<32x32xf32>
    %c0_40 = arith.constant 0 : index
    %c0_41 = arith.constant 0 : index
    %19 = vector.load %arg18[%c0_40, %c0_41] : memref<1x32xf32, #tpu.memory_space<vmem>>, vector<1x32xf32>
    %cst = arith.constant 0.000000e+00 : f32
    %20 = vector.broadcast %cst : f32 to vector<8x32xf32>
    %21 = vector.extract_strided_slice %0 {offsets = [0, 0], sizes = [8, 1], strides = [1, 1]} : vector<8x4xf32> to vector<8x1xf32>
    %22 = vector.shape_cast %21 : vector<8x1xf32> to vector<1x8x1xf32>
    %23 = vector.extract_strided_slice %1 {offsets = [0, 0], sizes = [1, 8], strides = [1, 1]} : vector<4x8xf32> to vector<1x8xf32>
    %24 = vector.shape_cast %23 : vector<1x8xf32> to vector<1x1x8xf32>
    %25 = vector.broadcast %22 : vector<1x8x1xf32> to vector<2x8x16xf32>
    %26 = vector.broadcast %3 : vector<2x1x16xf32> to vector<2x8x16xf32>
    %27 = arith.mulf %25, %26 : vector<2x8x16xf32>
    %28 = vector.broadcast %4 : vector<2x1x16xf32> to vector<2x8x16xf32>
    %29 = arith.addf %27, %28 : vector<2x8x16xf32>
    %30 = vector.broadcast %22 : vector<1x8x1xf32> to vector<2x8x16xf32>
    %31 = vector.broadcast %5 : vector<2x1x16xf32> to vector<2x8x16xf32>
    %32 = arith.mulf %30, %31 : vector<2x8x16xf32>
    %33 = vector.broadcast %6 : vector<2x1x16xf32> to vector<2x8x16xf32>
    %34 = arith.addf %32, %33 : vector<2x8x16xf32>
    %35 = vector.shape_cast %34 : vector<2x8x16xf32> to vector<2x8x1x16xf32>
    %36 = vector.shape_cast %29 : vector<2x8x16xf32> to vector<2x1x8x16xf32>
    %37 = vector.broadcast %35 : vector<2x8x1x16xf32> to vector<2x8x8x16xf32>
    %38 = vector.broadcast %36 : vector<2x1x8x16xf32> to vector<2x8x8x16xf32>
    %39 = arith.addf %37, %38 : vector<2x8x8x16xf32>
    %cst_42 = arith.constant 0.000000e+00 : f32
    %40 = vector.broadcast %cst_42 : f32 to vector<2x8x8x16xf32>
    %41 = arith.cmpf ogt, %39, %40 : vector<2x8x8x16xf32>
    %cst_43 = arith.constant 2.000000e-01 : f32
    %42 = vector.broadcast %cst_43 : f32 to vector<2x8x8x16xf32>
    %43 = arith.mulf %42, %39 : vector<2x8x8x16xf32>
    %44 = arith.select %41, %39, %43 : vector<2x8x8x16xi1>, vector<2x8x8x16xf32>
    %45 = vector.broadcast %8 : vector<2x1x1x16xf32> to vector<2x8x8x16xf32>
    %46 = arith.mulf %44, %45 : vector<2x8x8x16xf32>
    %cst_44 = arith.constant dense<0.000000e+00> : vector<2x8x8xf32>
    %47 = vector.multi_reduction <add>, %46, %cst_44 [3] : vector<2x8x8x16xf32> to vector<2x8x8xf32>
    %48 = vector.shape_cast %2 : vector<8x8xf32> to vector<1x8x8xf32>
    %49 = vector.broadcast %48 : vector<1x8x8xf32> to vector<2x8x8xf32>
    %50 = arith.addf %47, %49 : vector<2x8x8xf32>
    %cst_45 = arith.constant dense<0xFF800000> : vector<2x8xf32>
    %51 = vector.multi_reduction <maximumf>, %50, %cst_45 [2] : vector<2x8x8xf32> to vector<2x8xf32>
    %52 = vector.shape_cast %51 : vector<2x8xf32> to vector<2x8x1xf32>
    %53 = vector.broadcast %52 : vector<2x8x1xf32> to vector<2x8x8xf32>
    %54 = arith.subf %50, %53 : vector<2x8x8xf32>
    %55 = math.exp %54 : vector<2x8x8xf32>
    %cst_46 = arith.constant dense<0.000000e+00> : vector<2x8xf32>
    %56 = vector.multi_reduction <add>, %55, %cst_46 [2] : vector<2x8x8xf32> to vector<2x8xf32>
    %57 = vector.shape_cast %56 : vector<2x8xf32> to vector<2x8x1xf32>
    %58 = tpu.reciprocal %57 {approx = true} : vector<2x8x1xf32> -> vector<2x8x1xf32>
    %59 = vector.broadcast %58 : vector<2x8x1xf32> to vector<2x8x8xf32>
    %60 = arith.mulf %55, %59 : vector<2x8x8xf32>
    %61 = vector.broadcast %24 : vector<1x1x8xf32> to vector<2x8x8xf32>
    %62 = arith.mulf %60, %61 : vector<2x8x8xf32>
    %cst_47 = arith.constant dense<0.000000e+00> : vector<2x8xf32>
    %63 = vector.multi_reduction <add>, %62, %cst_47 [2] : vector<2x8x8xf32> to vector<2x8xf32>
    %64 = vector.shape_cast %63 : vector<2x8xf32> to vector<2x8x1xf32>
    %65 = vector.extract_strided_slice %64 {offsets = [0, 0, 0], sizes = [1, 8, 1], strides = [1, 1, 1]} : vector<2x8x1xf32> to vector<1x8x1xf32>
    %66 = vector.shape_cast %65 : vector<1x8x1xf32> to vector<8x1xf32>
    %67 = vector.extract_strided_slice %9 {offsets = [0, 0], sizes = [1, 32], strides = [1, 1]} : vector<2x32xf32> to vector<1x32xf32>
    %68 = vector.broadcast %66 : vector<8x1xf32> to vector<8x32xf32>
    %69 = vector.broadcast %67 : vector<1x32xf32> to vector<8x32xf32>
    %70 = arith.mulf %68, %69 : vector<8x32xf32>
    %71 = vector.broadcast %10 : vector<1x32xf32> to vector<8x32xf32>
    %72 = arith.addf %71, %70 : vector<8x32xf32>
    %73 = vector.extract_strided_slice %64 {offsets = [1, 0, 0], sizes = [1, 8, 1], strides = [1, 1, 1]} : vector<2x8x1xf32> to vector<1x8x1xf32>
    %74 = vector.shape_cast %73 : vector<1x8x1xf32> to vector<8x1xf32>
    %75 = vector.extract_strided_slice %9 {offsets = [1, 0], sizes = [1, 32], strides = [1, 1]} : vector<2x32xf32> to vector<1x32xf32>
    %76 = vector.broadcast %74 : vector<8x1xf32> to vector<8x32xf32>
    %77 = vector.broadcast %75 : vector<1x32xf32> to vector<8x32xf32>
    %78 = arith.mulf %76, %77 : vector<8x32xf32>
    %79 = arith.addf %72, %78 : vector<8x32xf32>
    %cst_48 = arith.constant 0.000000e+00 : f32
    %80 = vector.broadcast %cst_48 : f32 to vector<8x32xf32>
    %81 = arith.subf %80, %79 : vector<8x32xf32>
    %82 = math.exp %81 : vector<8x32xf32>
    %cst_49 = arith.constant 1.000000e+00 : f32
    %83 = vector.broadcast %cst_49 : f32 to vector<8x32xf32>
    %84 = arith.addf %83, %82 : vector<8x32xf32>
    %85 = tpu.reciprocal %84 {approx = true} : vector<8x32xf32> -> vector<8x32xf32>
    %cst_50 = arith.constant dense<0.000000e+00> : vector<8x32xf32>
    %86 = tpu.matmul %85, %11, %cst_50 {dimension_numbers = #tpu.dot_dimension_numbers<[1], [0], [0], [1], [0, 0, 1, 1], [], []>} : vector<8x32xf32>, vector<32x32xf32>, vector<8x32xf32> -> vector<8x32xf32>
    %cst_51 = arith.constant dense<0.000000e+00> : vector<8x32xf32>
    %87 = tpu.matmul %20, %12, %cst_51 {dimension_numbers = #tpu.dot_dimension_numbers<[1], [0], [0], [1], [0, 0, 1, 1], [], []>} : vector<8x32xf32>, vector<32x32xf32>, vector<8x32xf32> -> vector<8x32xf32>
    %88 = arith.addf %86, %87 : vector<8x32xf32>
    %89 = vector.broadcast %13 : vector<1x32xf32> to vector<8x32xf32>
    %90 = arith.addf %88, %89 : vector<8x32xf32>
    %cst_52 = arith.constant 0.000000e+00 : f32
    %91 = vector.broadcast %cst_52 : f32 to vector<8x32xf32>
    %92 = arith.subf %91, %90 : vector<8x32xf32>
    %93 = math.exp %92 : vector<8x32xf32>
    %cst_53 = arith.constant 1.000000e+00 : f32
    %94 = vector.broadcast %cst_53 : f32 to vector<8x32xf32>
    %95 = arith.addf %94, %93 : vector<8x32xf32>
    %96 = tpu.reciprocal %95 {approx = true} : vector<8x32xf32> -> vector<8x32xf32>
    %cst_54 = arith.constant dense<0.000000e+00> : vector<8x32xf32>
    %97 = tpu.matmul %85, %14, %cst_54 {dimension_numbers = #tpu.dot_dimension_numbers<[1], [0], [0], [1], [0, 0, 1, 1], [], []>} : vector<8x32xf32>, vector<32x32xf32>, vector<8x32xf32> -> vector<8x32xf32>
    %cst_55 = arith.constant dense<0.000000e+00> : vector<8x32xf32>
    %98 = tpu.matmul %20, %15, %cst_55 {dimension_numbers = #tpu.dot_dimension_numbers<[1], [0], [0], [1], [0, 0, 1, 1], [], []>} : vector<8x32xf32>, vector<32x32xf32>, vector<8x32xf32> -> vector<8x32xf32>
    %99 = arith.addf %97, %98 : vector<8x32xf32>
    %100 = vector.broadcast %16 : vector<1x32xf32> to vector<8x32xf32>
    %101 = arith.addf %99, %100 : vector<8x32xf32>
    %cst_56 = arith.constant 0.000000e+00 : f32
    %102 = vector.broadcast %cst_56 : f32 to vector<8x32xf32>
    %103 = arith.subf %102, %101 : vector<8x32xf32>
    %104 = math.exp %103 : vector<8x32xf32>
    %cst_57 = arith.constant 1.000000e+00 : f32
    %105 = vector.broadcast %cst_57 : f32 to vector<8x32xf32>
    %106 = arith.addf %105, %104 : vector<8x32xf32>
    %107 = tpu.reciprocal %106 {approx = true} : vector<8x32xf32> -> vector<8x32xf32>
    %cst_58 = arith.constant dense<0.000000e+00> : vector<8x32xf32>
    %108 = tpu.matmul %85, %17, %cst_58 {dimension_numbers = #tpu.dot_dimension_numbers<[1], [0], [0], [1], [0, 0, 1, 1], [], []>} : vector<8x32xf32>, vector<32x32xf32>, vector<8x32xf32> -> vector<8x32xf32>
    %109 = arith.mulf %96, %20 : vector<8x32xf32>
    %cst_59 = arith.constant dense<0.000000e+00> : vector<8x32xf32>
    %110 = tpu.matmul %109, %18, %cst_59 {dimension_numbers = #tpu.dot_dimension_numbers<[1], [0], [0], [1], [0, 0, 1, 1], [], []>} : vector<8x32xf32>, vector<32x32xf32>, vector<8x32xf32> -> vector<8x32xf32>
    %111 = arith.addf %108, %110 : vector<8x32xf32>
    %112 = vector.broadcast %19 : vector<1x32xf32> to vector<8x32xf32>
    %113 = arith.addf %111, %112 : vector<8x32xf32>
    %114 = math.tanh %113 : vector<8x32xf32>
    %115 = arith.mulf %107, %20 : vector<8x32xf32>
    %cst_60 = arith.constant 1.000000e+00 : f32
    %116 = vector.broadcast %cst_60 : f32 to vector<8x32xf32>
    %117 = arith.subf %116, %107 : vector<8x32xf32>
    %118 = arith.mulf %117, %114 : vector<8x32xf32>
    %119 = arith.addf %115, %118 : vector<8x32xf32>
    %120 = vector.extract_strided_slice %0 {offsets = [0, 1], sizes = [8, 1], strides = [1, 1]} : vector<8x4xf32> to vector<8x1xf32>
    %121 = vector.shape_cast %120 : vector<8x1xf32> to vector<1x8x1xf32>
    %122 = vector.extract_strided_slice %1 {offsets = [1, 0], sizes = [1, 8], strides = [1, 1]} : vector<4x8xf32> to vector<1x8xf32>
    %123 = vector.shape_cast %122 : vector<1x8xf32> to vector<1x1x8xf32>
    %124 = vector.broadcast %121 : vector<1x8x1xf32> to vector<2x8x16xf32>
    %125 = vector.broadcast %3 : vector<2x1x16xf32> to vector<2x8x16xf32>
    %126 = arith.mulf %124, %125 : vector<2x8x16xf32>
    %127 = vector.broadcast %4 : vector<2x1x16xf32> to vector<2x8x16xf32>
    %128 = arith.addf %126, %127 : vector<2x8x16xf32>
    %129 = vector.broadcast %121 : vector<1x8x1xf32> to vector<2x8x16xf32>
    %130 = vector.broadcast %5 : vector<2x1x16xf32> to vector<2x8x16xf32>
    %131 = arith.mulf %129, %130 : vector<2x8x16xf32>
    %132 = vector.broadcast %6 : vector<2x1x16xf32> to vector<2x8x16xf32>
    %133 = arith.addf %131, %132 : vector<2x8x16xf32>
    %134 = vector.shape_cast %133 : vector<2x8x16xf32> to vector<2x8x1x16xf32>
    %135 = vector.shape_cast %128 : vector<2x8x16xf32> to vector<2x1x8x16xf32>
    %136 = vector.broadcast %134 : vector<2x8x1x16xf32> to vector<2x8x8x16xf32>
    %137 = vector.broadcast %135 : vector<2x1x8x16xf32> to vector<2x8x8x16xf32>
    %138 = arith.addf %136, %137 : vector<2x8x8x16xf32>
    %cst_61 = arith.constant 0.000000e+00 : f32
    %139 = vector.broadcast %cst_61 : f32 to vector<2x8x8x16xf32>
    %140 = arith.cmpf ogt, %138, %139 : vector<2x8x8x16xf32>
    %cst_62 = arith.constant 2.000000e-01 : f32
    %141 = vector.broadcast %cst_62 : f32 to vector<2x8x8x16xf32>
    %142 = arith.mulf %141, %138 : vector<2x8x8x16xf32>
    %143 = arith.select %140, %138, %142 : vector<2x8x8x16xi1>, vector<2x8x8x16xf32>
    %144 = vector.broadcast %8 : vector<2x1x1x16xf32> to vector<2x8x8x16xf32>
    %145 = arith.mulf %143, %144 : vector<2x8x8x16xf32>
    %cst_63 = arith.constant dense<0.000000e+00> : vector<2x8x8xf32>
    %146 = vector.multi_reduction <add>, %145, %cst_63 [3] : vector<2x8x8x16xf32> to vector<2x8x8xf32>
    %147 = vector.shape_cast %2 : vector<8x8xf32> to vector<1x8x8xf32>
    %148 = vector.broadcast %147 : vector<1x8x8xf32> to vector<2x8x8xf32>
    %149 = arith.addf %146, %148 : vector<2x8x8xf32>
    %cst_64 = arith.constant dense<0xFF800000> : vector<2x8xf32>
    %150 = vector.multi_reduction <maximumf>, %149, %cst_64 [2] : vector<2x8x8xf32> to vector<2x8xf32>
    %151 = vector.shape_cast %150 : vector<2x8xf32> to vector<2x8x1xf32>
    %152 = vector.broadcast %151 : vector<2x8x1xf32> to vector<2x8x8xf32>
    %153 = arith.subf %149, %152 : vector<2x8x8xf32>
    %154 = math.exp %153 : vector<2x8x8xf32>
    %cst_65 = arith.constant dense<0.000000e+00> : vector<2x8xf32>
    %155 = vector.multi_reduction <add>, %154, %cst_65 [2] : vector<2x8x8xf32> to vector<2x8xf32>
    %156 = vector.shape_cast %155 : vector<2x8xf32> to vector<2x8x1xf32>
    %157 = tpu.reciprocal %156 {approx = true} : vector<2x8x1xf32> -> vector<2x8x1xf32>
    %158 = vector.broadcast %157 : vector<2x8x1xf32> to vector<2x8x8xf32>
    %159 = arith.mulf %154, %158 : vector<2x8x8xf32>
    %160 = vector.broadcast %123 : vector<1x1x8xf32> to vector<2x8x8xf32>
    %161 = arith.mulf %159, %160 : vector<2x8x8xf32>
    %cst_66 = arith.constant dense<0.000000e+00> : vector<2x8xf32>
    %162 = vector.multi_reduction <add>, %161, %cst_66 [2] : vector<2x8x8xf32> to vector<2x8xf32>
    %163 = vector.shape_cast %162 : vector<2x8xf32> to vector<2x8x1xf32>
    %164 = vector.extract_strided_slice %163 {offsets = [0, 0, 0], sizes = [1, 8, 1], strides = [1, 1, 1]} : vector<2x8x1xf32> to vector<1x8x1xf32>
    %165 = vector.shape_cast %164 : vector<1x8x1xf32> to vector<8x1xf32>
    %166 = vector.extract_strided_slice %9 {offsets = [0, 0], sizes = [1, 32], strides = [1, 1]} : vector<2x32xf32> to vector<1x32xf32>
    %167 = vector.broadcast %165 : vector<8x1xf32> to vector<8x32xf32>
    %168 = vector.broadcast %166 : vector<1x32xf32> to vector<8x32xf32>
    %169 = arith.mulf %167, %168 : vector<8x32xf32>
    %170 = vector.broadcast %10 : vector<1x32xf32> to vector<8x32xf32>
    %171 = arith.addf %170, %169 : vector<8x32xf32>
    %172 = vector.extract_strided_slice %163 {offsets = [1, 0, 0], sizes = [1, 8, 1], strides = [1, 1, 1]} : vector<2x8x1xf32> to vector<1x8x1xf32>
    %173 = vector.shape_cast %172 : vector<1x8x1xf32> to vector<8x1xf32>
    %174 = vector.extract_strided_slice %9 {offsets = [1, 0], sizes = [1, 32], strides = [1, 1]} : vector<2x32xf32> to vector<1x32xf32>
    %175 = vector.broadcast %173 : vector<8x1xf32> to vector<8x32xf32>
    %176 = vector.broadcast %174 : vector<1x32xf32> to vector<8x32xf32>
    %177 = arith.mulf %175, %176 : vector<8x32xf32>
    %178 = arith.addf %171, %177 : vector<8x32xf32>
    %cst_67 = arith.constant 0.000000e+00 : f32
    %179 = vector.broadcast %cst_67 : f32 to vector<8x32xf32>
    %180 = arith.subf %179, %178 : vector<8x32xf32>
    %181 = math.exp %180 : vector<8x32xf32>
    %cst_68 = arith.constant 1.000000e+00 : f32
    %182 = vector.broadcast %cst_68 : f32 to vector<8x32xf32>
    %183 = arith.addf %182, %181 : vector<8x32xf32>
    %184 = tpu.reciprocal %183 {approx = true} : vector<8x32xf32> -> vector<8x32xf32>
    %cst_69 = arith.constant dense<0.000000e+00> : vector<8x32xf32>
    %185 = tpu.matmul %184, %11, %cst_69 {dimension_numbers = #tpu.dot_dimension_numbers<[1], [0], [0], [1], [0, 0, 1, 1], [], []>} : vector<8x32xf32>, vector<32x32xf32>, vector<8x32xf32> -> vector<8x32xf32>
    %cst_70 = arith.constant dense<0.000000e+00> : vector<8x32xf32>
    %186 = tpu.matmul %119, %12, %cst_70 {dimension_numbers = #tpu.dot_dimension_numbers<[1], [0], [0], [1], [0, 0, 1, 1], [], []>} : vector<8x32xf32>, vector<32x32xf32>, vector<8x32xf32> -> vector<8x32xf32>
    %187 = arith.addf %185, %186 : vector<8x32xf32>
    %188 = vector.broadcast %13 : vector<1x32xf32> to vector<8x32xf32>
    %189 = arith.addf %187, %188 : vector<8x32xf32>
    %cst_71 = arith.constant 0.000000e+00 : f32
    %190 = vector.broadcast %cst_71 : f32 to vector<8x32xf32>
    %191 = arith.subf %190, %189 : vector<8x32xf32>
    %192 = math.exp %191 : vector<8x32xf32>
    %cst_72 = arith.constant 1.000000e+00 : f32
    %193 = vector.broadcast %cst_72 : f32 to vector<8x32xf32>
    %194 = arith.addf %193, %192 : vector<8x32xf32>
    %195 = tpu.reciprocal %194 {approx = true} : vector<8x32xf32> -> vector<8x32xf32>
    %cst_73 = arith.constant dense<0.000000e+00> : vector<8x32xf32>
    %196 = tpu.matmul %184, %14, %cst_73 {dimension_numbers = #tpu.dot_dimension_numbers<[1], [0], [0], [1], [0, 0, 1, 1], [], []>} : vector<8x32xf32>, vector<32x32xf32>, vector<8x32xf32> -> vector<8x32xf32>
    %cst_74 = arith.constant dense<0.000000e+00> : vector<8x32xf32>
    %197 = tpu.matmul %119, %15, %cst_74 {dimension_numbers = #tpu.dot_dimension_numbers<[1], [0], [0], [1], [0, 0, 1, 1], [], []>} : vector<8x32xf32>, vector<32x32xf32>, vector<8x32xf32> -> vector<8x32xf32>
    %198 = arith.addf %196, %197 : vector<8x32xf32>
    %199 = vector.broadcast %16 : vector<1x32xf32> to vector<8x32xf32>
    %200 = arith.addf %198, %199 : vector<8x32xf32>
    %cst_75 = arith.constant 0.000000e+00 : f32
    %201 = vector.broadcast %cst_75 : f32 to vector<8x32xf32>
    %202 = arith.subf %201, %200 : vector<8x32xf32>
    %203 = math.exp %202 : vector<8x32xf32>
    %cst_76 = arith.constant 1.000000e+00 : f32
    %204 = vector.broadcast %cst_76 : f32 to vector<8x32xf32>
    %205 = arith.addf %204, %203 : vector<8x32xf32>
    %206 = tpu.reciprocal %205 {approx = true} : vector<8x32xf32> -> vector<8x32xf32>
    %cst_77 = arith.constant dense<0.000000e+00> : vector<8x32xf32>
    %207 = tpu.matmul %184, %17, %cst_77 {dimension_numbers = #tpu.dot_dimension_numbers<[1], [0], [0], [1], [0, 0, 1, 1], [], []>} : vector<8x32xf32>, vector<32x32xf32>, vector<8x32xf32> -> vector<8x32xf32>
    %208 = arith.mulf %195, %119 : vector<8x32xf32>
    %cst_78 = arith.constant dense<0.000000e+00> : vector<8x32xf32>
    %209 = tpu.matmul %208, %18, %cst_78 {dimension_numbers = #tpu.dot_dimension_numbers<[1], [0], [0], [1], [0, 0, 1, 1], [], []>} : vector<8x32xf32>, vector<32x32xf32>, vector<8x32xf32> -> vector<8x32xf32>
    %210 = arith.addf %207, %209 : vector<8x32xf32>
    %211 = vector.broadcast %19 : vector<1x32xf32> to vector<8x32xf32>
    %212 = arith.addf %210, %211 : vector<8x32xf32>
    %213 = math.tanh %212 : vector<8x32xf32>
    %214 = arith.mulf %206, %119 : vector<8x32xf32>
    %cst_79 = arith.constant 1.000000e+00 : f32
    %215 = vector.broadcast %cst_79 : f32 to vector<8x32xf32>
    %216 = arith.subf %215, %206 : vector<8x32xf32>
    %217 = arith.mulf %216, %213 : vector<8x32xf32>
    %218 = arith.addf %214, %217 : vector<8x32xf32>
    %219 = vector.extract_strided_slice %0 {offsets = [0, 2], sizes = [8, 1], strides = [1, 1]} : vector<8x4xf32> to vector<8x1xf32>
    %220 = vector.shape_cast %219 : vector<8x1xf32> to vector<1x8x1xf32>
    %221 = vector.extract_strided_slice %1 {offsets = [2, 0], sizes = [1, 8], strides = [1, 1]} : vector<4x8xf32> to vector<1x8xf32>
    %222 = vector.shape_cast %221 : vector<1x8xf32> to vector<1x1x8xf32>
    %223 = vector.broadcast %220 : vector<1x8x1xf32> to vector<2x8x16xf32>
    %224 = vector.broadcast %3 : vector<2x1x16xf32> to vector<2x8x16xf32>
    %225 = arith.mulf %223, %224 : vector<2x8x16xf32>
    %226 = vector.broadcast %4 : vector<2x1x16xf32> to vector<2x8x16xf32>
    %227 = arith.addf %225, %226 : vector<2x8x16xf32>
    %228 = vector.broadcast %220 : vector<1x8x1xf32> to vector<2x8x16xf32>
    %229 = vector.broadcast %5 : vector<2x1x16xf32> to vector<2x8x16xf32>
    %230 = arith.mulf %228, %229 : vector<2x8x16xf32>
    %231 = vector.broadcast %6 : vector<2x1x16xf32> to vector<2x8x16xf32>
    %232 = arith.addf %230, %231 : vector<2x8x16xf32>
    %233 = vector.shape_cast %232 : vector<2x8x16xf32> to vector<2x8x1x16xf32>
    %234 = vector.shape_cast %227 : vector<2x8x16xf32> to vector<2x1x8x16xf32>
    %235 = vector.broadcast %233 : vector<2x8x1x16xf32> to vector<2x8x8x16xf32>
    %236 = vector.broadcast %234 : vector<2x1x8x16xf32> to vector<2x8x8x16xf32>
    %237 = arith.addf %235, %236 : vector<2x8x8x16xf32>
    %cst_80 = arith.constant 0.000000e+00 : f32
    %238 = vector.broadcast %cst_80 : f32 to vector<2x8x8x16xf32>
    %239 = arith.cmpf ogt, %237, %238 : vector<2x8x8x16xf32>
    %cst_81 = arith.constant 2.000000e-01 : f32
    %240 = vector.broadcast %cst_81 : f32 to vector<2x8x8x16xf32>
    %241 = arith.mulf %240, %237 : vector<2x8x8x16xf32>
    %242 = arith.select %239, %237, %241 : vector<2x8x8x16xi1>, vector<2x8x8x16xf32>
    %243 = vector.broadcast %8 : vector<2x1x1x16xf32> to vector<2x8x8x16xf32>
    %244 = arith.mulf %242, %243 : vector<2x8x8x16xf32>
    %cst_82 = arith.constant dense<0.000000e+00> : vector<2x8x8xf32>
    %245 = vector.multi_reduction <add>, %244, %cst_82 [3] : vector<2x8x8x16xf32> to vector<2x8x8xf32>
    %246 = vector.shape_cast %2 : vector<8x8xf32> to vector<1x8x8xf32>
    %247 = vector.broadcast %246 : vector<1x8x8xf32> to vector<2x8x8xf32>
    %248 = arith.addf %245, %247 : vector<2x8x8xf32>
    %cst_83 = arith.constant dense<0xFF800000> : vector<2x8xf32>
    %249 = vector.multi_reduction <maximumf>, %248, %cst_83 [2] : vector<2x8x8xf32> to vector<2x8xf32>
    %250 = vector.shape_cast %249 : vector<2x8xf32> to vector<2x8x1xf32>
    %251 = vector.broadcast %250 : vector<2x8x1xf32> to vector<2x8x8xf32>
    %252 = arith.subf %248, %251 : vector<2x8x8xf32>
    %253 = math.exp %252 : vector<2x8x8xf32>
    %cst_84 = arith.constant dense<0.000000e+00> : vector<2x8xf32>
    %254 = vector.multi_reduction <add>, %253, %cst_84 [2] : vector<2x8x8xf32> to vector<2x8xf32>
    %255 = vector.shape_cast %254 : vector<2x8xf32> to vector<2x8x1xf32>
    %256 = tpu.reciprocal %255 {approx = true} : vector<2x8x1xf32> -> vector<2x8x1xf32>
    %257 = vector.broadcast %256 : vector<2x8x1xf32> to vector<2x8x8xf32>
    %258 = arith.mulf %253, %257 : vector<2x8x8xf32>
    %259 = vector.broadcast %222 : vector<1x1x8xf32> to vector<2x8x8xf32>
    %260 = arith.mulf %258, %259 : vector<2x8x8xf32>
    %cst_85 = arith.constant dense<0.000000e+00> : vector<2x8xf32>
    %261 = vector.multi_reduction <add>, %260, %cst_85 [2] : vector<2x8x8xf32> to vector<2x8xf32>
    %262 = vector.shape_cast %261 : vector<2x8xf32> to vector<2x8x1xf32>
    %263 = vector.extract_strided_slice %262 {offsets = [0, 0, 0], sizes = [1, 8, 1], strides = [1, 1, 1]} : vector<2x8x1xf32> to vector<1x8x1xf32>
    %264 = vector.shape_cast %263 : vector<1x8x1xf32> to vector<8x1xf32>
    %265 = vector.extract_strided_slice %9 {offsets = [0, 0], sizes = [1, 32], strides = [1, 1]} : vector<2x32xf32> to vector<1x32xf32>
    %266 = vector.broadcast %264 : vector<8x1xf32> to vector<8x32xf32>
    %267 = vector.broadcast %265 : vector<1x32xf32> to vector<8x32xf32>
    %268 = arith.mulf %266, %267 : vector<8x32xf32>
    %269 = vector.broadcast %10 : vector<1x32xf32> to vector<8x32xf32>
    %270 = arith.addf %269, %268 : vector<8x32xf32>
    %271 = vector.extract_strided_slice %262 {offsets = [1, 0, 0], sizes = [1, 8, 1], strides = [1, 1, 1]} : vector<2x8x1xf32> to vector<1x8x1xf32>
    %272 = vector.shape_cast %271 : vector<1x8x1xf32> to vector<8x1xf32>
    %273 = vector.extract_strided_slice %9 {offsets = [1, 0], sizes = [1, 32], strides = [1, 1]} : vector<2x32xf32> to vector<1x32xf32>
    %274 = vector.broadcast %272 : vector<8x1xf32> to vector<8x32xf32>
    %275 = vector.broadcast %273 : vector<1x32xf32> to vector<8x32xf32>
    %276 = arith.mulf %274, %275 : vector<8x32xf32>
    %277 = arith.addf %270, %276 : vector<8x32xf32>
    %cst_86 = arith.constant 0.000000e+00 : f32
    %278 = vector.broadcast %cst_86 : f32 to vector<8x32xf32>
    %279 = arith.subf %278, %277 : vector<8x32xf32>
    %280 = math.exp %279 : vector<8x32xf32>
    %cst_87 = arith.constant 1.000000e+00 : f32
    %281 = vector.broadcast %cst_87 : f32 to vector<8x32xf32>
    %282 = arith.addf %281, %280 : vector<8x32xf32>
    %283 = tpu.reciprocal %282 {approx = true} : vector<8x32xf32> -> vector<8x32xf32>
    %cst_88 = arith.constant dense<0.000000e+00> : vector<8x32xf32>
    %284 = tpu.matmul %283, %11, %cst_88 {dimension_numbers = #tpu.dot_dimension_numbers<[1], [0], [0], [1], [0, 0, 1, 1], [], []>} : vector<8x32xf32>, vector<32x32xf32>, vector<8x32xf32> -> vector<8x32xf32>
    %cst_89 = arith.constant dense<0.000000e+00> : vector<8x32xf32>
    %285 = tpu.matmul %218, %12, %cst_89 {dimension_numbers = #tpu.dot_dimension_numbers<[1], [0], [0], [1], [0, 0, 1, 1], [], []>} : vector<8x32xf32>, vector<32x32xf32>, vector<8x32xf32> -> vector<8x32xf32>
    %286 = arith.addf %284, %285 : vector<8x32xf32>
    %287 = vector.broadcast %13 : vector<1x32xf32> to vector<8x32xf32>
    %288 = arith.addf %286, %287 : vector<8x32xf32>
    %cst_90 = arith.constant 0.000000e+00 : f32
    %289 = vector.broadcast %cst_90 : f32 to vector<8x32xf32>
    %290 = arith.subf %289, %288 : vector<8x32xf32>
    %291 = math.exp %290 : vector<8x32xf32>
    %cst_91 = arith.constant 1.000000e+00 : f32
    %292 = vector.broadcast %cst_91 : f32 to vector<8x32xf32>
    %293 = arith.addf %292, %291 : vector<8x32xf32>
    %294 = tpu.reciprocal %293 {approx = true} : vector<8x32xf32> -> vector<8x32xf32>
    %cst_92 = arith.constant dense<0.000000e+00> : vector<8x32xf32>
    %295 = tpu.matmul %283, %14, %cst_92 {dimension_numbers = #tpu.dot_dimension_numbers<[1], [0], [0], [1], [0, 0, 1, 1], [], []>} : vector<8x32xf32>, vector<32x32xf32>, vector<8x32xf32> -> vector<8x32xf32>
    %cst_93 = arith.constant dense<0.000000e+00> : vector<8x32xf32>
    %296 = tpu.matmul %218, %15, %cst_93 {dimension_numbers = #tpu.dot_dimension_numbers<[1], [0], [0], [1], [0, 0, 1, 1], [], []>} : vector<8x32xf32>, vector<32x32xf32>, vector<8x32xf32> -> vector<8x32xf32>
    %297 = arith.addf %295, %296 : vector<8x32xf32>
    %298 = vector.broadcast %16 : vector<1x32xf32> to vector<8x32xf32>
    %299 = arith.addf %297, %298 : vector<8x32xf32>
    %cst_94 = arith.constant 0.000000e+00 : f32
    %300 = vector.broadcast %cst_94 : f32 to vector<8x32xf32>
    %301 = arith.subf %300, %299 : vector<8x32xf32>
    %302 = math.exp %301 : vector<8x32xf32>
    %cst_95 = arith.constant 1.000000e+00 : f32
    %303 = vector.broadcast %cst_95 : f32 to vector<8x32xf32>
    %304 = arith.addf %303, %302 : vector<8x32xf32>
    %305 = tpu.reciprocal %304 {approx = true} : vector<8x32xf32> -> vector<8x32xf32>
    %cst_96 = arith.constant dense<0.000000e+00> : vector<8x32xf32>
    %306 = tpu.matmul %283, %17, %cst_96 {dimension_numbers = #tpu.dot_dimension_numbers<[1], [0], [0], [1], [0, 0, 1, 1], [], []>} : vector<8x32xf32>, vector<32x32xf32>, vector<8x32xf32> -> vector<8x32xf32>
    %307 = arith.mulf %294, %218 : vector<8x32xf32>
    %cst_97 = arith.constant dense<0.000000e+00> : vector<8x32xf32>
    %308 = tpu.matmul %307, %18, %cst_97 {dimension_numbers = #tpu.dot_dimension_numbers<[1], [0], [0], [1], [0, 0, 1, 1], [], []>} : vector<8x32xf32>, vector<32x32xf32>, vector<8x32xf32> -> vector<8x32xf32>
    %309 = arith.addf %306, %308 : vector<8x32xf32>
    %310 = vector.broadcast %19 : vector<1x32xf32> to vector<8x32xf32>
    %311 = arith.addf %309, %310 : vector<8x32xf32>
    %312 = math.tanh %311 : vector<8x32xf32>
    %313 = arith.mulf %305, %218 : vector<8x32xf32>
    %cst_98 = arith.constant 1.000000e+00 : f32
    %314 = vector.broadcast %cst_98 : f32 to vector<8x32xf32>
    %315 = arith.subf %314, %305 : vector<8x32xf32>
    %316 = arith.mulf %315, %312 : vector<8x32xf32>
    %317 = arith.addf %313, %316 : vector<8x32xf32>
    %318 = vector.extract_strided_slice %0 {offsets = [0, 3], sizes = [8, 1], strides = [1, 1]} : vector<8x4xf32> to vector<8x1xf32>
    %319 = vector.shape_cast %318 : vector<8x1xf32> to vector<1x8x1xf32>
    %320 = vector.extract_strided_slice %1 {offsets = [3, 0], sizes = [1, 8], strides = [1, 1]} : vector<4x8xf32> to vector<1x8xf32>
    %321 = vector.shape_cast %320 : vector<1x8xf32> to vector<1x1x8xf32>
    %322 = vector.broadcast %319 : vector<1x8x1xf32> to vector<2x8x16xf32>
    %323 = vector.broadcast %3 : vector<2x1x16xf32> to vector<2x8x16xf32>
    %324 = arith.mulf %322, %323 : vector<2x8x16xf32>
    %325 = vector.broadcast %4 : vector<2x1x16xf32> to vector<2x8x16xf32>
    %326 = arith.addf %324, %325 : vector<2x8x16xf32>
    %327 = vector.broadcast %319 : vector<1x8x1xf32> to vector<2x8x16xf32>
    %328 = vector.broadcast %5 : vector<2x1x16xf32> to vector<2x8x16xf32>
    %329 = arith.mulf %327, %328 : vector<2x8x16xf32>
    %330 = vector.broadcast %6 : vector<2x1x16xf32> to vector<2x8x16xf32>
    %331 = arith.addf %329, %330 : vector<2x8x16xf32>
    %332 = vector.shape_cast %331 : vector<2x8x16xf32> to vector<2x8x1x16xf32>
    %333 = vector.shape_cast %326 : vector<2x8x16xf32> to vector<2x1x8x16xf32>
    %334 = vector.broadcast %332 : vector<2x8x1x16xf32> to vector<2x8x8x16xf32>
    %335 = vector.broadcast %333 : vector<2x1x8x16xf32> to vector<2x8x8x16xf32>
    %336 = arith.addf %334, %335 : vector<2x8x8x16xf32>
    %cst_99 = arith.constant 0.000000e+00 : f32
    %337 = vector.broadcast %cst_99 : f32 to vector<2x8x8x16xf32>
    %338 = arith.cmpf ogt, %336, %337 : vector<2x8x8x16xf32>
    %cst_100 = arith.constant 2.000000e-01 : f32
    %339 = vector.broadcast %cst_100 : f32 to vector<2x8x8x16xf32>
    %340 = arith.mulf %339, %336 : vector<2x8x8x16xf32>
    %341 = arith.select %338, %336, %340 : vector<2x8x8x16xi1>, vector<2x8x8x16xf32>
    %342 = vector.broadcast %8 : vector<2x1x1x16xf32> to vector<2x8x8x16xf32>
    %343 = arith.mulf %341, %342 : vector<2x8x8x16xf32>
    %cst_101 = arith.constant dense<0.000000e+00> : vector<2x8x8xf32>
    %344 = vector.multi_reduction <add>, %343, %cst_101 [3] : vector<2x8x8x16xf32> to vector<2x8x8xf32>
    %345 = vector.shape_cast %2 : vector<8x8xf32> to vector<1x8x8xf32>
    %346 = vector.broadcast %345 : vector<1x8x8xf32> to vector<2x8x8xf32>
    %347 = arith.addf %344, %346 : vector<2x8x8xf32>
    %cst_102 = arith.constant dense<0xFF800000> : vector<2x8xf32>
    %348 = vector.multi_reduction <maximumf>, %347, %cst_102 [2] : vector<2x8x8xf32> to vector<2x8xf32>
    %349 = vector.shape_cast %348 : vector<2x8xf32> to vector<2x8x1xf32>
    %350 = vector.broadcast %349 : vector<2x8x1xf32> to vector<2x8x8xf32>
    %351 = arith.subf %347, %350 : vector<2x8x8xf32>
    %352 = math.exp %351 : vector<2x8x8xf32>
    %cst_103 = arith.constant dense<0.000000e+00> : vector<2x8xf32>
    %353 = vector.multi_reduction <add>, %352, %cst_103 [2] : vector<2x8x8xf32> to vector<2x8xf32>
    %354 = vector.shape_cast %353 : vector<2x8xf32> to vector<2x8x1xf32>
    %355 = tpu.reciprocal %354 {approx = true} : vector<2x8x1xf32> -> vector<2x8x1xf32>
    %356 = vector.broadcast %355 : vector<2x8x1xf32> to vector<2x8x8xf32>
    %357 = arith.mulf %352, %356 : vector<2x8x8xf32>
    %358 = vector.broadcast %321 : vector<1x1x8xf32> to vector<2x8x8xf32>
    %359 = arith.mulf %357, %358 : vector<2x8x8xf32>
    %cst_104 = arith.constant dense<0.000000e+00> : vector<2x8xf32>
    %360 = vector.multi_reduction <add>, %359, %cst_104 [2] : vector<2x8x8xf32> to vector<2x8xf32>
    %361 = vector.shape_cast %360 : vector<2x8xf32> to vector<2x8x1xf32>
    %362 = vector.extract_strided_slice %361 {offsets = [0, 0, 0], sizes = [1, 8, 1], strides = [1, 1, 1]} : vector<2x8x1xf32> to vector<1x8x1xf32>
    %363 = vector.shape_cast %362 : vector<1x8x1xf32> to vector<8x1xf32>
    %364 = vector.extract_strided_slice %9 {offsets = [0, 0], sizes = [1, 32], strides = [1, 1]} : vector<2x32xf32> to vector<1x32xf32>
    %365 = vector.broadcast %363 : vector<8x1xf32> to vector<8x32xf32>
    %366 = vector.broadcast %364 : vector<1x32xf32> to vector<8x32xf32>
    %367 = arith.mulf %365, %366 : vector<8x32xf32>
    %368 = vector.broadcast %10 : vector<1x32xf32> to vector<8x32xf32>
    %369 = arith.addf %368, %367 : vector<8x32xf32>
    %370 = vector.extract_strided_slice %361 {offsets = [1, 0, 0], sizes = [1, 8, 1], strides = [1, 1, 1]} : vector<2x8x1xf32> to vector<1x8x1xf32>
    %371 = vector.shape_cast %370 : vector<1x8x1xf32> to vector<8x1xf32>
    %372 = vector.extract_strided_slice %9 {offsets = [1, 0], sizes = [1, 32], strides = [1, 1]} : vector<2x32xf32> to vector<1x32xf32>
    %373 = vector.broadcast %371 : vector<8x1xf32> to vector<8x32xf32>
    %374 = vector.broadcast %372 : vector<1x32xf32> to vector<8x32xf32>
    %375 = arith.mulf %373, %374 : vector<8x32xf32>
    %376 = arith.addf %369, %375 : vector<8x32xf32>
    %cst_105 = arith.constant 0.000000e+00 : f32
    %377 = vector.broadcast %cst_105 : f32 to vector<8x32xf32>
    %378 = arith.subf %377, %376 : vector<8x32xf32>
    %379 = math.exp %378 : vector<8x32xf32>
    %cst_106 = arith.constant 1.000000e+00 : f32
    %380 = vector.broadcast %cst_106 : f32 to vector<8x32xf32>
    %381 = arith.addf %380, %379 : vector<8x32xf32>
    %382 = tpu.reciprocal %381 {approx = true} : vector<8x32xf32> -> vector<8x32xf32>
    %cst_107 = arith.constant dense<0.000000e+00> : vector<8x32xf32>
    %383 = tpu.matmul %382, %11, %cst_107 {dimension_numbers = #tpu.dot_dimension_numbers<[1], [0], [0], [1], [0, 0, 1, 1], [], []>} : vector<8x32xf32>, vector<32x32xf32>, vector<8x32xf32> -> vector<8x32xf32>
    %cst_108 = arith.constant dense<0.000000e+00> : vector<8x32xf32>
    %384 = tpu.matmul %317, %12, %cst_108 {dimension_numbers = #tpu.dot_dimension_numbers<[1], [0], [0], [1], [0, 0, 1, 1], [], []>} : vector<8x32xf32>, vector<32x32xf32>, vector<8x32xf32> -> vector<8x32xf32>
    %385 = arith.addf %383, %384 : vector<8x32xf32>
    %386 = vector.broadcast %13 : vector<1x32xf32> to vector<8x32xf32>
    %387 = arith.addf %385, %386 : vector<8x32xf32>
    %cst_109 = arith.constant 0.000000e+00 : f32
    %388 = vector.broadcast %cst_109 : f32 to vector<8x32xf32>
    %389 = arith.subf %388, %387 : vector<8x32xf32>
    %390 = math.exp %389 : vector<8x32xf32>
    %cst_110 = arith.constant 1.000000e+00 : f32
    %391 = vector.broadcast %cst_110 : f32 to vector<8x32xf32>
    %392 = arith.addf %391, %390 : vector<8x32xf32>
    %393 = tpu.reciprocal %392 {approx = true} : vector<8x32xf32> -> vector<8x32xf32>
    %cst_111 = arith.constant dense<0.000000e+00> : vector<8x32xf32>
    %394 = tpu.matmul %382, %14, %cst_111 {dimension_numbers = #tpu.dot_dimension_numbers<[1], [0], [0], [1], [0, 0, 1, 1], [], []>} : vector<8x32xf32>, vector<32x32xf32>, vector<8x32xf32> -> vector<8x32xf32>
    %cst_112 = arith.constant dense<0.000000e+00> : vector<8x32xf32>
    %395 = tpu.matmul %317, %15, %cst_112 {dimension_numbers = #tpu.dot_dimension_numbers<[1], [0], [0], [1], [0, 0, 1, 1], [], []>} : vector<8x32xf32>, vector<32x32xf32>, vector<8x32xf32> -> vector<8x32xf32>
    %396 = arith.addf %394, %395 : vector<8x32xf32>
    %397 = vector.broadcast %16 : vector<1x32xf32> to vector<8x32xf32>
    %398 = arith.addf %396, %397 : vector<8x32xf32>
    %cst_113 = arith.constant 0.000000e+00 : f32
    %399 = vector.broadcast %cst_113 : f32 to vector<8x32xf32>
    %400 = arith.subf %399, %398 : vector<8x32xf32>
    %401 = math.exp %400 : vector<8x32xf32>
    %cst_114 = arith.constant 1.000000e+00 : f32
    %402 = vector.broadcast %cst_114 : f32 to vector<8x32xf32>
    %403 = arith.addf %402, %401 : vector<8x32xf32>
    %404 = tpu.reciprocal %403 {approx = true} : vector<8x32xf32> -> vector<8x32xf32>
    %cst_115 = arith.constant dense<0.000000e+00> : vector<8x32xf32>
    %405 = tpu.matmul %382, %17, %cst_115 {dimension_numbers = #tpu.dot_dimension_numbers<[1], [0], [0], [1], [0, 0, 1, 1], [], []>} : vector<8x32xf32>, vector<32x32xf32>, vector<8x32xf32> -> vector<8x32xf32>
    %406 = arith.mulf %393, %317 : vector<8x32xf32>
    %cst_116 = arith.constant dense<0.000000e+00> : vector<8x32xf32>
    %407 = tpu.matmul %406, %18, %cst_116 {dimension_numbers = #tpu.dot_dimension_numbers<[1], [0], [0], [1], [0, 0, 1, 1], [], []>} : vector<8x32xf32>, vector<32x32xf32>, vector<8x32xf32> -> vector<8x32xf32>
    %408 = arith.addf %405, %407 : vector<8x32xf32>
    %409 = vector.broadcast %19 : vector<1x32xf32> to vector<8x32xf32>
    %410 = arith.addf %408, %409 : vector<8x32xf32>
    %411 = math.tanh %410 : vector<8x32xf32>
    %412 = arith.mulf %404, %317 : vector<8x32xf32>
    %cst_117 = arith.constant 1.000000e+00 : f32
    %413 = vector.broadcast %cst_117 : f32 to vector<8x32xf32>
    %414 = arith.subf %413, %404 : vector<8x32xf32>
    %415 = arith.mulf %414, %411 : vector<8x32xf32>
    %416 = arith.addf %412, %415 : vector<8x32xf32>
    %c0_118 = arith.constant 0 : index
    %c0_119 = arith.constant 0 : index
    %417 = vector.load %arg19[%c0_118, %c0_119] : memref<8x32xf32, #tpu.memory_space<vmem>>, vector<8x32xf32>
    tpu.vector_store %arg19[%c0_118, %c0_119], %416 {strides = array<i32>} : memref<8x32xf32, #tpu.memory_space<vmem>>, vector<8x32xf32>,
    return
  }
}

</mosaic_0001>

<bundles_post_ra>
// kernel: eq.11
= control target key start
LH: loop header
LB: loop body
LE: loop exit
PB: predicated region body
PF: predicated region fallthrough
CT: control target
= control target key end

     0   :  { %vm8_vm0 = vcmask 130048   ;;  %vm14_vm1 = vcmask 261248   ;;  %s42_s0 = inlined_call_operand.vmem [shape: s32[2,16], index: 0, kind: input, shape index: {}]   ;;  %s43_s1 = inlined_call_operand.vmem [shape: s32[32], index: 1, kind: output, shape index: {}]  }
   0x1   :  { %v5_v0 = vld [vmem:[%s42_s0] sm:$0x3]  ;;  %s25_s0 = smov 16  }
   0x2   :  { %6 = vst [vmem:[#allocation1] sm:$0x3] %v5_v0 }
   0x9   :  { %v11_v1 = vld [vmem:[#allocation1 + $0x1] sm:$0x1]   ;;  %v7_v2 = vld [vmem:[#allocation1] sm:$0x1]  }
   0xa   :  { %12 = vrot.lane.b32.xlu0 %v11_v1, %s25_s0  ;;  %9 = vst.msk [vmem:[#allocation0] sm:$0x1] %vm8_vm0, %v7_v2  }
  0x7c   :  { %v13_v3 = vpop.permute.xlu0 %12  }
  0x7d   :  { %15 = vst.msk [vmem:[#allocation0] sm:$0x1] %vm14_vm1, %v13_v3  }
  0x84   :  { %v20_v4 = vld [vmem:[#allocation0] sm:$0x1] }
  0x85   :  { %23 = vst [vmem:[%s43_s1] sm:$0x1] %v20_v4 }

// kernel: tgat_pallas.1
= control target key start
LH: loop header
LB: loop body
LE: loop exit
PB: predicated region body
PF: predicated region fallthrough
CT: control target
= control target key end

     0   :  { %s9616_s0 = inlined_call_operand.vmem [shape: f32[8,4], index: 0, kind: input, shape index: {}]   ;;  %s9617_s1 = inlined_call_operand.vmem [shape: f32[4,8], index: 1, kind: input, shape index: {}]   ;;  %s9618_s2 = inlined_call_operand.vmem [shape: f32[8,8], index: 2, kind: input, shape index: {}]   ;;  %s9619_s3 = inlined_call_operand.vmem [shape: f32[2,1,16], index: 3, kind: input, shape index: {}]   ;;  %s9620_s4 = inlined_call_operand.vmem [shape: f32[2,1,16], index: 4, kind: input, shape index: {}]   ;;  %s9621_s5 = inlined_call_operand.vmem [shape: f32[2,1,16], index: 5, kind: input, shape index: {}]   ;;  %s9622_s6 = inlined_call_operand.vmem [shape: f32[2,1,16], index: 6, kind: input, shape index: {}]   ;;  %s9623_s7 = inlined_call_operand.vmem [shape: f32[2,1,16], index: 7, kind: input, shape index: {}]   ;;  %s9624_s8 = inlined_call_operand.vmem [shape: f32[2,32], index: 8, kind: input, shape index: {}]   ;;  %s9625_s9 = inlined_call_operand.vmem [shape: f32[1,32], index: 9, kind: input, shape index: {}]   ;;  %s9626_s10 = inlined_call_operand.vmem [shape: f32[32,32], index: 10, kind: input, shape index: {}]   ;;  %s9627_s11 = inlined_call_operand.vmem [shape: f32[32,32], index: 11, kind: input, shape index: {}]   ;;  %s9628_s12 = inlined_call_operand.vmem [shape: f32[1,32], index: 12, kind: input, shape index: {}]   ;;  %s9629_s13 = inlined_call_operand.vmem [shape: f32[32,32], index: 13, kind: input, shape index: {}]   ;;  %s9630_s14 = inlined_call_operand.vmem [shape: f32[32,32], index: 14, kind: input, shape index: {}]   ;;  %s9631_s15 = inlined_call_operand.vmem [shape: f32[1,32], index: 15, kind: input, shape index: {}]   ;;  %s9632_s16 = inlined_call_operand.vmem [shape: f32[32,32], index: 16, kind: input, shape index: {}]   ;;  %s9633_s17 = inlined_call_operand.vmem [shape: f32[32,32], index: 17, kind: input, shape index: {}]   ;;  %s9634_s18 = inlined_call_operand.vmem [shape: f32[1,32], index: 18, kind: input, shape index: {}]   ;;  %s9635_s19 = inlined_call_operand.hbm [shape: f32[8,32], index: 19, kind: output, shape index: {}]  }
   0x1   :  { %9657 = sst [smem:[#allocation12_spill]] %s9616_s0 }
   0x2   :  { %9658 = sst [smem:[#allocation13_spill]] %s9617_s1 }
   0x3   :  { %9659 = sst [smem:[#allocation14_spill]] %s9618_s2 }
   0x4   :  { %9660 = sst [smem:[#allocation15_spill]] %s9619_s3 }
   0x5   :  { %s9661_s20 = sld [smem:[#allocation12_spill]]  ;;  %v172_v1 = vlaneseq  ;;  %v9639_v2 = vmov 0  }
   0x6   :  { %6710 = vset.pattern.permute.xlu0 %v9639_v2  ;;  %6711 = vset.pattern.permute.xlu1 %v9639_v2  ;;  %s9662_s22 = sld [smem:[#allocation14_spill]] }
   0x7   :  { %v7143_v3 = vshrl.u32 %v172_v1, 7  ;;  %v633_v4 = vand.u32 127, %v172_v1 }
   0x9   :  { %v7151_v6 = vsub.s32 0, %v7143_v3  ;;  %v7154_v7 = vsub.s32 1, %v7143_v3  ;;  %v7157_v8 = vsub.s32 %v633_v4, %v7143_v3  ;;  %v7160_v9 = vsub.s32 2, %v7143_v3 }
   0xa   :  { %v7163_v10 = vsub.s32 3, %v7143_v3 }
   0xb   :  { %v7138_v0 = vld [vmem:[%s9661_s20] sm:$0xff] }
   0xc   :  { %107 = vperm.xlu0 %6710, %v7138_v0   ;;  %v7148_v5 = vld [vmem:[%s9662_s22] sm:$0xff] }
   0xd   :  { %24 = vsyncpa [#allocation3], 0  ;;  %v498_v11 = vrot.slane %v7148_v5, %v7154_v7  ;;  %v491_v12 = vrot.slane %v7148_v5, %v7151_v6  ;;  %v505_v13 = vrot.slane %v7148_v5, %v7160_v9  ;;  %v7172_v14 = vsub.s32 4, %v7143_v3  ;;  %v7186_v22 = vld [vmem:[%s9621_s5] ss:$0 sm:$0xff]  ;;  %s9663_s30 = sld [smem:[#allocation15_spill]] }
   0xe   :  { %v512_v15 = vrot.slane %v7148_v5, %v7163_v10  ;;  %v7177_v16 = vsub.s32 5, %v7143_v3  ;;  %v7028_v19 = vmov 1966171168   ;;  %v6287_v23 = vld [vmem:[%s9621_s5 + $0x1] ss:$0 sm:$0xff]  ;;  %vm438_vm0 = vcmask 130048  }
   0xf   :  { %500 = vbcast.lane.b32.xlu1 %v498_v11, 256  ;;  %v519_v17 = vrot.slane %v7148_v5, %v7172_v14  ;;  %v170_v20 = vunpack.c.l.s4 %v7028_v19  ;;  %v7194_v24 = vld [vmem:[%s9622_s6] ss:$0 sm:$0xff]  ;;  %v6289_v25 = vld [vmem:[%s9622_s6 + $0x1] ss:$0 sm:$0xff]  ;;  %s9670_s0 = sld [smem:[#allocation13_spill]] }
  0x10   :  { %493 = vbcast.lane.b32.xlu0 %v491_v12, 256  ;;  %v526_v18 = vrot.slane %v7148_v5, %v7177_v16  ;;  %v7216_v36 = vld [vmem:[%s9620_s4] ss:$0 sm:$0xff]  ;;  %v6285_v37 = vld [vmem:[%s9620_s4 + $0x1] ss:$0 sm:$0xff] }
  0x11   :  { %v171_v21 = vunpack.c.0.s8 %v170_v20  ;;  %v7256_v62 = vld [vmem:[%s9623_s7 + $0x1] ss:$0 sm:$0xff]  ;;  %v7261_v63 = vld [vmem:[%s9623_s7] ss:$0 sm:$0xff] }
  0x13   :  { %507 = vbcast.lane.b32.xlu1 %v505_v13, 256  ;;  %v7200_v27 = vsub.s32 %v171_v21, %v7143_v3  ;;  %v7205_v28 = vld [vmem:[%s9663_s30] ss:$0 sm:$0xff]  ;;  %v6283_v29 = vld [vmem:[%s9663_s30 + $0x1] ss:$0 sm:$0xff] }
  0x14   :  { %514 = vbcast.lane.b32.xlu0 %v512_v15, 256 }
  0x17   :  { %521 = vbcast.lane.b32.xlu1 %v519_v17, 256 }
  0x18   :  { %528 = vbcast.lane.b32.xlu0 %v526_v18, 256 }
  0x87   :  { %v108_v26 = vpop.permute.xlu0 %107 }
  0x88   :  { %v150_v30 = vmul.f32 %v7186_v22, %v108_v26  ;;  %v151_v31 = vmul.f32 %v6287_v23, %v108_v26  ;;  %v122_v34 = vmul.f32 %v7205_v28, %v108_v26  ;;  %v123_v35 = vmul.f32 %v6283_v29, %v108_v26 }
  0x8a   :  { %v164_v32 = vadd.f32 %v7194_v24, %v150_v30  ;;  %v165_v33 = vadd.f32 %v6289_v25, %v151_v31  ;;  %v7232_v46 = vadd.f32 %v7216_v36, %v122_v34  ;;  %v7234_v47 = vadd.f32 %v6285_v37, %v123_v35 }
  0x8c   :  { %v168_v38 = vcombine.high %v164_v32, %v164_v32  ;;  %v175_v39 = vrot.slane %v164_v32, %v7200_v27  ;;  %v217_v40 = vcombine.high %v165_v33, %v165_v33  ;;  %v224_v41 = vrot.slane %v165_v33, %v7200_v27 }
  0x8e   :  { %v182_v42 = vrot.slane %v168_v38, %v7200_v27  ;;  %v7225_v43 = vrot.slane %v217_v40, %v7200_v27  ;;  %v7228_v44 = vrot.slane %v224_v41, %v7200_v27  ;;  %v191_v45 = vrot.slane %v175_v39, %v7200_v27 }
  0x8f   :  { %v183_v48 = vcombine.high %v175_v39, %v175_v39  ;;  %v232_v49 = vcombine.high %v224_v41, %v224_v41 }
  0x90   :  { %v301_v50 = vrot.slane %v7228_v44, %v7151_v6  ;;  %v269_v51 = vrot.slane %v191_v45, %v7151_v6  ;;  %v198_v52 = vrot.slane %v182_v42, %v7200_v27  ;;  %v213_v53 = vcombine.high %v191_v45, %v191_v45 }
  0x91   :  { %v7241_v54 = vrot.slane %v183_v48, %v7200_v27  ;;  %v7245_v55 = vrot.slane %v7225_v43, %v7200_v27  ;;  %v7248_v56 = vrot.slane %v232_v49, %v7200_v27  ;;  %v184_v57 = vcombine.high %v182_v42, %v182_v42 }
  0x92   :  { %v354_v58 = vadd.f32 %v301_v50, %v7234_v47  ;;  %v346_v59 = vadd.f32 %v269_v51, %v7232_v46  ;;  %v214_v60 = vcombine.high %v198_v52, %v198_v52  ;;  %v277_v61 = vrot.slane %v213_v53, %v7151_v6 }
  0x93   :  { %v273_v1 = vrot.slane %v7241_v54, %v7151_v6  ;;  %v263_v4 = vcombine.high %v7245_v55, %v7245_v55  ;;  %v305_v11 = vrot.slane %v7248_v56, %v7151_v6  ;;  %v7270_v12 = vrot.slane %v184_v57, %v7200_v27 }
  0x94   :  { %vm370_vm1 = vcmp.gt.f32.partialorder %v354_v58, 0.0  ;;  %v386_v13 = vmul.f32 0.2, %v354_v58  ;;  %vm362_vm2 = vcmp.gt.f32.partialorder %v346_v59, 0.0  ;;  %v378_v15 = vmul.f32 0.2, %v346_v59 }
  0x95   :  { %v347_v17 = vadd.f32 %v273_v1, %v7232_v46  ;;  %v293_v18 = vrot.slane %v214_v60, %v7151_v6  ;;  %v348_v19 = vadd.f32 %v277_v61, %v7232_v46  ;;  %v325_v20 = vrot.slane %v263_v4, %v7151_v6 }
  0x96   :  { %v402_v21 = vsel %vm370_vm1, %v354_v58, %v386_v13  ;;  %v394_v23 = vsel %vm362_vm2, %v346_v59, %v378_v15  ;;  %v355_v25 = vadd.f32 %v305_v11, %v7234_v47  ;;  %v216_v26 = vcombine.high %v7270_v12, %v7270_v12 }
  0x97   :  { %v430_v29 = vmul.f32 %v7256_v62, %v402_v21  ;;  %v422_v30 = vmul.f32 %v7261_v63, %v394_v23  ;;  %vm363_vm3 = vcmp.gt.f32.partialorder %v347_v17, 0.0  ;;  %v379_v31 = vmul.f32 0.2, %v347_v17 }
  0x98   :  { %v352_v32 = vadd.f32 %v293_v18, %v7232_v46  ;;  %vm364_vm4 = vcmp.gt.f32.partialorder %v348_v19, 0.0  ;;  %v380_v33 = vmul.f32 0.2, %v348_v19  ;;  %v360_v34 = vadd.f32 %v325_v20, %v7234_v47 }
  0x99   :  { %v463_v35 = vsel %vm438_vm0, %v430_v29, 0.0  ;;  %v439_v37 = vsel %vm438_vm0, %v422_v30, 0.0  ;;  %v395_v38 = vsel %vm363_vm3, %v347_v17, %v379_v31  ;;  %vm371_vm5 = vcmp.gt.f32.partialorder %v355_v25, 0.0 }
  0x9a   :  { %464 = vadd.xlane.f32.xlu1 %v463_v35  ;;  %440 = vadd.xlane.f32.xlu0 %v439_v37  ;;  %v423_v39 = vmul.f32 %v7261_v63, %v395_v38  ;;  %vm368_vm6 = vcmp.gt.f32.partialorder %v352_v32, 0.0  ;;  %v384_v40 = vmul.f32 0.2, %v352_v32  ;;  %v396_v41 = vsel %vm364_vm4, %v348_v19, %v380_v33 }
  0x9b   :  { %vm376_vm7 = vcmp.gt.f32.partialorder %v360_v34, 0.0  ;;  %v392_v42 = vmul.f32 0.2, %v360_v34  ;;  %v387_v45 = vmul.f32 0.2, %v355_v25  ;;  %v424_v49 = vmul.f32 %v7261_v63, %v396_v41 }
  0x9c   :  { %v400_v48 = vsel %vm368_vm6, %v352_v32, %v384_v40  ;;  %v297_v50 = vrot.slane %v216_v26, %v7151_v6  ;;  %v285_v51 = vrot.slane %v198_v52, %v7151_v6  ;;  %v442_v53 = vsel %vm438_vm0, %v423_v39, 0.0 }
  0x9d   :  { %v428_v57 = vmul.f32 %v7261_v63, %v400_v48  ;;  %v408_v58 = vsel %vm376_vm7, %v360_v34, %v392_v42  ;;  %v403_v59 = vsel %vm371_vm5, %v355_v25, %v387_v45  ;;  %v262_v11 = vcombine.high %v7228_v44, %v7228_v44 }
  0x9e   :  { %443 = vadd.xlane.f32.xlu1 %v442_v53  ;;  %v436_v60 = vmul.f32 %v7256_v62, %v408_v58  ;;  %v353_v61 = vadd.f32 %v297_v50, %v7232_v46  ;;  %v350_v1 = vadd.f32 %v285_v51, %v7232_v46  ;;  %v317_v52 = vrot.slane %v7245_v55, %v7151_v6 }
  0x9f   :  { %v457_v4 = vsel %vm438_vm0, %v428_v57, 0.0  ;;  %v215_v13 = vcombine.high %v7241_v54, %v7241_v54  ;;  %v431_v15 = vmul.f32 %v7256_v62, %v403_v59  ;;  %v445_v18 = vsel %vm438_vm0, %v424_v49, 0.0 }
  0xa0   :  { %458 = vadd.xlane.f32.xlu0 %v457_v4  ;;  %vm369_vm8 = vcmp.gt.f32.partialorder %v353_v61, 0.0  ;;  %v385_v17 = vmul.f32 0.2, %v353_v61  ;;  %vm366_vm9 = vcmp.gt.f32.partialorder %v350_v1, 0.0  ;;  %v382_v19 = vmul.f32 0.2, %v350_v1 }
  0xa1   :  { %v309_v20 = vrot.slane %v262_v11, %v7151_v6  ;;  %v358_v44 = vadd.f32 %v317_v52, %v7234_v47  ;;  %v281_v55 = vrot.slane %v215_v13, %v7151_v6  ;;  %v481_v23 = vsel %vm438_vm0, %v436_v60, 0.0 }
  0xa2   :  { %446 = vadd.xlane.f32.xlu1 %v445_v18  ;;  %v401_v21 = vsel %vm369_vm8, %v353_v61, %v385_v17  ;;  %v398_v25 = vsel %vm366_vm9, %v350_v1, %v382_v19  ;;  %v466_v29 = vsel %vm438_vm0, %v431_v15, 0.0  ;;  %v289_v32 = vrot.slane %v7270_v12, %v7151_v6 }
  0xa3   :  { %v429_v54 = vmul.f32 %v7261_v63, %v401_v21  ;;  %v356_v26 = vadd.f32 %v309_v20, %v7234_v47  ;;  %v426_v30 = vmul.f32 %v7261_v63, %v398_v25  ;;  %v390_v33 = vmul.f32 0.2, %v358_v44 }
  0xa4   :  { %482 = vadd.xlane.f32.xlu0 %v481_v23  ;;  %v349_v34 = vadd.f32 %v281_v55, %v7232_v46  ;;  %v264_v35 = vcombine.high %v7248_v56, %v7248_v56  ;;  %vm374_vm11 = vcmp.gt.f32.partialorder %v358_v44, 0.0  ;;  %v233_v39 = vcombine.high %v7225_v43, %v7225_v43 }
  0xa5   :  { %vm372_vm10 = vcmp.gt.f32.partialorder %v356_v26, 0.0  ;;  %v388_v31 = vmul.f32 0.2, %v356_v26  ;;  %v460_v37 = vsel %vm438_vm0, %v429_v54, 0.0  ;;  %v451_v40 = vsel %vm438_vm0, %v426_v30, 0.0 }
  0xa6   :  { %467 = vadd.xlane.f32.xlu1 %v466_v29  ;;  %v351_v12 = vadd.f32 %v289_v32, %v7232_v46  ;;  %v406_v42 = vsel %vm374_vm11, %v358_v44, %v390_v33  ;;  %v381_v45 = vmul.f32 0.2, %v349_v34  ;;  %v313_v48 = vrot.slane %v264_v35, %v7151_v6  ;;  %v7353_v32 = vpop.permute.xlu1 %500  ;;  %v7355_v33 = vpop.permute.xlu0 %493 }
  0xa7   :  { %v404_v38 = vsel %vm372_vm10, %v356_v26, %v388_v31  ;;  %vm365_vm12 = vcmp.gt.f32.partialorder %v349_v34, 0.0  ;;  %v261_v56 = vrot.slane %v233_v39, %v7200_v27  ;;  %v434_v50 = vmul.f32 %v7256_v62, %v406_v42  ;;  %9664 = vst [vmem:[#allocation5_spill] sm:$0xff] %v7355_v33 }
  0xa8   :  { %461 = vadd.xlane.f32.xlu0 %v460_v37  ;;  %v432_v41 = vmul.f32 %v7256_v62, %v404_v38  ;;  %v383_v51 = vmul.f32 0.2, %v351_v12  ;;  %v397_v43 = vsel %vm365_vm12, %v349_v34, %v381_v45  ;;  %v357_v53 = vadd.f32 %v313_v48, %v7234_v47 }
  0xa9   :  { %v321_v57 = vrot.slane %v261_v56, %v7151_v6  ;;  %v265_v46 = vcombine.high %v261_v56, %v261_v56  ;;  %vm367_vm13 = vcmp.gt.f32.partialorder %v351_v12, 0.0  ;;  %v475_v58 = vsel %vm438_vm0, %v434_v50, 0.0 }
  0xaa   :  { %452 = vadd.xlane.f32.xlu1 %v451_v40  ;;  %v469_v49 = vsel %vm438_vm0, %v432_v41, 0.0  ;;  %v425_v59 = vmul.f32 %v7261_v63, %v397_v43  ;;  %v399_v60 = vsel %vm367_vm13, %v351_v12, %v383_v51  ;;  %v389_v61 = vmul.f32 0.2, %v357_v53  ;;  %v7357_v34 = vpop.permute.xlu1 %507  ;;  %v7359_v35 = vpop.permute.xlu0 %514 }
  0xab   :  { %v359_v1 = vadd.f32 %v321_v57, %v7234_v47  ;;  %v329_v4 = vrot.slane %v265_v46, %v7151_v6  ;;  %vm373_vm14 = vcmp.gt.f32.partialorder %v357_v53, 0.0  ;;  %v427_v52 = vmul.f32 %v7261_v63, %v399_v60  ;;  %9665 = vst [vmem:[#allocation6_spill] sm:$0xff] %v7359_v35 }
  0xac   :  { %v448_v11 = vsel %vm438_vm0, %v425_v59, 0.0  ;;  %v405_v13 = vsel %vm373_vm14, %v357_v53, %v389_v61  ;;  %v7336_v15 = vsub.s32 7, %v7143_v3  ;;  %v7349_v30 = vsub.s32 6, %v7143_v3 }
  0xad   :  { %v391_v17 = vmul.f32 0.2, %v359_v1  ;;  %v361_v18 = vadd.f32 %v329_v4, %v7234_v47  ;;  %vm375_vm15 = vcmp.gt.f32.partialorder %v359_v1, 0.0  ;;  %v454_v19 = vsel %vm438_vm0, %v427_v52, 0.0 }
  0xae   :  { %470 = vadd.xlane.f32.xlu1 %v469_v49  ;;  %v433_v20 = vmul.f32 %v7256_v62, %v405_v13  ;;  %v540_v21 = vrot.slane %v7148_v5, %v7336_v15  ;;  %v533_v31 = vrot.slane %v7148_v5, %v7349_v30  ;;  %v7363_v37 = vpop.permute.xlu0 %528  ;;  %vm698_vm2 = vcmask 1041409  }
  0xaf   :  { %v407_v44 = vsel %vm375_vm15, %v359_v1, %v391_v17  ;;  %v393_v55 = vmul.f32 0.2, %v361_v18  ;;  %vm377_vm1 = vcmp.gt.f32.partialorder %v361_v18, 0.0  ;;  %9667 = vst [vmem:[#allocation8_spill] sm:$0xff] %v7363_v37  ;;  %vm700_vm3 = vcmask 1042434  }
  0xb0   :  { %v472_v23 = vsel %vm438_vm0, %v433_v20, 0.0  ;;  %v435_v54 = vmul.f32 %v7256_v62, %v407_v44  ;;  %vm702_vm4 = vcmask 1043459   ;;  %vm704_vm5 = vcmask 1044484  }
  0xb1   :  { %v409_v25 = vsel %vm377_vm1, %v361_v18, %v393_v55  ;;  %vm706_vm6 = vcmask 1045509   ;;  %vm708_vm7 = vcmask 1046534   ;;  %vm710_vm8 = vcmask 1047559  }
  0xb2   :  { %476 = vadd.xlane.f32.xlu1 %v475_v58  ;;  %v478_v47 = vsel %vm438_vm0, %v435_v54, 0.0  ;;  %v437_v26 = vmul.f32 %v7256_v62, %v409_v25  ;;  %v7361_v62 = vpop.permute.xlu1 %521  ;;  %vm721_vm9 = vcmask 64512  }
  0xb3   :  { %9666 = vst [vmem:[#allocation7_spill] sm:$0xff] %v7361_v62 }
  0xb4   :  { %v484_v29 = vsel %vm438_vm0, %v437_v26, 0.0 }
  0xb6   :  { %449 = vadd.xlane.f32.xlu1 %v448_v11 }
  0xba   :  { %455 = vadd.xlane.f32.xlu1 %v454_v19 }
  0xbe   :  { %473 = vadd.xlane.f32.xlu1 %v472_v23  ;;  %542 = vbcast.lane.b32.xlu0 %v540_v21, 256 }
  0xc2   :  { %479 = vadd.xlane.f32.xlu1 %v478_v47 }
  0xc6   :  { %485 = vadd.xlane.f32.xlu1 %v484_v29 }
  0xd7   :  { %535 = vbcast.lane.b32.xlu1 %v533_v31, 256 }
 0x123   :  { %v465_v38 = vpop.xlane.xlu1 %464  ;;  %v441_v39 = vpop.xlane.xlu0 %440 }
 0x124   :  { %v7366_v3 = vadd.f32 %v7355_v33, %v441_v39  ;;  %v7370_v40 = vadd.f32 %v7355_v33, %v465_v38 }
 0x126   :  { %585 = vperm.xlu1 %6711, %v7366_v3  }
 0x127   :  { %v444_v5 = vpop.xlane.xlu1 %443 }
 0x128   :  { %v7373_v41 = vadd.f32 %v7353_v32, %v444_v5 }
 0x129   :  { %v459_v57 = vpop.xlane.xlu0 %458 }
 0x12a   :  { %588 = vperm.xlu0 %6710, %v7373_v41   ;;  %609 = vperm.xlu1 %6711, %v7370_v40  }
 0x12b   :  { %v447_v12 = vpop.xlane.xlu1 %446 }
 0x12c   :  { %v7378_v42 = vadd.f32 %v7357_v34, %v447_v12 }
 0x12d   :  { %v483_v59 = vpop.xlane.xlu0 %482 }
 0x12e   :  { %591 = vperm.xlu1 %6711, %v7378_v42  }
 0x12f   :  { %v468_v45 = vpop.xlane.xlu1 %467 }
 0x130   :  { %v7382_v48 = vadd.f32 %v7353_v32, %v468_v45 }
 0x131   :  { %v462_v11 = vpop.xlane.xlu0 %461 }
 0x132   :  { %612 = vperm.xlu0 %6710, %v7382_v48  }
 0x133   :  { %v453_v56 = vpop.xlane.xlu1 %452 }
 0x134   :  { %v7386_v49 = vadd.f32 %v7361_v62, %v453_v56 }
 0x135   :  { %v7413_v17 = vpop.permute.xlu0 %542 }
 0x136   :  { %597 = vperm.xlu1 %6711, %v7386_v49   ;;  %9668 = vst [vmem:[#allocation9_spill] sm:$0xff] %v7413_v17  ;;  %v7426_v44 = vadd.f32 %v7413_v17, %v462_v11 }
 0x137   :  { %v471_v50 = vpop.xlane.xlu1 %470 }
 0x138   :  { %v7390_v51 = vadd.f32 %v7357_v34, %v471_v50 }
 0x13a   :  { %615 = vperm.xlu0 %6710, %v7390_v51  }
 0x13b   :  { %v477_v43 = vpop.xlane.xlu1 %476 }
 0x13c   :  { %v7394_v53 = vadd.f32 %v7361_v62, %v477_v43 }
 0x13e   :  { %621 = vperm.xlu0 %6710, %v7394_v53  }
 0x13f   :  { %v450_v46 = vpop.xlane.xlu1 %449 }
 0x140   :  { %v7398_v58 = vadd.f32 %v7359_v35, %v450_v46 }
 0x142   :  { %594 = vperm.xlu0 %6710, %v7398_v58  }
 0x143   :  { %v456_v60 = vpop.xlane.xlu1 %455 }
 0x144   :  { %v7402_v61 = vadd.f32 %v7363_v37, %v456_v60 }
 0x146   :  { %600 = vperm.xlu1 %6711, %v7402_v61  }
 0x147   :  { %v474_v1 = vpop.xlane.xlu1 %473 }
 0x148   :  { %v7406_v4 = vadd.f32 %v7359_v35, %v474_v1 }
 0x14a   :  { %618 = vperm.xlu0 %6710, %v7406_v4  }
 0x14b   :  { %v480_v52 = vpop.xlane.xlu1 %479 }
 0x14c   :  { %v7410_v13 = vadd.f32 %v7363_v37, %v480_v52 }
 0x14e   :  { %624 = vperm.xlu0 %6710, %v7410_v13  }
 0x14f   :  { %v486_v18 = vpop.xlane.xlu1 %485 }
 0x150   :  { %v7416_v19 = vadd.f32 %v7413_v17, %v486_v18 }
 0x152   :  { %630 = vperm.xlu0 %6710, %v7416_v19  }
 0x153   :  { %v7419_v20 = vpop.permute.xlu1 %535 }
 0x154   :  { %9669 = vst [vmem:[#allocation10_spill] sm:$0xff] %v7419_v20  ;;  %v7422_v21 = vadd.f32 %v7419_v20, %v459_v57  ;;  %v7430_v55 = vadd.f32 %v7419_v20, %v483_v59 }
 0x156   :  { %603 = vperm.xlu1 %6711, %v7422_v21  }
 0x15a   :  { %606 = vperm.xlu1 %6711, %v7426_v44  }
 0x15e   :  { %627 = vperm.xlu1 %6711, %v7430_v55  }
 0x1a1   :  { %v586_v25 = vpop.permute.xlu1 %585 }
 0x1a2   :  { %v637_v50 = vrot.slane %v586_v25, %v7157_v8 }
 0x1a5   :  { %v589_v23 = vpop.permute.xlu0 %588  ;;  %v610_v26 = vpop.permute.xlu1 %609 }
 0x1a6   :  { %v641_v5 = vrot.slane %v589_v23, %v7157_v8  ;;  %v669_v23 = vrot.slane %v610_v26, %v7157_v8 }
 0x1a8   :  { %v699_v57 = vsel %vm698_vm2, %v641_v5, %v637_v50 }
 0x1a9   :  { %v592_v31 = vpop.permute.xlu1 %591 }
 0x1aa   :  { %v645_v45 = vrot.slane %v592_v31, %v7157_v8 }
 0x1ac   :  { %v701_v46 = vsel %vm700_vm3, %v645_v45, %v699_v57 }
 0x1ad   :  { %v613_v54 = vpop.permute.xlu0 %612 }
 0x1ae   :  { %v673_v59 = vrot.slane %v613_v54, %v7157_v8 }
 0x1b0   :  { %v712_v54 = vsel %vm698_vm2, %v673_v59, %v669_v23 }
 0x1b1   :  { %v598_v39 = vpop.permute.xlu1 %597 }
 0x1b2   :  { %v653_v25 = vrot.slane %v598_v39, %v7157_v8 }
 0x1b5   :  { %v616_v47 = vpop.permute.xlu0 %615 }
 0x1b6   :  { %v677_v1 = vrot.slane %v616_v47, %v7157_v8 }
 0x1b8   :  { %v713_v45 = vsel %vm700_vm3, %v677_v1, %v712_v54 }
 0x1b9   :  { %v622_v29 = vpop.permute.xlu0 %621 }
 0x1bd   :  { %v595_v38 = vpop.permute.xlu0 %594 }
 0x1be   :  { %v649_v43 = vrot.slane %v595_v38, %v7157_v8 }
 0x1c0   :  { %v703_v11 = vsel %vm702_vm4, %v649_v43, %v701_v46  ;;  %v685_v43 = vrot.slane %v622_v29, %v7157_v8 }
 0x1c1   :  { %v601_v56 = vpop.permute.xlu1 %600  ;;  %v705_v47 = vsel %vm704_vm5, %v653_v25, %v703_v11 }
 0x1c2   :  { %v657_v52 = vrot.slane %v601_v56, %v7157_v8 }
 0x1c4   :  { %v707_v50 = vsel %vm706_vm6, %v657_v52, %v705_v47 }
 0x1c5   :  { %v619_v12 = vpop.permute.xlu0 %618 }
 0x1c6   :  { %v681_v31 = vrot.slane %v619_v12, %v7157_v8 }
 0x1c8   :  { %v714_v26 = vsel %vm702_vm4, %v681_v31, %v713_v45 }
 0x1c9   :  { %v625_v18 = vpop.permute.xlu0 %624  ;;  %v715_v11 = vsel %vm704_vm5, %v685_v43, %v714_v26 }
 0x1ca   :  { %v689_v39 = vrot.slane %v625_v18, %v7157_v8 }
 0x1cc   :  { %v716_v23 = vsel %vm706_vm6, %v689_v39, %v715_v11 }
 0x1cd   :  { %v631_v57 = vpop.permute.xlu0 %630 }
 0x1ce   :  { %v697_v52 = vrot.slane %v631_v57, %v7157_v8 }
 0x1d1   :  { %v604_v60 = vpop.permute.xlu1 %603 }
 0x1d2   :  { %v661_v38 = vrot.slane %v604_v60, %v7157_v8 }
 0x1d4   :  { %v709_v12 = vsel %vm708_vm7, %v661_v38, %v707_v50 }
 0x1d5   :  { %v607_v5 = vpop.permute.xlu1 %606 }
 0x1d6   :  { %v665_v56 = vrot.slane %v607_v5, %v7157_v8 }
 0x1d8   :  { %v711_v46 = vsel %vm710_vm8, %v665_v56, %v709_v12 }
 0x1d9   :  { %v628_v59 = vpop.permute.xlu1 %627  ;;  %v722_v60 = vsel %vm721_vm9, %v711_v46, -inf }
 0x1da   :  { %v693_v1 = vrot.slane %v628_v59, %v7157_v8  ;;  %723 = vmax.xlane.f32.xlu1 %v722_v60 }
 0x1dc   :  { %v717_v18 = vsel %vm708_vm7, %v693_v1, %v716_v23 }
 0x1dd   :  { %v718_v25 = vsel %vm710_vm8, %v697_v52, %v717_v18 }
 0x1de   :  { %v725_v29 = vsel %vm721_vm9, %v718_v25, -inf }
 0x1df   :  { %726 = vmax.xlane.f32.xlu0 %v725_v29 }
 0x263   :  { %v724_v31 = vpop.xlane.xlu1 %723 }
 0x264   :  { %v733_v38 = vrot.slane %v724_v31, %v7151_v6  ;;  %v737_v54 = vrot.slane %v724_v31, %v7154_v7  ;;  %v741_v5 = vrot.slane %v724_v31, %v7160_v9  ;;  %v745_v47 = vrot.slane %v724_v31, %v7163_v10 }
 0x265   :  { %v749_v46 = vrot.slane %v724_v31, %v7172_v14  ;;  %v757_v29 = vrot.slane %v724_v31, %v7349_v30 }
 0x266   :  { %v810_v45 = vsub.f32 %v7366_v3, %v733_v38  ;;  %v811_v56 = vsub.f32 %v7373_v41, %v737_v54  ;;  %v813_v50 = vsub.f32 %v7398_v58, %v745_v47  ;;  %v812_v26 = vsub.f32 %v7378_v42, %v741_v5 }
 0x267   :  { %v753_v42 = vrot.slane %v724_v31, %v7177_v16  ;;  %v814_v11 = vsub.f32 %v7386_v49, %v749_v46  ;;  %v761_v5 = vrot.slane %v724_v31, %v7336_v15  ;;  %v816_v47 = vsub.f32 %v7422_v21, %v757_v29 }
 0x268   :  { %v826_v39 = vmul.f32 1.442695, %v810_v45  ;;  %v828_v12 = vmul.f32 1.442695, %v811_v56  ;;  %v727_v43 = vpop.xlane.xlu0 %726  ;;  %v832_v59 = vmul.f32 1.442695, %v813_v50 }
 0x269   :  { %v765_v57 = vrot.slane %v727_v43, %v7151_v6  ;;  %v769_v60 = vrot.slane %v727_v43, %v7154_v7  ;;  %v830_v1 = vmul.f32 1.442695, %v812_v26  ;;  %v773_v3 = vrot.slane %v727_v43, %v7160_v9 }
 0x26a   :  { %6718 = vpow2.f32 %v826_v39  ;;  %v777_v52 = vrot.slane %v727_v43, %v7163_v10  ;;  %v815_v38 = vsub.f32 %v7402_v61, %v753_v42  ;;  %v834_v54 = vmul.f32 1.442695, %v814_v11 }
 0x26b   :  { %6720 = vpow2.f32 %v828_v12  ;;  %v818_v41 = vsub.f32 %v7370_v40, %v765_v57  ;;  %v819_v58 = vsub.f32 %v7382_v48, %v769_v60  ;;  %v820_v23 = vsub.f32 %v7390_v51, %v773_v3 }
 0x26c   :  { %6722 = vpow2.f32 %v832_v59  ;;  %v781_v40 = vrot.slane %v727_v43, %v7172_v14  ;;  %v821_v48 = vsub.f32 %v7406_v4, %v777_v52  ;;  %v836_v51 = vmul.f32 1.442695, %v815_v38 }
 0x26d   :  { %6724 = vpow2.f32 %v830_v1  ;;  %v842_v18 = vmul.f32 1.442695, %v818_v41  ;;  %v844_v25 = vmul.f32 1.442695, %v819_v58  ;;  %v846_v49 = vmul.f32 1.442695, %v820_v23 }
 0x26e   :  { %v785_v56 = vrot.slane %v727_v43, %v7177_v16  ;;  %v822_v61 = vsub.f32 %v7394_v53, %v781_v40  ;;  %v848_v50 = vmul.f32 1.442695, %v821_v48  ;;  %v817_v4 = vsub.f32 %v7426_v44, %v761_v5 }
 0x26f   :  { %6726 = vpow2.f32 %v842_v18  ;;  %v838_v21 = vmul.f32 1.442695, %v816_v47  ;;  %v789_v31 = vrot.slane %v727_v43, %v7349_v30  ;;  %v793_v12 = vrot.slane %v727_v43, %v7336_v15 }
 0x270   :  { %6728 = vpow2.f32 %v844_v25  ;;  %v823_v53 = vsub.f32 %v7410_v13, %v785_v56  ;;  %v850_v57 = vmul.f32 1.442695, %v822_v61  ;;  %v840_v44 = vmul.f32 1.442695, %v817_v4 }
 0x271   :  { %6730 = vpow2.f32 %v834_v54  ;;  %v824_v59 = vsub.f32 %v7430_v55, %v789_v31  ;;  %v825_v1 = vsub.f32 %v7416_v19, %v793_v12  ;;  %v7029_v38 = vmov 1  }
 0x272   :  { %6732 = vpow2.f32 %v846_v49  ;;  %v852_v43 = vmul.f32 1.442695, %v823_v53 }
 0x273   :  { %6734 = vpow2.f32 %v836_v51  ;;  %v854_v13 = vmul.f32 1.442695, %v824_v59  ;;  %v856_v58 = vmul.f32 1.442695, %v825_v1 }
 0x274   :  { %6736 = vpow2.f32 %v848_v50 }
 0x275   :  { %6738 = vpow2.f32 %v838_v21 }
 0x276   :  { %6740 = vpow2.f32 %v850_v57 }
 0x277   :  { %v7489_v45 = vpop.eup %6718  ;;  %6742 = vpow2.f32 %v840_v44 }
 0x278   :  { %v7493_v26 = vpop.eup %6720  ;;  %875 = vperm.xlu0 %6710, %v7489_v45   ;;  %6744 = vpow2.f32 %v852_v43 }
 0x279   :  { %878 = vperm.xlu1 %6711, %v7493_v26   ;;  %v7499_v39 = vpop.eup %6722  ;;  %6746 = vpow2.f32 %v854_v13 }
 0x27a   :  { %v7503_v46 = vpop.eup %6724  ;;  %6748 = vpow2.f32 %v856_v58 }
 0x27c   :  { %884 = vperm.xlu0 %6710, %v7499_v39   ;;  %v7508_v60 = vpop.eup %6726 }
 0x27d   :  { %881 = vperm.xlu1 %6711, %v7503_v46   ;;  %v7511_v3 = vpop.eup %6728 }
 0x27e   :  { %v7515_v41 = vpop.eup %6730 }
 0x27f   :  { %v7517_v42 = vpop.eup %6732 }
 0x280   :  { %902 = vperm.xlu0 %6710, %v7511_v3   ;;  %v7521_v19 = vpop.eup %6734 }
 0x281   :  { %899 = vperm.xlu1 %6711, %v7508_v60   ;;  %v7523_v55 = vpop.eup %6736 }
 0x282   :  { %v7527_v11 = vpop.eup %6738 }
 0x283   :  { %v7529_v52 = vpop.eup %6740 }
 0x284   :  { %905 = vperm.xlu0 %6710, %v7517_v42   ;;  %v7533_v23 = vpop.eup %6742 }
 0x285   :  { %887 = vperm.xlu1 %6711, %v7515_v41   ;;  %v7535_v18 = vpop.eup %6744 }
 0x286   :  { %v7539_v25 = vpop.eup %6746 }
 0x287   :  { %v7541_v29 = vpop.eup %6748 }
 0x288   :  { %908 = vperm.xlu0 %6710, %v7523_v55  }
 0x289   :  { %890 = vperm.xlu1 %6711, %v7521_v19  }
 0x28c   :  { %911 = vperm.xlu0 %6710, %v7529_v52  }
 0x28d   :  { %893 = vperm.xlu1 %6711, %v7527_v11  }
 0x290   :  { %914 = vperm.xlu0 %6710, %v7535_v18  }
 0x291   :  { %896 = vperm.xlu1 %6711, %v7533_v23  }
 0x294   :  { %920 = vperm.xlu0 %6710, %v7541_v29  }
 0x295   :  { %917 = vperm.xlu1 %6711, %v7539_v25  }
 0x299   :  { %6712 = vset.pattern.permute.xlu1 %v7029_v38 }
 0x2f3   :  { %v876_v54 = vpop.permute.xlu0 %875 }
 0x2f4   :  { %v879_v40 = vpop.permute.xlu1 %878  ;;  %v925_v50 = vrot.slane %v876_v54, %v7157_v8 }
 0x2f5   :  { %v929_v61 = vrot.slane %v879_v40, %v7157_v8 }
 0x2f7   :  { %v885_v48 = vpop.permute.xlu0 %884  ;;  %v986_v12 = vsel %vm698_vm2, %v929_v61, %v925_v50 }
 0x2f8   :  { %v882_v49 = vpop.permute.xlu1 %881  ;;  %v937_v53 = vrot.slane %v885_v48, %v7157_v8 }
 0x2f9   :  { %v933_v4 = vrot.slane %v882_v49, %v7157_v8 }
 0x2fb   :  { %v903_v47 = vpop.permute.xlu0 %902  ;;  %v987_v57 = vsel %vm700_vm3, %v933_v4, %v986_v12 }
 0x2fc   :  { %v900_v5 = vpop.permute.xlu1 %899  ;;  %v961_v58 = vrot.slane %v903_v47, %v7157_v8  ;;  %v988_v54 = vsel %vm702_vm4, %v937_v53, %v987_v57 }
 0x2fd   :  { %v957_v13 = vrot.slane %v900_v5, %v7157_v8 }
 0x2ff   :  { %v906_v56 = vpop.permute.xlu0 %905  ;;  %v993_v47 = vsel %vm698_vm2, %v961_v58, %v957_v13 }
 0x300   :  { %v888_v51 = vpop.permute.xlu1 %887  ;;  %v965_v40 = vrot.slane %v906_v56, %v7157_v8 }
 0x301   :  { %v941_v44 = vrot.slane %v888_v51, %v7157_v8 }
 0x302   :  { %v994_v56 = vsel %vm700_vm3, %v965_v40, %v993_v47 }
 0x303   :  { %v909_v31 = vpop.permute.xlu0 %908  ;;  %v989_v48 = vsel %vm704_vm5, %v941_v44, %v988_v54 }
 0x304   :  { %v891_v21 = vpop.permute.xlu1 %890  ;;  %v969_v49 = vrot.slane %v909_v31, %v7157_v8 }
 0x305   :  { %v945_v43 = vrot.slane %v891_v21, %v7157_v8 }
 0x306   :  { %v995_v31 = vsel %vm702_vm4, %v969_v49, %v994_v56 }
 0x307   :  { %v912_v1 = vpop.permute.xlu0 %911  ;;  %v990_v5 = vsel %vm706_vm6, %v945_v43, %v989_v48  ;;  %v64_v48 = vld [vmem:[%s9670_s0] sm:$0xf] }
 0x308   :  { %v894_v59 = vpop.permute.xlu1 %893  ;;  %v973_v50 = vrot.slane %v912_v1, %v7157_v8  ;;  %v1111_v49 = vrot.slane %v64_v48, %v7151_v6 }
 0x309   :  { %v949_v38 = vrot.slane %v894_v59, %v7157_v8 }
 0x30a   :  { %v996_v1 = vsel %vm704_vm5, %v973_v50, %v995_v31 }
 0x30b   :  { %v915_v51 = vpop.permute.xlu0 %914  ;;  %v991_v12 = vsel %vm708_vm7, %v949_v38, %v990_v5 }
 0x30c   :  { %v897_v61 = vpop.permute.xlu1 %896  ;;  %v977_v21 = vrot.slane %v915_v51, %v7157_v8 }
 0x30d   :  { %v953_v4 = vrot.slane %v897_v61, %v7157_v8 }
 0x30e   :  { %v997_v58 = vsel %vm706_vm6, %v977_v21, %v996_v1 }
 0x30f   :  { %v992_v53 = vsel %vm710_vm8, %v953_v4, %v991_v12  ;;  %v921_v44 = vpop.permute.xlu0 %920 }
 0x310   :  { %v918_v57 = vpop.permute.xlu1 %917  ;;  %v1002_v59 = vsel %vm721_vm9, %v992_v53, 0.0  ;;  %v985_v13 = vrot.slane %v921_v44, %v7157_v8 }
 0x311   :  { %v981_v43 = vrot.slane %v918_v57, %v7157_v8  ;;  %1003 = vadd.xlane.f32.xlu1 %v1002_v59 }
 0x313   :  { %v998_v38 = vsel %vm708_vm7, %v981_v43, %v997_v58 }
 0x314   :  { %v999_v54 = vsel %vm710_vm8, %v985_v13, %v998_v38 }
 0x315   :  { %v1005_v40 = vsel %vm721_vm9, %v999_v54, 0.0 }
 0x316   :  { %1006 = vadd.xlane.f32.xlu0 %v1005_v40 }
 0x322   :  { %1774 = vperm.xlu1 %6712, %v7138_v0  }
 0x326   :  { %6713 = vset.pattern.permute.xlu1 %v9639_v2 }
 0x32c   :  { %1114 = vbcast.lane.b32.xlu0 %v1111_v49, 256 }
 0x39a   :  { %v1004_v61 = vpop.xlane.xlu1 %1003 }
 0x39b   :  { %6750 = vrcp.f32 %v1004_v61 }
 0x39e   :  { %v7583_v51 = vpop.permute.xlu1 %1774 }
 0x39f   :  { %v1781_v50 = vmul.f32 %v7186_v22, %v7583_v51  ;;  %v1007_v4 = vpop.xlane.xlu0 %1006  ;;  %v1777_v0 = vmul.f32 %v7205_v28, %v7583_v51 }
 0x3a0   :  { %6752 = vrcp.f32 %v1007_v4 }
 0x3a1   :  { %v1783_v5 = vadd.f32 %v7194_v24, %v1781_v50  ;;  %v7594_v21 = vadd.f32 %v7216_v36, %v1777_v0 }
 0x3a3   :  { %v7591_v47 = vrot.slane %v1783_v5, %v7200_v27  ;;  %v7609_v31 = vpop.permute.xlu0 %1114  ;;  %v1787_v36 = vcombine.high %v1783_v5, %v1783_v5 }
 0x3a5   :  { %v7598_v12 = vrot.slane %v7591_v47, %v7200_v27  ;;  %v1801_v54 = vrot.slane %v1787_v36, %v7200_v27 }
 0x3a7   :  { %v1888_v22 = vrot.slane %v7598_v12, %v7151_v6 }
 0x3a8   :  { %v7602_v56 = vpop.eup %6750 }
 0x3a9   :  { %v1019_v28 = vrot.slane %v7602_v56, %v7154_v7  ;;  %v1965_v24 = vadd.f32 %v1888_v22, %v7594_v21  ;;  %v1027_v53 = vrot.slane %v7602_v56, %v7163_v10  ;;  %v1015_v22 = vrot.slane %v7602_v56, %v7151_v6 }
 0x3ab   :  { %v1093_v57 = vmul.f32 %v7493_v26, %v1019_v28  ;;  %vm1981_vm10 = vcmp.gt.f32.partialorder %v1965_v24, 0.0  ;;  %v1997_v44 = vmul.f32 0.2, %v1965_v24  ;;  %v1095_v13 = vmul.f32 %v7499_v39, %v1027_v53 }
 0x3ac   :  { %v1817_v39 = vrot.slane %v1801_v54, %v7200_v27 }
 0x3ad   :  { %v7612_v59 = vpop.eup %6752  ;;  %v1118_v1 = vmul.f32 %v7609_v31, %v1093_v57  ;;  %v2013_v43 = vsel %vm1981_vm10, %v1965_v24, %v1997_v44  ;;  %v1120_v26 = vmul.f32 %v7609_v31, %v1095_v13  ;;  %v1023_v13 = vrot.slane %v7602_v56, %v7160_v9 }
 0x3ae   :  { %v2029_v58 = vmul.f32 %v7261_v63, %v2013_v43  ;;  %v1051_v38 = vrot.slane %v7612_v59, %v7154_v7  ;;  %v1055_v49 = vrot.slane %v7612_v59, %v7160_v9  ;;  %v1803_v63 = vcombine.high %v1801_v54, %v1801_v54 }
 0x3af   :  { %1153 = vperm.xlu0 %6710, %v1118_v1   ;;  %v1059_v4 = vrot.slane %v7612_v59, %v7163_v10  ;;  %v1904_v0 = vrot.slane %v1817_v39, %v7151_v6  ;;  %v1063_v28 = vrot.slane %v7612_v59, %v7172_v14  ;;  %v1092_v1 = vmul.f32 %v7489_v45, %v1015_v22 }
 0x3b0   :  { %v2045_v40 = vsel %vm438_vm0, %v2029_v58, 0.0  ;;  %v1101_v48 = vmul.f32 %v7511_v3, %v1051_v38  ;;  %v1102_v50 = vmul.f32 %v7517_v42, %v1055_v49  ;;  %v1831_v5 = vrot.slane %v1803_v63, %v7200_v27 }
 0x3b1   :  { %2046 = vadd.xlane.f32.xlu1 %v2045_v40  ;;  %v1833_v3 = vcombine.high %v1817_v39, %v1817_v39  ;;  %v1103_v53 = vmul.f32 %v7523_v55, %v1059_v4  ;;  %v7639_v42 = vadd.f32 %v1904_v0, %v7594_v21  ;;  %v1104_v43 = vmul.f32 %v7529_v52, %v1063_v28 }
 0x3b2   :  { %v1126_v61 = vmul.f32 %v7609_v31, %v1101_v48  ;;  %v1127_v24 = vmul.f32 %v7609_v31, %v1102_v50  ;;  %v1908_v36 = vrot.slane %v1831_v5, %v7151_v6  ;;  %v1835_v44 = vcombine.high %v1831_v5, %v1831_v5 }
 0x3b3   :  { %1159 = vperm.xlu0 %6710, %v1120_v26   ;;  %v1912_v57 = vrot.slane %v1833_v3, %v7151_v6  ;;  %v1067_v58 = vrot.slane %v7612_v59, %v7177_v16  ;;  %v1128_v55 = vmul.f32 %v7609_v31, %v1103_v53  ;;  %v1117_v45 = vmul.f32 %v7609_v31, %v1092_v1 }
 0x3b4   :  { %v7651_v38 = vadd.f32 %v1908_v36, %v7594_v21  ;;  %v1916_v40 = vrot.slane %v1835_v44, %v7151_v6  ;;  %v1094_v52 = vmul.f32 %v7503_v46, %v1023_v13  ;;  %v1047_v26 = vrot.slane %v7612_v59, %v7151_v6  ;;  %v6919_v13 = vld [vmem:[%s9622_s6 + $0x1] ss:$0 sm:$0xff] }
 0x3b5   :  { %v7654_v54 = vadd.f32 %v1912_v57, %v7594_v21  ;;  %v1129_v49 = vmul.f32 %v7609_v31, %v1104_v43  ;;  %v1105_v39 = vmul.f32 %v7535_v18, %v1067_v58  ;;  %v1075_v63 = vrot.slane %v7612_v59, %v7336_v15  ;;  %v6918_v57 = vld [vmem:[%s9621_s5 + $0x1] ss:$0 sm:$0xff] }
 0x3b6   :  { %v7662_v48 = vadd.f32 %v1916_v40, %v7594_v21  ;;  %v1100_v50 = vmul.f32 %v7508_v60, %v1047_v26  ;;  %v1031_v46 = vrot.slane %v7602_v56, %v7172_v14  ;;  %v1035_v3 = vrot.slane %v7602_v56, %v7177_v16 }
 0x3b7   :  { %1177 = vperm.xlu0 %6710, %v1126_v61   ;;  %v1119_v61 = vmul.f32 %v7609_v31, %v1094_v52  ;;  %v1130_v4 = vmul.f32 %v7609_v31, %v1105_v39  ;;  %v1107_v0 = vmul.f32 %v7541_v29, %v1075_v63  ;;  %v1039_v29 = vrot.slane %v7602_v56, %v7349_v30 }
 0x3b8   :  { %v1125_v18 = vmul.f32 %v7609_v31, %v1100_v50  ;;  %v1096_v5 = vmul.f32 %v7515_v41, %v1031_v46  ;;  %v1097_v28 = vmul.f32 %v7521_v19, %v1035_v3  ;;  %v1043_v41 = vrot.slane %v7602_v56, %v7336_v15 }
 0x3b9   :  { %v1132_v22 = vmul.f32 %v7609_v31, %v1107_v0  ;;  %v1098_v53 = vmul.f32 %v7527_v11, %v1039_v29  ;;  %v1802_v36 = vcombine.high %v7591_v47, %v7591_v47  ;;  %v1782_v19 = vmul.f32 %v6918_v57, %v7583_v51  ;;  %v7737_v57 = vld [vmem:[%s9623_s7 + $0x1] ss:$0 sm:$0xff] }
 0x3ba   :  { %v1121_v60 = vmul.f32 %v7609_v31, %v1096_v5  ;;  %v1099_v1 = vmul.f32 %v7533_v23, %v1043_v41  ;;  %v1071_v11 = vrot.slane %v7612_v59, %v7349_v30  ;;  %v1832_v47 = vcombine.high %v7598_v12, %v7598_v12  ;;  %v6920_v59 = vld [vmem:[%s9663_s30 + $0x1] ss:$0 sm:$0xff] }
 0x3bb   :  { %1180 = vperm.xlu0 %6710, %v1127_v24   ;;  %v1122_v24 = vmul.f32 %v7609_v31, %v1097_v28  ;;  %v1123_v44 = vmul.f32 %v7609_v31, %v1098_v53  ;;  %v1824_v43 = vrot.slane %v1802_v36, %v7200_v27  ;;  %v1784_v58 = vadd.f32 %v6919_v13, %v1782_v19 }
 0x3bc   :  { %v1106_v23 = vmul.f32 %v7539_v25, %v1071_v11  ;;  %v1778_v40 = vmul.f32 %v6920_v59, %v7583_v51  ;;  %v1896_v52 = vrot.slane %v1832_v47, %v7151_v6  ;;  %v6921_v25 = vld [vmem:[%s9620_s4 + $0x1] ss:$0 sm:$0xff]  ;;  %vm1985_vm14 = vcmp.gt.f32.partialorder %v7639_v42, 0.0 }
 0x3bd   :  { %v1892_v56 = vrot.slane %v1824_v43, %v7151_v6  ;;  %v1836_v0 = vcombine.high %v1784_v58, %v1784_v58  ;;  %v1834_v53 = vcombine.high %v1824_v43, %v1824_v43  ;;  %v2002_v11 = vmul.f32 0.2, %v7651_v38 }
 0x3be   :  { %v7718_v39 = vadd.f32 %v6921_v25, %v1778_v40  ;;  %vm1986_vm15 = vcmp.gt.f32.partialorder %v7651_v38, 0.0  ;;  %vm1987_vm1 = vcmp.gt.f32.partialorder %v7654_v54, 0.0  ;;  %v2004_v25 = vmul.f32 0.2, %v7662_v48 }
 0x3bf   :  { %1183 = vperm.xlu0 %6710, %v1128_v55   ;;  %v1124_v55 = vmul.f32 %v7609_v31, %v1099_v1  ;;  %v1966_v12 = vadd.f32 %v1892_v56, %v7594_v21  ;;  %v1900_v43 = vrot.slane %v1834_v53, %v7151_v6  ;;  %vm1988_vm10 = vcmp.gt.f32.partialorder %v7662_v48, 0.0 }
 0x3c1   :  { %v1998_v51 = vmul.f32 0.2, %v1966_v12  ;;  %vm1982_vm11 = vcmp.gt.f32.partialorder %v1966_v12, 0.0  ;;  %v1968_v40 = vadd.f32 %v1900_v43, %v7594_v21 }
 0x3c2   :  { %1150 = vperm.xlu1 %6713, %v1117_v45   ;;  %v1843_v45 = vrot.slane %v1784_v58, %v7200_v27 }
 0x3c3   :  { %1186 = vperm.xlu0 %6710, %v1129_v49   ;;  %v1131_v49 = vmul.f32 %v7609_v31, %v1106_v23  ;;  %v2014_v46 = vsel %vm1982_vm11, %v1966_v12, %v1998_v51  ;;  %v6922_v31 = vld [vmem:[%s9623_s7] ss:$0 sm:$0xff]  ;;  %v2003_v23 = vmul.f32 0.2, %v7654_v54  ;;  %vm1984_vm11 = vcmp.gt.f32.partialorder %v1968_v40, 0.0 }
 0x3c4   :  { %v1859_v26 = vrot.slane %v1843_v45, %v7200_v27  ;;  %v1851_v36 = vcombine.high %v1843_v45, %v1843_v45 }
 0x3c6   :  { %1156 = vperm.xlu1 %6713, %v1119_v61   ;;  %v1920_v63 = vrot.slane %v1859_v26, %v7151_v6  ;;  %v1967_v61 = vadd.f32 %v1896_v52, %v7594_v21  ;;  %v1873_v47 = vrot.slane %v1851_v36, %v7200_v27 }
 0x3c7   :  { %1189 = vperm.xlu0 %6710, %v1130_v4  }
 0x3c8   :  { %v1973_v50 = vadd.f32 %v1920_v63, %v7718_v39  ;;  %v1999_v4 = vmul.f32 0.2, %v1967_v61  ;;  %vm1983_vm12 = vcmp.gt.f32.partialorder %v1967_v61, 0.0  ;;  %v1924_v59 = vrot.slane %v1873_v47, %v7151_v6 }
 0x3c9   :  { %v1883_v21 = vcombine.high %v1873_v47, %v1873_v47 }
 0x3ca   :  { %1174 = vperm.xlu1 %6713, %v1125_v18   ;;  %v2030_v18 = vmul.f32 %v6922_v31, %v2014_v46  ;;  %v2005_v5 = vmul.f32 0.2, %v1973_v50  ;;  %v2015_v3 = vsel %vm1983_vm12, %v1967_v61, %v1999_v4  ;;  %vm1989_vm13 = vcmp.gt.f32.partialorder %v1973_v50, 0.0 }
 0x3cb   :  { %1195 = vperm.xlu0 %6710, %v1132_v22   ;;  %v7727_v22 = vrot.slane %v1836_v0, %v7200_v27  ;;  %v2031_v28 = vmul.f32 %v6922_v31, %v2015_v3  ;;  %v2020_v46 = vsel %vm1988_vm10, %v7662_v48, %v2004_v25 }
 0x3cc   :  { %v2021_v29 = vsel %vm1989_vm13, %v1973_v50, %v2005_v5  ;;  %v1932_v5 = vrot.slane %v1883_v21, %v7151_v6 }
 0x3cd   :  { %v1866_v41 = vrot.slane %v7727_v22, %v7200_v27  ;;  %v2037_v19 = vmul.f32 %v7737_v57, %v2021_v29  ;;  %v1852_v3 = vcombine.high %v7727_v22, %v7727_v22 }
 0x3ce   :  { %1162 = vperm.xlu1 %6713, %v1121_v60   ;;  %v2048_v60 = vsel %vm438_vm0, %v2030_v18, 0.0 }
 0x3cf   :  { %v1882_v56 = vcombine.high %v1866_v41, %v1866_v41  ;;  %v2069_v13 = vsel %vm438_vm0, %v2037_v19, 0.0  ;;  %v1936_v48 = vrot.slane %v1866_v41, %v7151_v6  ;;  %v1976_v19 = vadd.f32 %v1932_v5, %v7718_v39 }
 0x3d1   :  { %v1944_v45 = vrot.slane %v1882_v56, %v7151_v6  ;;  %v2008_v56 = vmul.f32 0.2, %v1976_v19 }
 0x3d2   :  { %1165 = vperm.xlu1 %6713, %v1122_v24   ;;  %v2001_v24 = vmul.f32 0.2, %v7639_v42 }
 0x3d3   :  { %v1979_v51 = vadd.f32 %v1944_v45, %v7718_v39 }
 0x3d4   :  { %v2017_v1 = vsel %vm1985_vm14, %v7639_v42, %v2001_v24  ;;  %v1881_v42 = vcombine.high %v1859_v26, %v1859_v26  ;;  %v2000_v26 = vmul.f32 0.2, %v1968_v40 }
 0x3d5   :  { %v2033_v58 = vmul.f32 %v6922_v31, %v2017_v1  ;;  %v2011_v18 = vmul.f32 0.2, %v1979_v51  ;;  %vm1995_vm13 = vcmp.gt.f32.partialorder %v1979_v51, 0.0 }
 0x3d6   :  { %1168 = vperm.xlu1 %6713, %v1123_v44   ;;  %v2051_v44 = vsel %vm438_vm0, %v2031_v28, 0.0  ;;  %v1928_v63 = vrot.slane %v1881_v42, %v7151_v6  ;;  %v2016_v0 = vsel %vm1984_vm11, %v1968_v40, %v2000_v26 }
 0x3d7   :  { %v2057_v12 = vsel %vm438_vm0, %v2033_v58, 0.0  ;;  %v2032_v29 = vmul.f32 %v6922_v31, %v2016_v0  ;;  %v2027_v53 = vsel %vm1995_vm13, %v1979_v51, %v2011_v18  ;;  %vm1306_vm13 = vcmask 261120  }
 0x3d8   :  { %v1975_v4 = vadd.f32 %v1928_v63, %v7718_v39 }
 0x3d9   :  { %v2054_v22 = vsel %vm438_vm0, %v2032_v29, 0.0 }
 0x3da   :  { %1171 = vperm.xlu1 %6713, %v1124_v55   ;;  %v2018_v55 = vsel %vm1986_vm15, %v7651_v38, %v2002_v11  ;;  %v1974_v38 = vadd.f32 %v1924_v59, %v7718_v39  ;;  %v2007_v36 = vmul.f32 0.2, %v1975_v4  ;;  %vm1991_vm14 = vcmp.gt.f32.partialorder %v1975_v4, 0.0 }
 0x3db   :  { %v2034_v52 = vmul.f32 %v6922_v31, %v2018_v55  ;;  %v2043_v11 = vmul.f32 %v7737_v57, %v2027_v53  ;;  %vm1992_vm15 = vcmp.gt.f32.partialorder %v1976_v19, 0.0 }
 0x3dc   :  { %vm1990_vm12 = vcmp.gt.f32.partialorder %v1974_v38, 0.0  ;;  %v2023_v41 = vsel %vm1991_vm14, %v1975_v4, %v2007_v36  ;;  %v2024_v59 = vsel %vm1992_vm15, %v1976_v19, %v2008_v56 }
 0x3dd   :  { %v2060_v61 = vsel %vm438_vm0, %v2034_v52, 0.0  ;;  %v2087_v58 = vsel %vm438_vm0, %v2043_v11, 0.0  ;;  %v2040_v52 = vmul.f32 %v7737_v57, %v2024_v59 }
 0x3de   :  { %1192 = vperm.xlu1 %6713, %v1131_v49   ;;  %v2019_v49 = vsel %vm1987_vm1, %v7654_v54, %v2003_v23  ;;  %v2006_v54 = vmul.f32 0.2, %v1974_v38  ;;  %v2039_v23 = vmul.f32 %v7737_v57, %v2023_v41 }
 0x3df   :  { %v2035_v50 = vmul.f32 %v6922_v31, %v2019_v49  ;;  %v2078_v63 = vsel %vm438_vm0, %v2040_v52, 0.0 }
 0x3e0   :  { %v2022_v24 = vsel %vm1990_vm12, %v1974_v38, %v2006_v54  ;;  %vm7031_vm12 = vmmov 0  }
 0x3e1   :  { %v2063_v28 = vsel %vm438_vm0, %v2035_v50, 0.0  ;;  %v2038_v43 = vmul.f32 %v7737_v57, %v2022_v24 }
 0x3e3   :  { %v2072_v55 = vsel %vm438_vm0, %v2038_v43, 0.0 }
 0x3ea   :  { %2049 = vadd.xlane.f32.xlu0 %v2048_v60  ;;  %v2036_v60 = vmul.f32 %v6922_v31, %v2020_v46  ;;  %v1977_v31 = vadd.f32 %v1936_v48, %v7718_v39 }
 0x3ec   :  { %v2066_v1 = vsel %vm438_vm0, %v2036_v60, 0.0  ;;  %v2009_v42 = vmul.f32 0.2, %v1977_v31  ;;  %vm1993_vm1 = vcmp.gt.f32.partialorder %v1977_v31, 0.0 }
 0x3ee   :  { %2052 = vadd.xlane.f32.xlu0 %v2051_v44  ;;  %v1880_v44 = vrot.slane %v1852_v3, %v7200_v27  ;;  %v2025_v49 = vsel %vm1993_vm1, %v1977_v31, %v2009_v42 }
 0x3ef   :  { %v2041_v26 = vmul.f32 %v7737_v57, %v2025_v49 }
 0x3f0   :  { %v1940_v47 = vrot.slane %v1880_v44, %v7151_v6 }
 0x3f2   :  { %2070 = vadd.xlane.f32.xlu0 %v2069_v13  ;;  %v1884_v13 = vcombine.high %v1880_v44, %v1880_v44  ;;  %v1978_v40 = vadd.f32 %v1940_v47, %v7718_v39 }
 0x3f4   :  { %v1948_v45 = vrot.slane %v1884_v13, %v7151_v6  ;;  %v2010_v25 = vmul.f32 0.2, %v1978_v40  ;;  %vm1994_vm10 = vcmp.gt.f32.partialorder %v1978_v40, 0.0 }
 0x3f6   :  { %2058 = vadd.xlane.f32.xlu0 %v2057_v12  ;;  %v2075_v12 = vsel %vm438_vm0, %v2039_v23, 0.0  ;;  %v1980_v38 = vadd.f32 %v1948_v45, %v7718_v39  ;;  %v2026_v51 = vsel %vm1994_vm10, %v1978_v40, %v2010_v25 }
 0x3f7   :  { %v2042_v50 = vmul.f32 %v7737_v57, %v2026_v51 }
 0x3f8   :  { %v2012_v21 = vmul.f32 0.2, %v1980_v38  ;;  %vm1996_vm11 = vcmp.gt.f32.partialorder %v1980_v38, 0.0 }
 0x3f9   :  { %v2084_v54 = vsel %vm438_vm0, %v2042_v50, 0.0 }
 0x3fa   :  { %2061 = vadd.xlane.f32.xlu0 %v2060_v61  ;;  %v2081_v61 = vsel %vm438_vm0, %v2041_v26, 0.0  ;;  %v2028_v46 = vsel %vm1996_vm11, %v1980_v38, %v2012_v21 }
 0x3fb   :  { %v2044_v4 = vmul.f32 %v7737_v57, %v2028_v46 }
 0x3fd   :  { %v2090_v39 = vsel %vm438_vm0, %v2044_v4, 0.0 }
 0x3fe   :  { %2064 = vadd.xlane.f32.xlu0 %v2063_v28 }
 0x402   :  { %2067 = vadd.xlane.f32.xlu0 %v2066_v1  ;;  %2055 = vadd.xlane.f32.xlu1 %v2054_v22 }
 0x406   :  { %2088 = vadd.xlane.f32.xlu0 %v2087_v58  ;;  %2073 = vadd.xlane.f32.xlu1 %v2072_v55 }
 0x40a   :  { %2076 = vadd.xlane.f32.xlu1 %v2075_v12 }
 0x40e   :  { %2079 = vadd.xlane.f32.xlu1 %v2078_v63 }
 0x412   :  { %2082 = vadd.xlane.f32.xlu1 %v2081_v61 }
 0x416   :  { %2085 = vadd.xlane.f32.xlu1 %v2084_v54 }
 0x41a   :  { %2091 = vadd.xlane.f32.xlu1 %v2090_v39 }
 0x42a   :  { %v1154_v3 = vpop.permute.xlu0 %1153 }
 0x42b   :  { %v1204_v36 = vrot.slane %v1154_v3, %v7157_v8 }
 0x42e   :  { %v1160_v29 = vpop.permute.xlu0 %1159 }
 0x42f   :  { %v1212_v11 = vrot.slane %v1160_v29, %v7157_v8 }
 0x432   :  { %v1178_v19 = vpop.permute.xlu0 %1177 }
 0x433   :  { %v1236_v61 = vrot.slane %v1178_v19, %v7157_v8 }
 0x436   :  { %v1181_v13 = vpop.permute.xlu0 %1180 }
 0x437   :  { %v1240_v46 = vrot.slane %v1181_v13, %v7157_v8 }
 0x43a   :  { %v2047_v0 = vpop.xlane.xlu1 %2046  ;;  %v1184_v40 = vpop.permute.xlu0 %1183 }
 0x43b   :  { %v7808_v52 = vadd.f32 %v2047_v0, %v7355_v33  ;;  %v1244_v0 = vrot.slane %v1184_v40, %v7157_v8 }
 0x43e   :  { %v1151_v18 = vpop.permute.xlu1 %1150  ;;  %v1187_v45 = vpop.permute.xlu0 %1186 }
 0x43f   :  { %v1200_v24 = vrot.slane %v1151_v18, %v7157_v8 }
 0x441   :  { %v1261_v57 = vsel %vm698_vm2, %v1204_v36, %v1200_v24 }
 0x442   :  { %v1157_v5 = vpop.permute.xlu1 %1156  ;;  %v1190_v12 = vpop.permute.xlu0 %1189 }
 0x443   :  { %v1208_v48 = vrot.slane %v1157_v5, %v7157_v8 }
 0x445   :  { %v1262_v44 = vsel %vm700_vm3, %v1208_v48, %v1261_v57  ;;  %v1252_v48 = vrot.slane %v1190_v12, %v7157_v8 }
 0x446   :  { %v1175_v60 = vpop.permute.xlu1 %1174  ;;  %v1263_v41 = vsel %vm702_vm4, %v1212_v11, %v1262_v44  ;;  %v1196_v49 = vpop.permute.xlu0 %1195 }
 0x447   :  { %v1232_v51 = vrot.slane %v1175_v60, %v7157_v8  ;;  %v1248_v60 = vrot.slane %v1187_v45, %v7157_v8  ;;  %v1260_v44 = vrot.slane %v1196_v49, %v7157_v8 }
 0x449   :  { %v1268_v50 = vsel %vm698_vm2, %v1236_v61, %v1232_v51  ;;  %v7892_v61 = vld [vmem:[%s9627_s11 + $0x18] sm:$0xff] }
 0x44a   :  { %v1163_v28 = vpop.permute.xlu1 %1162  ;;  %v1269_v39 = vsel %vm700_vm3, %v1240_v46, %v1268_v50  ;;  %v7897_v50 = vld [vmem:[%s9626_s10 + $0x18] sm:$0xff]  ;;  %v7902_v46 = vld [vmem:[%s9627_s11 + $0x10] sm:$0xff] }
 0x44b   :  { %v1216_v1 = vrot.slane %v1163_v28, %v7157_v8  ;;  %v1270_v5 = vsel %vm702_vm4, %v1244_v0, %v1269_v39  ;;  %v7916_v39 = vld [vmem:[%s9627_s11 + $0x8] sm:$0xff] }
 0x44c   :  { %v1271_v24 = vsel %vm704_vm5, %v1248_v60, %v1270_v5  ;;  %v7921_v0 = vld [vmem:[%s9626_s10 + $0x8] sm:$0xff]  ;;  %v7935_v5 = vld [vmem:[%s9626_s10] sm:$0xff]  ;;  %v7952_v60 = vld [vmem:[%s9630_s14 + $0x18] sm:$0xff] }
 0x44d   :  { %v1264_v56 = vsel %vm704_vm5, %v1216_v1, %v1263_v41  ;;  %v1272_v36 = vsel %vm706_vm6, %v1252_v48, %v1271_v24  ;;  %v7975_v24 = vld [vmem:[%s9630_s14] sm:$0xff] }
 0x44e   :  { %v1166_v53 = vpop.permute.xlu1 %1165 }
 0x44f   :  { %v1220_v43 = vrot.slane %v1166_v53, %v7157_v8 }
 0x451   :  { %v1265_v55 = vsel %vm706_vm6, %v1220_v43, %v1264_v56 }
 0x452   :  { %v1169_v22 = vpop.permute.xlu1 %1168 }
 0x453   :  { %v1224_v31 = vrot.slane %v1169_v22, %v7157_v8 }
 0x455   :  { %v1266_v23 = vsel %vm708_vm7, %v1224_v31, %v1265_v55 }
 0x456   :  { %v1172_v47 = vpop.permute.xlu1 %1171 }
 0x457   :  { %v1228_v58 = vrot.slane %v1172_v47, %v7157_v8 }
 0x459   :  { %v1267_v59 = vsel %vm710_vm8, %v1228_v58, %v1266_v23 }
 0x45a   :  { %v1277_v42 = vsel %vm721_vm9, %v1267_v59, 0.0  ;;  %v1193_v21 = vpop.permute.xlu1 %1192 }
 0x45b   :  { %1278 = vadd.xlane.f32.xlu0 %v1277_v42  ;;  %v1256_v28 = vrot.slane %v1193_v21, %v7157_v8  ;;  %v9641_v21 = vmov 0.0  }
 0x45c   :  { %6438 = vmatprep.subr.mxu0 %v9641_v21  ;;  %6449 = vmatprep.subr.mxu1 %v9641_v21 }
 0x45d   :  { %v1273_v57 = vsel %vm708_vm7, %v1256_v28, %v1272_v36  ;;  %6439 = vmatpush3.msra.mxu0 %v7892_v61  ;;  %6450 = vmatpush3.msra.mxu1 %v7897_v50  ;;  %v7959_v28 = vld [vmem:[%s9630_s14 + $0x10] sm:$0xff] }
 0x45e   :  { %v1274_v22 = vsel %vm710_vm8, %v1260_v44, %v1273_v57  ;;  %6440 = vmatprep.subr.mxu0 %v9641_v21  ;;  %6451 = vmatprep.subr.mxu1 %v9641_v21  ;;  %v76_v57 = vld [vmem:[%s9624_s8] sm:$0x3] }
 0x45f   :  { %v1280_v31 = vsel %vm721_vm9, %v1274_v22, 0.0  ;;  %6441 = vmatpush3.msra.mxu0 %v7902_v46  ;;  %6446 = vmatprep.mubr.msk.f32.mxu0 %vm7031_vm12, %v9641_v21  ;;  %v7987_v22 = vrot.slane %v76_v57, %v7151_v6 }
 0x460   :  { %6442 = vmatprep.subr.mxu0 %v9641_v21  ;;  %6457 = vmatprep.mubr.msk.f32.mxu1 %vm7031_vm12, %v9641_v21 }
 0x461   :  { %6443 = vmatpush3.msra.mxu0 %v7916_v39  ;;  %9671 = vst [vmem:[#allocation11_spill] sm:$0xff] %v7987_v22 }
 0x462   :  { %6444 = vmatprep.subr.mxu0 %v9641_v21 }
 0x471   :  { %2126 = vperm.xlu0 %6710, %v7808_v52  }
 0x473   :  { %v2050_v25 = vpop.xlane.xlu0 %2049 }
 0x474   :  { %v7812_v38 = vadd.f32 %v2050_v25, %v7353_v32 }
 0x476   :  { %2129 = vperm.xlu1 %6713, %v7812_v38  }
 0x477   :  { %v2053_v63 = vpop.xlane.xlu0 %2052 }
 0x478   :  { %v7816_v26 = vadd.f32 %v2053_v63, %v7357_v34 }
 0x47a   :  { %2132 = vperm.xlu1 %6713, %v7816_v26  }
 0x47b   :  { %v2071_v56 = vpop.xlane.xlu0 %2070 }
 0x47c   :  { %v7864_v59 = vadd.f32 %v2071_v56, %v7355_v33  ;;  %v7991_v56 = vrot.slane %v76_v57, %v7154_v7 }
 0x47f   :  { %v2059_v55 = vpop.xlane.xlu0 %2058 }
 0x480   :  { %v7868_v42 = vadd.f32 %v2059_v55, %v7361_v62 }
 0x483   :  { %v2062_v23 = vpop.xlane.xlu0 %2061 }
 0x484   :  { %v7872_v45 = vadd.f32 %v2062_v23, %v7363_v37 }
 0x487   :  { %v2065_v40 = vpop.xlane.xlu0 %2064 }
 0x488   :  { %v7876_v49 = vadd.f32 %v2065_v40, %v7419_v20 }
 0x48b   :  { %v2056_v54 = vpop.xlane.xlu1 %2055  ;;  %v2068_v12 = vpop.xlane.xlu0 %2067 }
 0x48c   :  { %v7824_v4 = vadd.f32 %v2056_v54, %v7359_v35  ;;  %v7880_v25 = vadd.f32 %v2068_v12, %v7413_v17  ;;  %v7909_v54 = vld [vmem:[%s9626_s10 + $0x10] sm:$0xff] }
 0x48d   :  { %6452 = vmatpush3.msra.mxu1 %v7909_v54 }
 0x48e   :  { %2135 = vperm.xlu0 %6710, %v7824_v4   ;;  %6453 = vmatprep.subr.mxu1 %v9641_v21 }
 0x48f   :  { %v2074_v18 = vpop.xlane.xlu1 %2073  ;;  %v2089_v63 = vpop.xlane.xlu0 %2088  ;;  %6454 = vmatpush3.msra.mxu1 %v7921_v0 }
 0x490   :  { %v7831_v3 = vadd.f32 %v2074_v18, %v7353_v32  ;;  %v7884_v51 = vadd.f32 %v2089_v63, %v7419_v20  ;;  %v7930_v18 = vld [vmem:[%s9627_s11] sm:$0xff]  ;;  %6455 = vmatprep.subr.mxu1 %v9641_v21 }
 0x491   :  { %6445 = vmatpush3.msra.mxu0 %v7930_v18  ;;  %6456 = vmatpush3.msra.mxu1 %v7935_v5 }
 0x492   :  { %2153 = vperm.xlu0 %6710, %v7831_v3   ;;  %6460 = vmatprep.subr.mxu0 %v9641_v21 }
 0x493   :  { %v2077_v29 = vpop.xlane.xlu1 %2076  ;;  %6471 = vmatprep.subr.mxu1 %v9641_v21  ;;  %6447 = vmatmul.mubr.f32.vlgmr.msra.gmra.mxu0 %v9641_v21 }
 0x494   :  { %v7839_v53 = vadd.f32 %v2077_v29, %v7357_v34  ;;  %6461 = vmatpush3.msra.mxu0 %v7952_v60  ;;  %6468 = vmatprep.mubr.msk.f32.mxu0 %vm7031_vm12, %v9641_v21  ;;  %v7968_v29 = vld [vmem:[%s9630_s14 + $0x8] sm:$0xff] }
 0x495   :  { %6462 = vmatprep.subr.mxu0 %v9641_v21 }
 0x496   :  { %2156 = vperm.xlu0 %6710, %v7839_v53   ;;  %6463 = vmatpush3.msra.mxu0 %v7959_v28 }
 0x497   :  { %v2080_v19 = vpop.xlane.xlu1 %2079  ;;  %6464 = vmatprep.subr.mxu0 %v9641_v21 }
 0x498   :  { %v7846_v1 = vadd.f32 %v2080_v19, %v7359_v35  ;;  %6465 = vmatpush3.msra.mxu0 %v7968_v29 }
 0x499   :  { %6466 = vmatprep.subr.mxu0 %v9641_v21 }
 0x49a   :  { %2159 = vperm.xlu0 %6710, %v7846_v1   ;;  %6467 = vmatpush3.msra.mxu0 %v7975_v24 }
 0x49b   :  { %v2083_v11 = vpop.xlane.xlu1 %2082  ;;  %6469 = vmatmul.mubr.f32.vlgmr.msra.gmra.mxu0 %v9641_v21  ;;  %6482 = vmatprep.subr.mxu0 %v9641_v21 }
 0x49c   :  { %v7851_v43 = vadd.f32 %v2083_v11, %v7361_v62  ;;  %6490 = vmatprep.mubr.msk.f32.mxu0 %vm7031_vm12, %v9641_v21 }
 0x49e   :  { %1281 = vadd.xlane.f32.xlu1 %v1280_v31  ;;  %2162 = vperm.xlu0 %6710, %v7851_v43  }
 0x49f   :  { %v2086_v41 = vpop.xlane.xlu1 %2085 }
 0x4a0   :  { %v7856_v47 = vadd.f32 %v2086_v41, %v7363_v37 }
 0x4a2   :  { %2165 = vperm.xlu0 %6710, %v7856_v47  }
 0x4a3   :  { %v2092_v13 = vpop.xlane.xlu1 %2091 }
 0x4a4   :  { %v7860_v58 = vadd.f32 %v2092_v13, %v7413_v17  ;;  %v6292_v13 = vld [vmem:[%s9625_s9] ss:$0 sm:$0xff] }
 0x4a6   :  { %2171 = vperm.xlu0 %6710, %v7860_v58  }
 0x4af   :  { %2150 = vperm.xlu1 %6713, %v7864_v59  }
 0x4b3   :  { %2138 = vperm.xlu1 %6713, %v7868_v42  }
 0x4b7   :  { %2141 = vperm.xlu1 %6713, %v7872_v45  }
 0x4bb   :  { %2144 = vperm.xlu1 %6713, %v7876_v49  }
 0x4bf   :  { %2147 = vperm.xlu1 %6713, %v7880_v25  }
 0x4c3   :  { %2168 = vperm.xlu1 %6713, %v7884_v51  }
 0x4e4   :  { %v1279_v48 = vpop.xlane.xlu0 %1278 }
 0x4e5   :  { %v1287_v41 = vmul.f32 %v7987_v22, %v1279_v48 }
 0x4e7   :  { %v1294_v40 = vadd.f32 %v6292_v13, %v1287_v41 }
 0x4ec   :  { %v2127_v36 = vpop.permute.xlu0 %2126 }
 0x4ed   :  { %v2176_v13 = vrot.slane %v2127_v36, %v7157_v8 }
 0x4f1   :  { %v2130_v44 = vpop.permute.xlu1 %2129 }
 0x4f2   :  { %v2180_v35 = vrot.slane %v2130_v44, %v7157_v8 }
 0x4f5   :  { %v2133_v31 = vpop.permute.xlu1 %2132 }
 0x4f6   :  { %v2184_v33 = vrot.slane %v2133_v31, %v7157_v8 }
 0x509   :  { %v2136_v19 = vpop.permute.xlu0 %2135 }
 0x50d   :  { %v2154_v11 = vpop.permute.xlu0 %2153 }
 0x50e   :  { %v2212_v22 = vrot.slane %v2154_v11, %v7157_v8 }
 0x511   :  { %v2157_v55 = vpop.permute.xlu0 %2156 }
 0x515   :  { %v2160_v21 = vpop.permute.xlu0 %2159 }
 0x519   :  { %v2163_v57 = vpop.permute.xlu0 %2162 }
 0x527   :  { %v1282_v23 = vpop.xlane.xlu1 %1281 }
 0x528   :  { %v1299_v12 = vmul.f32 %v7991_v56, %v1282_v23  ;;  %v2188_v23 = vrot.slane %v2136_v19, %v7157_v8 }
 0x52a   :  { %v1300_v63 = vadd.f32 %v1299_v12, %v1294_v40  ;;  %v2166_v12 = vpop.permute.xlu0 %2165 }
 0x52b   :  { %v2151_v2 = vpop.permute.xlu1 %2150 }
 0x52c   :  { %v1301_v20 = vsub.f32 0.0, %v1300_v63  ;;  %v2208_v48 = vrot.slane %v2151_v2, %v7157_v8  ;;  %v2237_v2 = vsel %vm698_vm2, %v2180_v35, %v2176_v13  ;;  %v2224_v35 = vrot.slane %v2163_v57, %v7157_v8 }
 0x52d   :  { %v2238_v31 = vsel %vm700_vm3, %v2184_v33, %v2237_v2 }
 0x52e   :  { %v1302_v17 = vmul.f32 1.442695, %v1301_v20  ;;  %v2244_v41 = vsel %vm698_vm2, %v2212_v22, %v2208_v48  ;;  %v2216_v20 = vrot.slane %v2157_v55, %v7157_v8  ;;  %v2220_v22 = vrot.slane %v2160_v21, %v7157_v8  ;;  %v2172_v13 = vpop.permute.xlu0 %2171 }
 0x52f   :  { %v2139_v37 = vpop.permute.xlu1 %2138  ;;  %v2239_v19 = vsel %vm702_vm4, %v2188_v23, %v2238_v31 }
 0x530   :  { %6754 = vpow2.f32 %v1302_v17  ;;  %v2192_v17 = vrot.slane %v2139_v37, %v7157_v8  ;;  %v2245_v11 = vsel %vm700_vm3, %v2216_v20, %v2244_v41 }
 0x531   :  { %v2246_v55 = vsel %vm702_vm4, %v2220_v22, %v2245_v11  ;;  %v2236_v11 = vrot.slane %v2172_v13, %v7157_v8 }
 0x532   :  { %v2240_v37 = vsel %vm704_vm5, %v2192_v17, %v2239_v19  ;;  %v2247_v23 = vsel %vm704_vm5, %v2224_v35, %v2246_v55  ;;  %v89_v55 = vld [vmem:[%s9629_s13 + $0x10] sm:$0xff]  ;;  %v87_v35 = vld [vmem:[%s9629_s13] sm:$0xff] }
 0x533   :  { %v2142_v62 = vpop.permute.xlu1 %2141 }
 0x534   :  { %v2196_v44 = vrot.slane %v2142_v62, %v7157_v8 }
 0x536   :  { %v2241_v48 = vsel %vm706_vm6, %v2196_v44, %v2240_v37  ;;  %v9672_v37 = vmov 0.0  }
 0x537   :  { %v2145_v40 = vpop.permute.xlu1 %2144 }
 0x538   :  { %v2200_v36 = vrot.slane %v2145_v40, %v7157_v8  ;;  %v2228_v40 = vrot.slane %v2166_v12, %v7157_v8  ;;  %v90_v12 = vld [vmem:[%s9629_s13 + $0x18] sm:$0xff] }
 0x53a   :  { %v2242_v33 = vsel %vm708_vm7, %v2200_v36, %v2241_v48  ;;  %v2248_v44 = vsel %vm706_vm6, %v2228_v40, %v2247_v23  ;;  %v99_v48 = vld [vmem:[%s9632_s16 + $0x18] sm:$0xff]  ;;  %v8104_v23 = vld [vmem:[%s9633_s17] sm:$0xff] }
 0x53b   :  { %v2148_v63 = vpop.permute.xlu1 %2147 }
 0x53c   :  { %v2204_v41 = vrot.slane %v2148_v63, %v7157_v8  ;;  %v88_v63 = vld [vmem:[%s9629_s13 + $0x8] sm:$0xff] }
 0x53d   :  { %v6755_v62 = vpop.eup %6754 }
 0x53e   :  { %v1304_v21 = vadd.f32 1.0, %v6755_v62  ;;  %v2243_v20 = vsel %vm710_vm8, %v2204_v41, %v2242_v33  ;;  %v98_v41 = vld [vmem:[%s9632_s16 + $0x10] sm:$0xff]  ;;  %v97_v62 = vld [vmem:[%s9632_s16 + $0x8] sm:$0xff]  ;;  %v96_v33 = vld [vmem:[%s9632_s16] sm:$0xff] }
 0x53f   :  { %v2169_v2 = vpop.permute.xlu1 %2168  ;;  %v2253_v17 = vsel %vm721_vm9, %v2243_v20, -inf }
 0x540   :  { %6756 = vrcp.f32 %v1304_v21  ;;  %v2232_v57 = vrot.slane %v2169_v2, %v7157_v8  ;;  %2254 = vmax.xlane.f32.xlu1 %v2253_v17 }
 0x542   :  { %v2249_v31 = vsel %vm708_vm7, %v2232_v57, %v2248_v44 }
 0x543   :  { %v2250_v22 = vsel %vm710_vm8, %v2236_v11, %v2249_v31 }
 0x544   :  { %v2256_v36 = vsel %vm721_vm9, %v2250_v22, -inf }
 0x545   :  { %2257 = vmax.xlane.f32.xlu0 %v2256_v36 }
 0x54d   :  { %v6757_v19 = vpop.eup %6756 }
 0x54e   :  { %6458 = vmatmul.mubr.msk.f32.vlgmr.msra.gmra.mxu1 %vm1306_vm13, %v6757_v19 }
 0x54f   :  { %6472 = vmatpush3.msra.mxu1 %v90_v12  ;;  %6479 = vmatprep.mubr.msk.f32.mxu1 %vm7031_vm12, %v9672_v37 }
 0x550   :  { %6473 = vmatprep.subr.mxu1 %v9672_v37 }
 0x551   :  { %6474 = vmatpush3.msra.mxu1 %v89_v55 }
 0x552   :  { %6475 = vmatprep.subr.mxu1 %v9672_v37 }
 0x553   :  { %6476 = vmatpush3.msra.mxu1 %v88_v63  ;;  %v8078_v13 = vpop.f32.mrf.mxu0 }
 0x554   :  { %6477 = vmatprep.subr.mxu1 %v9672_v37 }
 0x555   :  { %6478 = vmatpush3.msra.mxu1 %v87_v35 }
 0x556   :  { %6480 = vmatmul.mubr.msk.f32.vlgmr.msra.gmra.mxu1 %vm1306_vm13, %v6757_v19  ;;  %6493 = vmatprep.subr.mxu1 %v9672_v37 }
 0x557   :  { %6494 = vmatpush3.msra.mxu1 %v99_v48  ;;  %6501 = vmatprep.mubr.msk.f32.mxu1 %vm7031_vm12, %v9672_v37 }
 0x558   :  { %6495 = vmatprep.subr.mxu1 %v9672_v37 }
 0x559   :  { %6496 = vmatpush3.msra.mxu1 %v98_v41 }
 0x55a   :  { %6497 = vmatprep.subr.mxu1 %v9672_v37 }
 0x55b   :  { %6498 = vmatpush3.msra.mxu1 %v97_v62 }
 0x55c   :  { %6499 = vmatprep.subr.mxu1 %v9672_v37 }
 0x55d   :  { %6500 = vmatpush3.msra.mxu1 %v96_v33 }
 0x55e   :  { %6502 = vmatmul.mubr.msk.f32.vlgmr.msra.gmra.mxu1 %vm1306_vm13, %v6757_v19  ;;  %6515 = vmatprep.subr.mxu1 %v9672_v37 }
 0x55f   :  { %6516 = vmatpush3.msra.mxu1 %v7897_v50  ;;  %6523 = vmatprep.mubr.msk.f32.mxu1 %vm7031_vm12, %v9672_v37  ;;  %v6448_v50 = vpop.f32.mrf.mxu0 }
 0x560   :  { %6517 = vmatprep.subr.mxu1 %v9672_v37 }
 0x561   :  { %6518 = vmatpush3.msra.mxu1 %v7909_v54  ;;  %v8080_v21 = vpop.f32.mrf.mxu0  ;;  %v8085_v54 = vld [vmem:[%s9633_s17 + $0x18] sm:$0xff] }
 0x562   :  { %6519 = vmatprep.subr.mxu1 %v9672_v37  ;;  %6483 = vmatpush3.msra.mxu0 %v8085_v54 }
 0x563   :  { %6520 = vmatpush3.msra.mxu1 %v7921_v0  ;;  %v6470_v20 = vpop.f32.mrf.mxu0  ;;  %v8090_v0 = vld [vmem:[%s9633_s17 + $0x10] sm:$0xff]  ;;  %6484 = vmatprep.subr.mxu0 %v9672_v37 }
 0x564   :  { %6521 = vmatprep.subr.mxu1 %v9672_v37  ;;  %6485 = vmatpush3.msra.mxu0 %v8090_v0 }
 0x565   :  { %6522 = vmatpush3.msra.mxu1 %v7935_v5  ;;  %v8097_v5 = vld [vmem:[%s9633_s17 + $0x8] sm:$0xff]  ;;  %6486 = vmatprep.subr.mxu0 %v9672_v37 }
 0x566   :  { %6537 = vmatprep.subr.mxu1 %v9672_v37  ;;  %6487 = vmatpush3.msra.mxu0 %v8097_v5 }
 0x567   :  { %6488 = vmatprep.subr.mxu0 %v9672_v37 }
 0x568   :  { %6489 = vmatpush3.msra.mxu0 %v8104_v23 }
 0x569   :  { %6504 = vmatprep.subr.mxu0 %v9672_v37 }
 0x5c9   :  { %v2255_v40 = vpop.xlane.xlu1 %2254 }
 0x5ca   :  { %v2264_v2 = vrot.slane %v2255_v40, %v7151_v6  ;;  %v2268_v17 = vrot.slane %v2255_v40, %v7154_v7  ;;  %v2272_v57 = vrot.slane %v2255_v40, %v7160_v9  ;;  %v2276_v11 = vrot.slane %v2255_v40, %v7163_v10 }
 0x5cb   :  { %v2280_v35 = vrot.slane %v2255_v40, %v7172_v14 }
 0x5cc   :  { %v2341_v44 = vsub.f32 %v7808_v52, %v2264_v2  ;;  %v2342_v31 = vsub.f32 %v7812_v38, %v2268_v17  ;;  %v2344_v22 = vsub.f32 %v7824_v4, %v2276_v11  ;;  %v2343_v36 = vsub.f32 %v7816_v26, %v2272_v57 }
 0x5cd   :  { %v2284_v26 = vrot.slane %v2255_v40, %v7177_v16  ;;  %v2345_v33 = vsub.f32 %v7868_v42, %v2280_v35  ;;  %v2288_v57 = vrot.slane %v2255_v40, %v7349_v30 }
 0x5ce   :  { %v2357_v12 = vmul.f32 1.442695, %v2341_v44  ;;  %v2359_v19 = vmul.f32 1.442695, %v2342_v31  ;;  %v2258_v55 = vpop.xlane.xlu0 %2257  ;;  %v2363_v48 = vmul.f32 1.442695, %v2344_v22  ;;  %v2292_v31 = vrot.slane %v2255_v40, %v7336_v15 }
 0x5cf   :  { %v2296_v63 = vrot.slane %v2258_v55, %v7151_v6  ;;  %v2300_v41 = vrot.slane %v2258_v55, %v7154_v7  ;;  %v2361_v62 = vmul.f32 1.442695, %v2343_v36  ;;  %v2304_v52 = vrot.slane %v2258_v55, %v7160_v9 }
 0x5d0   :  { %6758 = vpow2.f32 %v2357_v12  ;;  %v2308_v50 = vrot.slane %v2258_v55, %v7163_v10  ;;  %v2346_v11 = vsub.f32 %v7872_v45, %v2284_v26  ;;  %v2365_v44 = vmul.f32 1.442695, %v2345_v33 }
 0x5d1   :  { %6760 = vpow2.f32 %v2359_v19  ;;  %v2349_v38 = vsub.f32 %v7864_v59, %v2296_v63  ;;  %v2350_v4 = vsub.f32 %v7831_v3, %v2300_v41  ;;  %v2351_v20 = vsub.f32 %v7839_v53, %v2304_v52 }
 0x5d2   :  { %6762 = vpow2.f32 %v2363_v48  ;;  %v2312_v3 = vrot.slane %v2258_v55, %v7172_v14  ;;  %v2352_v59 = vsub.f32 %v7846_v1, %v2308_v50  ;;  %v2347_v22 = vsub.f32 %v7876_v49, %v2288_v57 }
 0x5d3   :  { %6764 = vpow2.f32 %v2361_v62  ;;  %v2373_v2 = vmul.f32 1.442695, %v2349_v38  ;;  %v2375_v17 = vmul.f32 1.442695, %v2350_v4  ;;  %v2377_v42 = vmul.f32 1.442695, %v2351_v20 }
 0x5d4   :  { %v2367_v53 = vmul.f32 1.442695, %v2346_v11  ;;  %v2316_v12 = vrot.slane %v2258_v55, %v7177_v16  ;;  %v2353_v45 = vsub.f32 %v7851_v43, %v2312_v3  ;;  %v2379_v19 = vmul.f32 1.442695, %v2352_v59  ;;  %v6294_v59 = vld [vmem:[%s9628_s12] ss:$0 sm:$0xff] }
 0x5d5   :  { %6766 = vpow2.f32 %v2373_v2  ;;  %v2348_v1 = vsub.f32 %v7880_v25, %v2292_v31  ;;  %v2369_v49 = vmul.f32 1.442695, %v2347_v22  ;;  %v2320_v40 = vrot.slane %v2258_v55, %v7349_v30 }
 0x5d6   :  { %6768 = vpow2.f32 %v2375_v17  ;;  %v2324_v48 = vrot.slane %v2258_v55, %v7336_v15  ;;  %v2354_v43 = vsub.f32 %v7856_v47, %v2316_v12  ;;  %v2381_v41 = vmul.f32 1.442695, %v2353_v45 }
 0x5d7   :  { %6770 = vpow2.f32 %v2365_v44  ;;  %v2371_v25 = vmul.f32 1.442695, %v2348_v1  ;;  %v2355_v52 = vsub.f32 %v7884_v51, %v2320_v40  ;;  %v7032_v45 = vmov 2  }
 0x5d8   :  { %6772 = vpow2.f32 %v2377_v42  ;;  %v2356_v4 = vsub.f32 %v7860_v58, %v2324_v48  ;;  %v2383_v55 = vmul.f32 1.442695, %v2354_v43 }
 0x5d9   :  { %6774 = vpow2.f32 %v2367_v53  ;;  %v2385_v47 = vmul.f32 1.442695, %v2355_v52 }
 0x5da   :  { %6776 = vpow2.f32 %v2379_v19  ;;  %v2387_v50 = vmul.f32 1.442695, %v2356_v4 }
 0x5db   :  { %6778 = vpow2.f32 %v2369_v49 }
 0x5dc   :  { %6780 = vpow2.f32 %v2381_v41 }
 0x5dd   :  { %v8134_v36 = vpop.eup %6758  ;;  %6782 = vpow2.f32 %v2371_v25 }
 0x5de   :  { %v8138_v63 = vpop.eup %6760  ;;  %2406 = vperm.xlu0 %6710, %v8134_v36   ;;  %6784 = vpow2.f32 %v2383_v55 }
 0x5df   :  { %2409 = vperm.xlu1 %6713, %v8138_v63   ;;  %v8144_v35 = vpop.eup %6762  ;;  %6786 = vpow2.f32 %v2385_v47 }
 0x5e0   :  { %v8148_v62 = vpop.eup %6764  ;;  %6788 = vpow2.f32 %v2387_v50 }
 0x5e2   :  { %2415 = vperm.xlu0 %6710, %v8144_v35   ;;  %v8153_v38 = vpop.eup %6766 }
 0x5e3   :  { %2412 = vperm.xlu1 %6713, %v8148_v62   ;;  %v8156_v26 = vpop.eup %6768 }
 0x5e4   :  { %v8160_v33 = vpop.eup %6770 }
 0x5e5   :  { %v8162_v20 = vpop.eup %6772 }
 0x5e6   :  { %2433 = vperm.xlu0 %6710, %v8156_v26   ;;  %v8166_v58 = vpop.eup %6774 }
 0x5e7   :  { %2430 = vperm.xlu1 %6713, %v8153_v38   ;;  %v8168_v51 = vpop.eup %6776 }
 0x5e8   :  { %v8172_v2 = vpop.eup %6778 }
 0x5e9   :  { %v8174_v17 = vpop.eup %6780 }
 0x5ea   :  { %2436 = vperm.xlu0 %6710, %v8162_v20   ;;  %v8178_v57 = vpop.eup %6782 }
 0x5eb   :  { %2418 = vperm.xlu1 %6713, %v8160_v33   ;;  %v8180_v11 = vpop.eup %6784 }
 0x5ec   :  { %v8184_v44 = vpop.eup %6786 }
 0x5ed   :  { %v8186_v3 = vpop.eup %6788 }
 0x5ee   :  { %2439 = vperm.xlu0 %6710, %v8168_v51  }
 0x5ef   :  { %2421 = vperm.xlu1 %6713, %v8166_v58  }
 0x5f2   :  { %2442 = vperm.xlu0 %6710, %v8174_v17  }
 0x5f3   :  { %2424 = vperm.xlu1 %6713, %v8172_v2  }
 0x5f6   :  { %2445 = vperm.xlu0 %6710, %v8180_v11  }
 0x5f7   :  { %2427 = vperm.xlu1 %6713, %v8178_v57  }
 0x5fa   :  { %2451 = vperm.xlu0 %6710, %v8186_v3  }
 0x5fb   :  { %2448 = vperm.xlu1 %6713, %v8184_v44  }
 0x5ff   :  { %6714 = vset.pattern.permute.xlu1 %v7032_v45 }
 0x60e   :  { %v1449_v42 = vpop.f32.mrf.mxu1 }
 0x60f   :  { %v1450_v31 = vadd.f32 %v1449_v42, %v8078_v13 }
 0x610   :  { %v6459_v22 = vpop.f32.mrf.mxu1 }
 0x611   :  { %v1459_v53 = vadd.f32 %v6294_v59, %v1450_v31 }
 0x613   :  { %v1460_v12 = vsub.f32 0.0, %v1459_v53 }
 0x615   :  { %v1461_v19 = vmul.f32 1.442695, %v1460_v12 }
 0x616   :  { %v8194_v1 = vpop.f32.mrf.mxu1 }
 0x617   :  { %6790 = vpow2.f32 %v1461_v19 }
 0x618   :  { %v6481_v49 = vpop.f32.mrf.mxu1 }
 0x61e   :  { %v8196_v40 = vpop.f32.mrf.mxu1 }
 0x620   :  { %v6503_v48 = vpop.f32.mrf.mxu1 }
 0x624   :  { %v6791_v43 = vpop.eup %6790 }
 0x625   :  { %v1463_v41 = vadd.f32 1.0, %v6791_v43 }
 0x627   :  { %6792 = vrcp.f32 %v1463_v41 }
 0x634   :  { %v6793_v25 = vpop.eup %6792 }
 0x635   :  { %v1617_v52 = vmul.f32 0.0, %v6793_v25 }
 0x637   :  { %6491 = vmatmul.mubr.msk.f32.vlgmr.msra.gmra.mxu0 %vm1306_vm13, %v1617_v52 }
 0x638   :  { %6505 = vmatpush3.msra.mxu0 %v7892_v61  ;;  %6512 = vmatprep.mubr.msk.f32.mxu0 %vm7031_vm12, %v9672_v37 }
 0x639   :  { %6506 = vmatprep.subr.mxu0 %v9672_v37 }
 0x63a   :  { %6507 = vmatpush3.msra.mxu0 %v7902_v46 }
 0x63b   :  { %6508 = vmatprep.subr.mxu0 %v9672_v37 }
 0x63c   :  { %6509 = vmatpush3.msra.mxu0 %v7916_v39 }
 0x63d   :  { %6510 = vmatprep.subr.mxu0 %v9672_v37 }
 0x63e   :  { %6511 = vmatpush3.msra.mxu0 %v7930_v18 }
 0x63f   :  { %6526 = vmatprep.subr.mxu0 %v9672_v37 }
 0x659   :  { %v2407_v13 = vpop.permute.xlu0 %2406 }
 0x65a   :  { %v2410_v4 = vpop.permute.xlu1 %2409  ;;  %v2456_v31 = vrot.slane %v2407_v13, %v7157_v8 }
 0x65b   :  { %v2460_v46 = vrot.slane %v2410_v4, %v7157_v8 }
 0x65d   :  { %v2416_v61 = vpop.permute.xlu0 %2415  ;;  %v2517_v18 = vsel %vm698_vm2, %v2460_v46, %v2456_v31 }
 0x65e   :  { %v2413_v55 = vpop.permute.xlu1 %2412  ;;  %v2468_v12 = vrot.slane %v2416_v61, %v7157_v8 }
 0x65f   :  { %v2464_v39 = vrot.slane %v2413_v55, %v7157_v8 }
 0x661   :  { %v2434_v50 = vpop.permute.xlu0 %2433  ;;  %v2518_v45 = vsel %vm700_vm3, %v2464_v39, %v2517_v18 }
 0x662   :  { %v2431_v47 = vpop.permute.xlu1 %2430  ;;  %v2492_v25 = vrot.slane %v2434_v50, %v7157_v8  ;;  %v2519_v13 = vsel %vm702_vm4, %v2468_v12, %v2518_v45 }
 0x663   :  { %v2488_v41 = vrot.slane %v2431_v47, %v7157_v8 }
 0x665   :  { %v2437_v42 = vpop.permute.xlu0 %2436  ;;  %v2524_v50 = vsel %vm698_vm2, %v2492_v25, %v2488_v41 }
 0x666   :  { %v2419_v59 = vpop.permute.xlu1 %2418  ;;  %v2496_v4 = vrot.slane %v2437_v42, %v7157_v8 }
 0x667   :  { %v2472_v19 = vrot.slane %v2419_v59, %v7157_v8 }
 0x668   :  { %v2525_v42 = vsel %vm700_vm3, %v2496_v4, %v2524_v50 }
 0x669   :  { %v2440_v53 = vpop.permute.xlu0 %2439  ;;  %v2520_v61 = vsel %vm704_vm5, %v2472_v19, %v2519_v13 }
 0x66a   :  { %v2422_v22 = vpop.permute.xlu1 %2421  ;;  %v2500_v55 = vrot.slane %v2440_v53, %v7157_v8 }
 0x66b   :  { %v2476_v43 = vrot.slane %v2422_v22, %v7157_v8 }
 0x66c   :  { %v2526_v53 = vsel %vm702_vm4, %v2500_v55, %v2525_v42  ;;  %v9673_v55 = vmov 0  }
 0x66d   :  { %v2443_v48 = vpop.permute.xlu0 %2442  ;;  %v2521_v31 = vsel %vm706_vm6, %v2476_v43, %v2520_v61  ;;  %v6924_v61 = vld [vmem:[%s9661_s20] sm:$0xff] }
 0x66e   :  { %v2425_v49 = vpop.permute.xlu1 %2424  ;;  %v2504_v39 = vrot.slane %v2443_v48, %v7157_v8 }
 0x66f   :  { %v2480_v52 = vrot.slane %v2425_v49, %v7157_v8 }
 0x670   :  { %v2527_v48 = vsel %vm704_vm5, %v2504_v39, %v2526_v53  ;;  %v6296_v39 = vld [vmem:[%s9631_s15] ss:$0 sm:$0xff] }
 0x671   :  { %v2446_v59 = vpop.permute.xlu0 %2445  ;;  %v2522_v18 = vsel %vm708_vm7, %v2480_v52, %v2521_v31  ;;  %v1602_v31 = vadd.f32 %v8194_v1, %v8080_v21 }
 0x672   :  { %v2428_v46 = vpop.permute.xlu1 %2427  ;;  %v2508_v22 = vrot.slane %v2446_v59, %v7157_v8 }
 0x673   :  { %v2484_v47 = vrot.slane %v2428_v46, %v7157_v8  ;;  %v6925_v46 = vld [vmem:[%s9670_s0] sm:$0xf] }
 0x674   :  { %v2528_v25 = vsel %vm706_vm6, %v2508_v22, %v2527_v48  ;;  %v2642_v59 = vrot.slane %v6925_v46, %v7154_v7 }
 0x675   :  { %v2523_v12 = vsel %vm710_vm8, %v2484_v47, %v2522_v18  ;;  %v2452_v19 = vpop.permute.xlu0 %2451  ;;  %v1611_v47 = vadd.f32 %v6296_v39, %v1602_v31 }
 0x676   :  { %v2449_v45 = vpop.permute.xlu1 %2448  ;;  %v2533_v49 = vsel %vm721_vm9, %v2523_v12, 0.0  ;;  %v2516_v41 = vrot.slane %v2452_v19, %v7157_v8  ;;  %v6299_v12 = vld [vmem:[%s9634_s18] ss:$0 sm:$0xff] }
 0x677   :  { %v2512_v43 = vrot.slane %v2449_v45, %v7157_v8  ;;  %2534 = vadd.xlane.f32.xlu1 %v2533_v49  ;;  %v1612_v50 = vsub.f32 0.0, %v1611_v47 }
 0x679   :  { %v2529_v52 = vsel %vm708_vm7, %v2512_v43, %v2528_v25  ;;  %v1613_v22 = vmul.f32 1.442695, %v1612_v50 }
 0x67a   :  { %v2530_v13 = vsel %vm710_vm8, %v2516_v41, %v2529_v52 }
 0x67b   :  { %v2536_v4 = vsel %vm721_vm9, %v2530_v13, 0.0  ;;  %6794 = vpow2.f32 %v1613_v22 }
 0x67c   :  { %2537 = vadd.xlane.f32.xlu0 %v2536_v4 }
 0x688   :  { %3272 = vperm.xlu1 %6714, %v6924_v61   ;;  %v6795_v18 = vpop.eup %6794 }
 0x689   :  { %v1615_v42 = vadd.f32 1.0, %v6795_v18 }
 0x68b   :  { %6796 = vrcp.f32 %v1615_v42 }
 0x68c   :  { %6715 = vset.pattern.permute.xlu1 %v9673_v55 }
 0x692   :  { %2645 = vbcast.lane.b32.xlu0 %v2642_v59, 256 }
 0x698   :  { %v6797_v49 = vpop.eup %6796 }
 0x699   :  { %v1770_v43 = vsub.f32 1.0, %v6797_v49  ;;  %v1769_v25 = vmul.f32 0.0, %v6797_v49 }
 0x6f7   :  { %v1687_v53 = vpop.f32.mrf.mxu0 }
 0x6f8   :  { %v1758_v45 = vadd.f32 %v8196_v40, %v1687_v53 }
 0x6f9   :  { %v6492_v19 = vpop.f32.mrf.mxu0 }
 0x6fa   :  { %v1767_v21 = vadd.f32 %v6299_v12, %v1758_v45 }
 0x6fc   :  { %6798 = vtanh.f32 %v1767_v21 }
 0x700   :  { %v2535_v1 = vpop.xlane.xlu1 %2534 }
 0x701   :  { %6800 = vrcp.f32 %v2535_v1 }
 0x705   :  { %v2538_v48 = vpop.xlane.xlu0 %2537 }
 0x706   :  { %6802 = vrcp.f32 %v2538_v48 }
 0x709   :  { %v6799_v41 = vpop.eup %6798  ;;  %v8274_v59 = vpop.permute.xlu0 %2645 }
 0x70a   :  { %v1771_v52 = vmul.f32 %v6799_v41, %v1770_v43 }
 0x70c   :  { %v8258_v13 = vadd.f32 %v1771_v52, %v1769_v25 }
 0x70e   :  { %v8260_v4 = vpop.eup %6800  ;;  %6513 = vmatmul.mubr.msk.f32.vlgmr.msra.gmra.mxu0 %vm1306_vm13, %v8258_v13 }
 0x70f   :  { %6527 = vmatpush3.msra.mxu0 %v7952_v60  ;;  %6534 = vmatprep.mubr.msk.f32.mxu0 %vm7031_vm12, %v9672_v37  ;;  %v2550_v40 = vrot.slane %v8260_v4, %v7154_v7  ;;  %v2546_v61 = vrot.slane %v8260_v4, %v7151_v6  ;;  %v2558_v46 = vrot.slane %v8260_v4, %v7163_v10 }
 0x710   :  { %6528 = vmatprep.subr.mxu0 %v9672_v37  ;;  %v2554_v31 = vrot.slane %v8260_v4, %v7160_v9  ;;  %v2566_v21 = vrot.slane %v8260_v4, %v7177_v16  ;;  %v2570_v49 = vrot.slane %v8260_v4, %v7349_v30  ;;  %v2574_v41 = vrot.slane %v8260_v4, %v7336_v15 }
 0x711   :  { %6529 = vmatpush3.msra.mxu0 %v7959_v28  ;;  %v2624_v60 = vmul.f32 %v8138_v63, %v2550_v40  ;;  %v2623_v39 = vmul.f32 %v8134_v36, %v2546_v61  ;;  %v2626_v18 = vmul.f32 %v8144_v35, %v2558_v46 }
 0x712   :  { %6530 = vmatprep.subr.mxu0 %v9672_v37  ;;  %v2625_v28 = vmul.f32 %v8148_v62, %v2554_v31  ;;  %v2628_v1 = vmul.f32 %v8166_v58, %v2566_v21  ;;  %v2629_v58 = vmul.f32 %v8172_v2, %v2570_v49  ;;  %v2630_v40 = vmul.f32 %v8178_v57, %v2574_v41  ;;  %v3273_v2 = vpop.permute.xlu1 %3272 }
 0x713   :  { %v8282_v47 = vpop.eup %6802  ;;  %6531 = vmatpush3.msra.mxu0 %v7968_v29  ;;  %v2649_v50 = vmul.f32 %v8274_v59, %v2624_v60  ;;  %v2648_v22 = vmul.f32 %v8274_v59, %v2623_v39  ;;  %v2651_v29 = vmul.f32 %v8274_v59, %v2626_v18 }
 0x714   :  { %6532 = vmatprep.subr.mxu0 %v9672_v37  ;;  %v2582_v63 = vrot.slane %v8282_v47, %v7154_v7  ;;  %v2578_v36 = vrot.slane %v8282_v47, %v7151_v6  ;;  %v2586_v62 = vrot.slane %v8282_v47, %v7160_v9  ;;  %v2650_v42 = vmul.f32 %v8274_v59, %v2625_v28 }
 0x715   :  { %6533 = vmatpush3.msra.mxu0 %v7975_v24  ;;  %2684 = vperm.xlu0 %6710, %v2649_v50   ;;  %v2562_v24 = vrot.slane %v8260_v4, %v7172_v14  ;;  %v2590_v45 = vrot.slane %v8282_v47, %v7163_v10  ;;  %v2598_v48 = vrot.slane %v8282_v47, %v7177_v16 }
 0x716   :  { %2681 = vperm.xlu1 %6715, %v2648_v22   ;;  %6535 = vmatmul.mubr.msk.f32.vlgmr.msra.gmra.mxu0 %vm1306_vm13, %v8258_v13  ;;  %v2632_v35 = vmul.f32 %v8156_v26, %v2582_v63  ;;  %v2631_v12 = vmul.f32 %v8153_v38, %v2578_v36  ;;  %v2633_v26 = vmul.f32 %v8162_v20, %v2586_v62  ;;  %v6929_v36 = vld [vmem:[%s9663_s30] ss:$0 sm:$0xff] }
 0x717   :  { %6548 = vmatprep.subr.mxu0 %v9672_v37  ;;  %v2627_v38 = vmul.f32 %v8160_v33, %v2562_v24  ;;  %6556 = vmatprep.mubr.msk.f32.mxu0 %vm7031_vm12, %v9672_v37  ;;  %v2634_v20 = vmul.f32 %v8168_v51, %v2590_v45  ;;  %v2594_v33 = vrot.slane %v8282_v47, %v7172_v14 }
 0x718   :  { %6549 = vmatpush3.msra.mxu0 %v8085_v54  ;;  %v2657_v53 = vmul.f32 %v8274_v59, %v2632_v35  ;;  %v2656_v19 = vmul.f32 %v8274_v59, %v2631_v12  ;;  %v2658_v54 = vmul.f32 %v8274_v59, %v2633_v26  ;;  %v2653_v43 = vmul.f32 %v8274_v59, %v2628_v1  ;;  %v6931_v12 = vld [vmem:[%s9620_s4] ss:$0 sm:$0xff]  ;;  %v6932_v26 = vld [vmem:[%s9663_s30 + $0x1] ss:$0 sm:$0xff] }
 0x719   :  { %2690 = vperm.xlu0 %6710, %v2651_v29   ;;  %6550 = vmatprep.subr.mxu0 %v9672_v37  ;;  %v2635_v51 = vmul.f32 %v8174_v17, %v2594_v33  ;;  %v2636_v25 = vmul.f32 %v8180_v11, %v2598_v48  ;;  %v2606_v52 = vrot.slane %v8282_v47, %v7336_v15  ;;  %v6926_v11 = vld [vmem:[%s9621_s5] ss:$0 sm:$0xff] }
 0x71a   :  { %2687 = vperm.xlu1 %6715, %v2650_v42   ;;  %6551 = vmatpush3.msra.mxu0 %v8090_v0  ;;  %v2652_v0 = vmul.f32 %v8274_v59, %v2627_v38  ;;  %v2654_v17 = vmul.f32 %v8274_v59, %v2629_v58  ;;  %v2602_v61 = vrot.slane %v8282_v47, %v7349_v30  ;;  %v6927_v47 = vld [vmem:[%s9622_s6] ss:$0 sm:$0xff] }
 0x71b   :  { %6552 = vmatprep.subr.mxu0 %v9672_v37  ;;  %v2661_v4 = vmul.f32 %v8274_v59, %v2636_v25  ;;  %v2638_v46 = vmul.f32 %v8186_v3, %v2606_v52  ;;  %v3279_v31 = vmul.f32 %v6926_v11, %v3273_v2  ;;  %v2655_v60 = vmul.f32 %v8274_v59, %v2630_v40 }
 0x71c   :  { %6553 = vmatpush3.msra.mxu0 %v8097_v5  ;;  %v2659_v5 = vmul.f32 %v8274_v59, %v2634_v20  ;;  %v2637_v39 = vmul.f32 %v8184_v44, %v2602_v61  ;;  %v6928_v44 = vld [vmem:[%s9621_s5 + $0x1] ss:$0 sm:$0xff]  ;;  %v3275_v29 = vmul.f32 %v6929_v36, %v3273_v2  ;;  %v3276_v45 = vmul.f32 %v6932_v26, %v3273_v2 }
 0x71d   :  { %2708 = vperm.xlu0 %6710, %v2657_v53   ;;  %6554 = vmatprep.subr.mxu0 %v9672_v37  ;;  %v2663_v57 = vmul.f32 %v8274_v59, %v2638_v46  ;;  %v3281_v50 = vadd.f32 %v6927_v47, %v3279_v31  ;;  %v3280_v28 = vmul.f32 %v6928_v44, %v3273_v2 }
 0x71e   :  { %2705 = vperm.xlu1 %6715, %v2656_v19   ;;  %6555 = vmatpush3.msra.mxu0 %v8104_v23  ;;  %v2660_v23 = vmul.f32 %v8274_v59, %v2635_v51  ;;  %v2662_v3 = vmul.f32 %v8274_v59, %v2637_v39  ;;  %v6930_v59 = vld [vmem:[%s9622_s6 + $0x1] ss:$0 sm:$0xff]  ;;  %v8375_v24 = vadd.f32 %v6931_v12, %v3275_v29 }
 0x71f   :  { %6570 = vmatprep.subr.mxu0 %v9672_v37  ;;  %v3292_v22 = vrot.slane %v3281_v50, %v7200_v27  ;;  %v3282_v62 = vadd.f32 %v6930_v59, %v3280_v28  ;;  %v3285_v38 = vcombine.high %v3281_v50, %v3281_v50  ;;  %v8406_v50 = vld [vmem:[%s9623_s7] ss:$0 sm:$0xff] }
 0x721   :  { %2711 = vperm.xlu0 %6710, %v2658_v54   ;;  %v3300_v18 = vcombine.high %v3292_v22, %v3292_v22  ;;  %v3308_v63 = vrot.slane %v3292_v22, %v7200_v27  ;;  %v3341_v19 = vrot.slane %v3282_v62, %v7200_v27  ;;  %v3334_v11 = vcombine.high %v3282_v62, %v3282_v62 }
 0x722   :  { %2693 = vperm.xlu1 %6715, %v2652_v0   ;;  %v6933_v0 = vld [vmem:[%s9620_s4 + $0x1] ss:$0 sm:$0xff] }
 0x723   :  { %v3322_v35 = vrot.slane %v3300_v18, %v7200_v27  ;;  %v3330_v42 = vcombine.high %v3308_v63, %v3308_v63  ;;  %v3386_v54 = vrot.slane %v3308_v63, %v7151_v6  ;;  %v3357_v20 = vrot.slane %v3341_v19, %v7200_v27 }
 0x724   :  { %v8389_v1 = vadd.f32 %v6933_v0, %v3276_v45  ;;  %v3349_v48 = vcombine.high %v3341_v19, %v3341_v19  ;;  %v3348_v36 = vrot.slane %v3334_v11, %v7200_v27 }
 0x725   :  { %2714 = vperm.xlu0 %6710, %v2659_v5   ;;  %v3390_v53 = vrot.slane %v3322_v35, %v7151_v6  ;;  %v3394_v21 = vrot.slane %v3330_v42, %v7151_v6  ;;  %v3418_v49 = vrot.slane %v3357_v20, %v7151_v6  ;;  %v3299_v5 = vrot.slane %v3285_v38, %v7200_v27 }
 0x726   :  { %2696 = vperm.xlu1 %6715, %v2653_v43   ;;  %v3332_v51 = vcombine.high %v3322_v35, %v3322_v35  ;;  %v3463_v58 = vadd.f32 %v3386_v54, %v8375_v24  ;;  %v3379_v39 = vcombine.high %v3357_v20, %v3357_v20  ;;  %v3364_v54 = vrot.slane %v3348_v36, %v7200_v27 }
 0x727   :  { %v3464_v33 = vadd.f32 %v3390_v53, %v8375_v24  ;;  %v3465_v43 = vadd.f32 %v3394_v21, %v8375_v24  ;;  %v3315_v25 = vrot.slane %v3299_v5, %v7200_v27 }
 0x728   :  { %v3398_v52 = vrot.slane %v3332_v51, %v7151_v6  ;;  %v3495_v61 = vmul.f32 0.2, %v3463_v58  ;;  %vm3479_vm1 = vcmp.gt.f32.partialorder %v3463_v58, 0.0  ;;  %v3426_v59 = vrot.slane %v3379_v39, %v7151_v6 }
 0x729   :  { %2717 = vperm.xlu0 %6710, %v2660_v23   ;;  %v3496_v41 = vmul.f32 0.2, %v3464_v33  ;;  %vm3480_vm14 = vcmp.gt.f32.partialorder %v3464_v33, 0.0  ;;  %v3471_v23 = vadd.f32 %v3418_v49, %v8389_v1  ;;  %v3497_v40 = vmul.f32 0.2, %v3465_v43 }
 0x72a   :  { %2699 = vperm.xlu1 %6715, %v2654_v17   ;;  %v3301_v17 = vcombine.high %v3299_v5, %v3299_v5  ;;  %v3402_v2 = vrot.slane %v3315_v25, %v7151_v6  ;;  %vm3481_vm15 = vcmp.gt.f32.partialorder %v3465_v43, 0.0  ;;  %v3511_v18 = vsel %vm3479_vm1, %v3463_v58, %v3495_v61 }
 0x72b   :  { %v3512_v46 = vsel %vm3480_vm14, %v3464_v33, %v3496_v41  ;;  %v3503_v31 = vmul.f32 0.2, %v3471_v23  ;;  %vm3487_vm10 = vcmp.gt.f32.partialorder %v3471_v23, 0.0  ;;  %v3513_v22 = vsel %vm3481_vm15, %v3465_v43, %v3497_v40  ;;  %v8427_v43 = vld [vmem:[%s9623_s7 + $0x1] ss:$0 sm:$0xff] }
 0x72c   :  { %v3329_v47 = vrot.slane %v3301_v17, %v7200_v27  ;;  %v3467_v44 = vadd.f32 %v3402_v2, %v8375_v24  ;;  %v3331_v63 = vcombine.high %v3315_v25, %v3315_v25  ;;  %v3529_v62 = vmul.f32 %v8406_v50, %v3513_v22 }
 0x72d   :  { %2720 = vperm.xlu0 %6710, %v2661_v4   ;;  %v3371_v4 = vrot.slane %v3349_v48, %v7200_v27  ;;  %v3519_v29 = vsel %vm3487_vm10, %v3471_v23, %v3503_v31  ;;  %v3527_v42 = vmul.f32 %v8406_v50, %v3511_v18  ;;  %v3473_v33 = vadd.f32 %v3426_v59, %v8389_v1 }
 0x72e   :  { %2702 = vperm.xlu1 %6715, %v2655_v60   ;;  %v3406_v28 = vrot.slane %v3329_v47, %v7151_v6  ;;  %vm3483_vm14 = vcmp.gt.f32.partialorder %v3467_v44, 0.0  ;;  %v3499_v45 = vmul.f32 0.2, %v3467_v44  ;;  %v3410_v38 = vrot.slane %v3331_v63, %v7151_v6 }
 0x72f   :  { %v3422_v60 = vrot.slane %v3371_v4, %v7151_v6  ;;  %v3381_v53 = vcombine.high %v3371_v4, %v3371_v4  ;;  %v3333_v21 = vcombine.high %v3329_v47, %v3329_v47  ;;  %v3350_v5 = vcombine.high %v3348_v36, %v3348_v36 }
 0x730   :  { %v3468_v19 = vadd.f32 %v3406_v28, %v8375_v24  ;;  %v3549_v51 = vsel %vm438_vm0, %v3529_v62, 0.0  ;;  %v3543_v48 = vsel %vm438_vm0, %v3527_v42, 0.0  ;;  %v3535_v58 = vmul.f32 %v8427_v43, %v3519_v29 }
 0x731   :  { %2726 = vperm.xlu0 %6710, %v2663_v57   ;;  %v3466_v57 = vadd.f32 %v3398_v52, %v8375_v24  ;;  %v3472_v35 = vadd.f32 %v3422_v60, %v8389_v1  ;;  %v3430_v49 = vrot.slane %v3381_v53, %v7151_v6  ;;  %v3515_v41 = vsel %vm3483_vm14, %v3467_v44, %v3499_v45 }
 0x732   :  { %2723 = vperm.xlu1 %6715, %v2662_v3   ;;  %v3528_v3 = vmul.f32 %v8406_v50, %v3512_v46  ;;  %v3500_v23 = vmul.f32 0.2, %v3468_v19  ;;  %v3469_v25 = vadd.f32 %v3410_v38, %v8375_v24  ;;  %v3414_v52 = vrot.slane %v3333_v21, %v7151_v6 }
 0x733   :  { %v3498_v12 = vmul.f32 0.2, %v3466_v57  ;;  %vm3482_vm11 = vcmp.gt.f32.partialorder %v3466_v57, 0.0  ;;  %v3504_v20 = vmul.f32 0.2, %v3472_v35  ;;  %vm3488_vm15 = vcmp.gt.f32.partialorder %v3472_v35, 0.0 }
 0x734   :  { %v3546_v26 = vsel %vm438_vm0, %v3528_v3, 0.0  ;;  %v3380_v17 = vcombine.high %v3364_v54, %v3364_v54  ;;  %vm3484_vm1 = vcmp.gt.f32.partialorder %v3468_v19, 0.0  ;;  %v3505_v2 = vmul.f32 0.2, %v3473_v33 }
 0x735   :  { %v3514_v0 = vsel %vm3482_vm11, %v3466_v57, %v3498_v12  ;;  %v3520_v61 = vsel %vm3488_vm15, %v3472_v35, %v3504_v20  ;;  %vm3489_vm10 = vcmp.gt.f32.partialorder %v3473_v33, 0.0  ;;  %v3474_v4 = vadd.f32 %v3430_v49, %v8389_v1 }
 0x736   :  { %v3530_v40 = vmul.f32 %v8406_v50, %v3514_v0  ;;  %v3434_v46 = vrot.slane %v3364_v54, %v7151_v6  ;;  %v3378_v11 = vrot.slane %v3350_v5, %v7200_v27  ;;  %v3567_v31 = vsel %vm438_vm0, %v3535_v58, 0.0 }
 0x737   :  { %v3531_v60 = vmul.f32 %v8406_v50, %v3515_v41  ;;  %v3516_v39 = vsel %vm3484_vm1, %v3468_v19, %v3500_v23  ;;  %v3501_v57 = vmul.f32 0.2, %v3469_v25  ;;  %v3470_v47 = vadd.f32 %v3414_v52, %v8375_v24 }
 0x738   :  { %v3442_v3 = vrot.slane %v3380_v17, %v7151_v6  ;;  %v3552_v22 = vsel %vm438_vm0, %v3530_v40, 0.0  ;;  %v3536_v18 = vmul.f32 %v8427_v43, %v3520_v61  ;;  %v3521_v44 = vsel %vm3489_vm10, %v3473_v33, %v3505_v2 }
 0x739   :  { %vm3485_vm11 = vcmp.gt.f32.partialorder %v3469_v25, 0.0  ;;  %v3506_v28 = vmul.f32 0.2, %v3474_v4  ;;  %v3475_v63 = vadd.f32 %v3434_v46, %v8389_v1  ;;  %v3438_v36 = vrot.slane %v3378_v11, %v7151_v6 }
 0x73a   :  { %v3382_v29 = vcombine.high %v3378_v11, %v3378_v11  ;;  %v3555_v35 = vsel %vm438_vm0, %v3531_v60, 0.0  ;;  %v3532_v59 = vmul.f32 %v8406_v50, %v3516_v39  ;;  %vm3490_vm14 = vcmp.gt.f32.partialorder %v3474_v4, 0.0 }
 0x73b   :  { %v3517_v24 = vsel %vm3485_vm11, %v3469_v25, %v3501_v57  ;;  %v3502_v62 = vmul.f32 0.2, %v3470_v47  ;;  %v3477_v42 = vadd.f32 %v3442_v3, %v8389_v1  ;;  %v3570_v12 = vsel %vm438_vm0, %v3536_v18, 0.0 }
 0x73c   :  { %v3537_v53 = vmul.f32 %v8427_v43, %v3521_v44  ;;  %vm3486_vm15 = vcmp.gt.f32.partialorder %v3470_v47, 0.0  ;;  %v3507_v45 = vmul.f32 0.2, %v3475_v63  ;;  %v3476_v19 = vadd.f32 %v3438_v36, %v8389_v1 }
 0x73d   :  { %v3446_v38 = vrot.slane %v3382_v29, %v7151_v6  ;;  %v3558_v21 = vsel %vm438_vm0, %v3532_v59, 0.0  ;;  %v3533_v54 = vmul.f32 %v8406_v50, %v3517_v24  ;;  %vm3491_vm1 = vcmp.gt.f32.partialorder %v3475_v63, 0.0 }
 0x73e   :  { %v3518_v20 = vsel %vm3486_vm15, %v3470_v47, %v3502_v62  ;;  %v3509_v33 = vmul.f32 0.2, %v3477_v42  ;;  %v3573_v0 = vsel %vm438_vm0, %v3537_v53, 0.0  ;;  %vm3493_vm10 = vcmp.gt.f32.partialorder %v3477_v42, 0.0 }
 0x73f   :  { %v3523_v5 = vsel %vm3491_vm1, %v3475_v63, %v3507_v45  ;;  %v3561_v58 = vsel %vm438_vm0, %v3533_v54, 0.0  ;;  %v3534_v41 = vmul.f32 %v8406_v50, %v3518_v20  ;;  %vm3492_vm11 = vcmp.gt.f32.partialorder %v3476_v19, 0.0 }
 0x740   :  { %v3525_v23 = vsel %vm3493_vm10, %v3477_v42, %v3509_v33  ;;  %v3539_v52 = vmul.f32 %v8427_v43, %v3523_v5 }
 0x741   :  { %v3564_v61 = vsel %vm438_vm0, %v3534_v41, 0.0  ;;  %v3541_v2 = vmul.f32 %v8427_v43, %v3525_v23 }
 0x743   :  { %v3585_v46 = vsel %vm438_vm0, %v3541_v2, 0.0 }
 0x750   :  { %3547 = vadd.xlane.f32.xlu0 %v3546_v26  ;;  %v3522_v26 = vsel %vm3490_vm14, %v3474_v4, %v3506_v28 }
 0x751   :  { %v3538_v49 = vmul.f32 %v8427_v43, %v3522_v26 }
 0x753   :  { %v3576_v25 = vsel %vm438_vm0, %v3538_v49, 0.0 }
 0x754   :  { %3550 = vadd.xlane.f32.xlu0 %v3549_v51  ;;  %v3508_v51 = vmul.f32 0.2, %v3476_v19 }
 0x756   :  { %3544 = vadd.xlane.f32.xlu1 %v3543_v48  ;;  %v3478_v48 = vadd.f32 %v3446_v38, %v8389_v1  ;;  %v3524_v17 = vsel %vm3492_vm11, %v3476_v19, %v3508_v51  ;;  %v3579_v1 = vsel %vm438_vm0, %v3539_v52, 0.0 }
 0x757   :  { %v3540_v50 = vmul.f32 %v8427_v43, %v3524_v17 }
 0x758   :  { %3568 = vadd.xlane.f32.xlu0 %v3567_v31  ;;  %v3510_v40 = vmul.f32 0.2, %v3478_v48  ;;  %vm3494_vm14 = vcmp.gt.f32.partialorder %v3478_v48, 0.0 }
 0x759   :  { %v3582_v11 = vsel %vm438_vm0, %v3540_v50, 0.0 }
 0x75a   :  { %3553 = vadd.xlane.f32.xlu1 %v3552_v22  ;;  %v3526_v4 = vsel %vm3494_vm14, %v3478_v48, %v3510_v40 }
 0x75b   :  { %v3542_v31 = vmul.f32 %v8427_v43, %v3526_v4 }
 0x75c   :  { %3556 = vadd.xlane.f32.xlu0 %v3555_v35 }
 0x75d   :  { %v3588_v60 = vsel %vm438_vm0, %v3542_v31, 0.0 }
 0x75e   :  { %3571 = vadd.xlane.f32.xlu1 %v3570_v12 }
 0x760   :  { %3559 = vadd.xlane.f32.xlu0 %v3558_v21 }
 0x762   :  { %3574 = vadd.xlane.f32.xlu1 %v3573_v0 }
 0x764   :  { %3562 = vadd.xlane.f32.xlu0 %v3561_v58 }
 0x766   :  { %3577 = vadd.xlane.f32.xlu1 %v3576_v25 }
 0x768   :  { %3565 = vadd.xlane.f32.xlu0 %v3564_v61 }
 0x76a   :  { %3580 = vadd.xlane.f32.xlu1 %v3579_v1  ;;  %v9674_v1 = vld [vmem:[#allocation5_spill] sm:$0xff] }
 0x76c   :  { %3586 = vadd.xlane.f32.xlu0 %v3585_v46  ;;  %v9675_v46 = vld [vmem:[#allocation6_spill] sm:$0xff] }
 0x76e   :  { %3583 = vadd.xlane.f32.xlu1 %v3582_v11 }
 0x772   :  { %3589 = vadd.xlane.f32.xlu1 %v3588_v60 }
 0x790   :  { %v2685_v3 = vpop.permute.xlu0 %2684 }
 0x791   :  { %v2682_v39 = vpop.permute.xlu1 %2681  ;;  %v2735_v18 = vrot.slane %v2685_v3, %v7157_v8 }
 0x792   :  { %v2731_v44 = vrot.slane %v2682_v39, %v7157_v8 }
 0x794   :  { %v2691_v28 = vpop.permute.xlu0 %2690  ;;  %v2792_v43 = vsel %vm698_vm2, %v2735_v18, %v2731_v44 }
 0x795   :  { %v2688_v57 = vpop.permute.xlu1 %2687  ;;  %v2743_v29 = vrot.slane %v2691_v28, %v7157_v8 }
 0x796   :  { %v2739_v63 = vrot.slane %v2688_v57, %v7157_v8 }
 0x798   :  { %v2793_v35 = vsel %vm700_vm3, %v2739_v63, %v2792_v43  ;;  %v2709_v20 = vpop.permute.xlu0 %2708  ;;  %v9676_v63 = vld [vmem:[#allocation7_spill] sm:$0xff] }
 0x799   :  { %v8469_v47 = vpop.permute.xlu1 %2705  ;;  %v2794_v12 = vsel %vm702_vm4, %v2743_v29, %v2793_v35  ;;  %v2767_v44 = vrot.slane %v2709_v20, %v7157_v8 }
 0x79a   :  { %v2763_v28 = vrot.slane %v8469_v47, %v7157_v8 }
 0x79c   :  { %v2712_v33 = vpop.permute.xlu0 %2711 }
 0x79d   :  { %v2694_v22 = vpop.permute.xlu1 %2693  ;;  %v2771_v43 = vrot.slane %v2712_v33, %v7157_v8 }
 0x79e   :  { %v2747_v59 = vrot.slane %v2694_v22, %v7157_v8 }
 0x7a0   :  { %v2795_v53 = vsel %vm704_vm5, %v2747_v59, %v2794_v12  ;;  %v2715_v0 = vpop.permute.xlu0 %2714 }
 0x7a1   :  { %v2697_v36 = vpop.permute.xlu1 %2696  ;;  %v2775_v29 = vrot.slane %v2715_v0, %v7157_v8 }
 0x7a2   :  { %v2751_v62 = vrot.slane %v2697_v36, %v7157_v8 }
 0x7a4   :  { %v2796_v45 = vsel %vm706_vm6, %v2751_v62, %v2795_v53  ;;  %v2718_v49 = vpop.permute.xlu0 %2717 }
 0x7a5   :  { %v2700_v24 = vpop.permute.xlu1 %2699  ;;  %v2779_v35 = vrot.slane %v2718_v49, %v7157_v8 }
 0x7a6   :  { %v2755_v42 = vrot.slane %v2700_v24, %v7157_v8  ;;  %v2799_v24 = vsel %vm698_vm2, %v2767_v44, %v2763_v28 }
 0x7a7   :  { %v2800_v47 = vsel %vm700_vm3, %v2771_v43, %v2799_v24  ;;  %v9680_v24 = vld [vmem:[#allocation11_spill] sm:$0xff] }
 0x7a8   :  { %v2797_v38 = vsel %vm708_vm7, %v2755_v42, %v2796_v45  ;;  %v2721_v51 = vpop.permute.xlu0 %2720  ;;  %v9677_v42 = vld [vmem:[#allocation8_spill] sm:$0xff] }
 0x7a9   :  { %v2703_v26 = vpop.permute.xlu1 %2702  ;;  %v2783_v62 = vrot.slane %v2721_v51, %v7157_v8 }
 0x7aa   :  { %v2759_v19 = vrot.slane %v2703_v26, %v7157_v8  ;;  %v2801_v26 = vsel %vm702_vm4, %v2775_v29, %v2800_v47 }
 0x7ab   :  { %v2802_v45 = vsel %vm704_vm5, %v2779_v35, %v2801_v26  ;;  %v6936_v26 = vld [vmem:[%s9625_s9] ss:$0 sm:$0xff] }
 0x7ac   :  { %v2798_v21 = vsel %vm710_vm8, %v2759_v19, %v2797_v38  ;;  %v2727_v58 = vpop.permute.xlu0 %2726  ;;  %v2803_v38 = vsel %vm706_vm6, %v2783_v62, %v2802_v45 }
 0x7ad   :  { %v2808_v54 = vsel %vm721_vm9, %v2798_v21, 0.0  ;;  %v2724_v17 = vpop.permute.xlu1 %2723  ;;  %v2791_v21 = vrot.slane %v2727_v58, %v7157_v8 }
 0x7ae   :  { %2809 = vadd.xlane.f32.xlu0 %v2808_v54  ;;  %v2787_v53 = vrot.slane %v2724_v17, %v7157_v8  ;;  %v9678_v54 = vld [vmem:[#allocation9_spill] sm:$0xff] }
 0x7b0   :  { %v2804_v33 = vsel %vm708_vm7, %v2787_v53, %v2803_v38 }
 0x7b1   :  { %v2805_v0 = vsel %vm710_vm8, %v2791_v21, %v2804_v33 }
 0x7b2   :  { %v2811_v49 = vsel %vm721_vm9, %v2805_v0, 0.0 }
 0x7ce   :  { %v8487_v5 = vpop.f32.mrf.mxu0 }
 0x7d0   :  { %v6514_v48 = vpop.f32.mrf.mxu0 }
 0x7d6   :  { %v8489_v41 = vpop.f32.mrf.mxu0 }
 0x7d8   :  { %v6536_v23 = vpop.f32.mrf.mxu0 }
 0x7d9   :  { %v3548_v25 = vpop.xlane.xlu0 %3547 }
 0x7da   :  { %v8492_v52 = vadd.f32 %v3548_v25, %v7353_v32 }
 0x7dc   :  { %3627 = vperm.xlu1 %6715, %v8492_v52  }
 0x7dd   :  { %v3551_v40 = vpop.xlane.xlu0 %3550 }
 0x7de   :  { %v8496_v61 = vadd.f32 %v3551_v40, %v7357_v34 }
 0x7df   :  { %v3545_v2 = vpop.xlane.xlu1 %3544 }
 0x7e0   :  { %v8499_v50 = vadd.f32 %v3545_v2, %v9674_v1  ;;  %3630 = vperm.xlu1 %6715, %v8496_v61  }
 0x7e1   :  { %v3569_v51 = vpop.xlane.xlu0 %3568 }
 0x7e2   :  { %3624 = vperm.xlu0 %6710, %v8499_v50   ;;  %v8549_v25 = vadd.f32 %v3569_v51, %v9674_v1 }
 0x7e3   :  { %v3554_v4 = vpop.xlane.xlu1 %3553 }
 0x7e4   :  { %v8504_v11 = vadd.f32 %v3554_v4, %v9675_v46  ;;  %v9679_v4 = vld [vmem:[#allocation10_spill] sm:$0xff] }
 0x7e5   :  { %v3557_v48 = vpop.xlane.xlu0 %3556 }
 0x7e6   :  { %3633 = vperm.xlu0 %6710, %v8504_v11   ;;  %v8553_v58 = vadd.f32 %v3557_v48, %v9676_v63 }
 0x7e7   :  { %v3572_v31 = vpop.xlane.xlu1 %3571 }
 0x7e8   :  { %v8508_v60 = vadd.f32 %v3572_v31, %v7353_v32 }
 0x7e9   :  { %v3560_v23 = vpop.xlane.xlu0 %3559 }
 0x7ea   :  { %3651 = vperm.xlu0 %6710, %v8508_v60   ;;  %v8557_v40 = vadd.f32 %v3560_v23, %v9677_v42 }
 0x7eb   :  { %v3575_v39 = vpop.xlane.xlu1 %3574 }
 0x7ec   :  { %v8512_v57 = vadd.f32 %v3575_v39, %v7357_v34 }
 0x7ed   :  { %v3563_v17 = vpop.xlane.xlu0 %3562 }
 0x7ee   :  { %3654 = vperm.xlu0 %6710, %v8512_v57   ;;  %v8561_v31 = vadd.f32 %v3563_v17, %v9679_v4 }
 0x7ef   :  { %v3578_v3 = vpop.xlane.xlu1 %3577 }
 0x7f0   :  { %v8516_v22 = vadd.f32 %v3578_v3, %v9675_v46 }
 0x7f1   :  { %v3566_v2 = vpop.xlane.xlu0 %3565 }
 0x7f2   :  { %3657 = vperm.xlu0 %6710, %v8516_v22   ;;  %v8565_v39 = vadd.f32 %v3566_v2, %v9678_v54 }
 0x7f3   :  { %v3581_v18 = vpop.xlane.xlu1 %3580 }
 0x7f4   :  { %v8523_v36 = vadd.f32 %v3581_v18, %v9676_v63 }
 0x7f5   :  { %v3587_v3 = vpop.xlane.xlu0 %3586 }
 0x7f6   :  { %3660 = vperm.xlu0 %6710, %v8523_v36   ;;  %v8569_v18 = vadd.f32 %v3587_v3, %v9679_v4 }
 0x7f7   :  { %v3584_v59 = vpop.xlane.xlu1 %3583 }
 0x7f8   :  { %v8532_v12 = vadd.f32 %v3584_v59, %v9677_v42 }
 0x7fa   :  { %3663 = vperm.xlu0 %6710, %v8532_v12  }
 0x7fb   :  { %v3590_v19 = vpop.xlane.xlu1 %3589 }
 0x7fc   :  { %v8542_v20 = vadd.f32 %v3590_v19, %v9678_v54 }
 0x7fe   :  { %3669 = vperm.xlu0 %6710, %v8542_v20  }
 0x804   :  { %2812 = vadd.xlane.f32.xlu1 %v2811_v49 }
 0x815   :  { %3648 = vperm.xlu1 %6715, %v8549_v25  }
 0x819   :  { %3636 = vperm.xlu1 %6715, %v8553_v58  }
 0x81d   :  { %3639 = vperm.xlu1 %6715, %v8557_v40  }
 0x821   :  { %3642 = vperm.xlu1 %6715, %v8561_v31  }
 0x825   :  { %3645 = vperm.xlu1 %6715, %v8565_v39  }
 0x829   :  { %3666 = vperm.xlu1 %6715, %v8569_v18  }
 0x837   :  { %v2810_v44 = vpop.xlane.xlu0 %2809 }
 0x838   :  { %v2814_v62 = vmul.f32 %v2810_v44, %v9680_v24 }
 0x83a   :  { %v2815_v45 = vadd.f32 %v6936_v26, %v2814_v62 }
 0x857   :  { %v3628_v29 = vpop.permute.xlu1 %3627 }
 0x858   :  { %v3678_v44 = vrot.slane %v3628_v29, %v7157_v8 }
 0x85b   :  { %v3631_v59 = vpop.permute.xlu1 %3630 }
 0x85d   :  { %v3625_v28 = vpop.permute.xlu0 %3624 }
 0x85e   :  { %v3674_v23 = vrot.slane %v3625_v28, %v7157_v8 }
 0x861   :  { %v3634_v43 = vpop.permute.xlu0 %3633 }
 0x862   :  { %v3686_v26 = vrot.slane %v3634_v43, %v7157_v8 }
 0x865   :  { %v3652_v35 = vpop.permute.xlu0 %3651 }
 0x866   :  { %v3710_v2 = vrot.slane %v3652_v35, %v7157_v8 }
 0x869   :  { %v3655_v47 = vpop.permute.xlu0 %3654 }
 0x86d   :  { %v3658_v33 = vpop.permute.xlu0 %3657 }
 0x871   :  { %v3661_v17 = vpop.permute.xlu0 %3660 }
 0x875   :  { %v3664_v28 = vpop.permute.xlu0 %3663 }
 0x88d   :  { %v2813_v53 = vpop.xlane.xlu1 %2812 }
 0x88e   :  { %v2816_v19 = vmul.f32 %v2813_v53, %v7991_v56  ;;  %v3735_v53 = vsel %vm698_vm2, %v3678_v44, %v3674_v23 }
 0x890   :  { %v2817_v38 = vadd.f32 %v2816_v19, %v2815_v45  ;;  %v3714_v45 = vrot.slane %v3655_v47, %v7157_v8  ;;  %v3682_v19 = vrot.slane %v3631_v59, %v7157_v8 }
 0x891   :  { %v3649_v21 = vpop.permute.xlu1 %3648 }
 0x892   :  { %v2818_v0 = vsub.f32 0.0, %v2817_v38  ;;  %v3706_v48 = vrot.slane %v3649_v21, %v7157_v8  ;;  %v3736_v29 = vsel %vm700_vm3, %v3682_v19, %v3735_v53  ;;  %v3670_v53 = vpop.permute.xlu0 %3669  ;;  %v3726_v19 = vrot.slane %v3664_v28, %v7157_v8  ;;  %v6937_v28 = vld [vmem:[%s9629_s13 + $0x18] sm:$0xff] }
 0x893   :  { %v3737_v43 = vsel %vm702_vm4, %v3686_v26, %v3736_v29 }
 0x894   :  { %v2819_v49 = vmul.f32 1.442695, %v2818_v0  ;;  %v3742_v62 = vsel %vm698_vm2, %v3710_v2, %v3706_v48 }
 0x895   :  { %v3637_v51 = vpop.permute.xlu1 %3636  ;;  %v3743_v0 = vsel %vm700_vm3, %v3714_v45, %v3742_v62 }
 0x896   :  { %6804 = vpow2.f32 %v2819_v49  ;;  %v3690_v38 = vrot.slane %v3637_v51, %v7157_v8  ;;  %v3718_v49 = vrot.slane %v3658_v33, %v7157_v8  ;;  %v3722_v51 = vrot.slane %v3661_v17, %v7157_v8 }
 0x898   :  { %v3744_v47 = vsel %vm702_vm4, %v3718_v49, %v3743_v0  ;;  %v3738_v59 = vsel %vm704_vm5, %v3690_v38, %v3737_v43  ;;  %v3734_v0 = vrot.slane %v3670_v53, %v7157_v8  ;;  %v6946_v53 = vld [vmem:[%s9626_s10 + $0x10] sm:$0xff] }
 0x899   :  { %v3640_v3 = vpop.permute.xlu1 %3639  ;;  %v3745_v26 = vsel %vm704_vm5, %v3722_v51, %v3744_v47  ;;  %v6938_v47 = vld [vmem:[%s9629_s13 + $0x10] sm:$0xff]  ;;  %v6941_v51 = vld [vmem:[%s9632_s16 + $0x18] sm:$0xff] }
 0x89a   :  { %v3694_v35 = vrot.slane %v3640_v3, %v7157_v8 }
 0x89c   :  { %v3739_v2 = vsel %vm706_vm6, %v3694_v35, %v3738_v59  ;;  %v3746_v35 = vsel %vm706_vm6, %v3726_v19, %v3745_v26  ;;  %v6939_v59 = vld [vmem:[%s9629_s13 + $0x8] sm:$0xff] }
 0x89d   :  { %v3643_v21 = vpop.permute.xlu1 %3642 }
 0x89e   :  { %v3698_v48 = vrot.slane %v3643_v21, %v7157_v8 }
 0x8a0   :  { %v3740_v62 = vsel %vm708_vm7, %v3698_v48, %v3739_v2  ;;  %v6942_v2 = vld [vmem:[%s9632_s16 + $0x10] sm:$0xff] }
 0x8a1   :  { %v3646_v23 = vpop.permute.xlu1 %3645 }
 0x8a2   :  { %v3702_v44 = vrot.slane %v3646_v23, %v7157_v8  ;;  %v6940_v23 = vld [vmem:[%s9629_s13] sm:$0xff] }
 0x8a3   :  { %v6805_v3 = vpop.eup %6804 }
 0x8a4   :  { %v2821_v33 = vadd.f32 1.0, %v6805_v3  ;;  %v3741_v45 = vsel %vm710_vm8, %v3702_v44, %v3740_v62  ;;  %v6943_v44 = vld [vmem:[%s9632_s16 + $0x8] sm:$0xff]  ;;  %v6944_v3 = vld [vmem:[%s9632_s16] sm:$0xff]  ;;  %v6945_v62 = vld [vmem:[%s9626_s10 + $0x18] sm:$0xff] }
 0x8a5   :  { %v3667_v21 = vpop.permute.xlu1 %3666  ;;  %v3751_v38 = vsel %vm721_vm9, %v3741_v45, -inf  ;;  %v6948_v45 = vld [vmem:[%s9626_s10] sm:$0xff] }
 0x8a6   :  { %6806 = vrcp.f32 %v2821_v33  ;;  %v3730_v17 = vrot.slane %v3667_v21, %v7157_v8  ;;  %3752 = vmax.xlane.f32.xlu1 %v3751_v38  ;;  %v6947_v33 = vld [vmem:[%s9626_s10 + $0x8] sm:$0xff] }
 0x8a8   :  { %v3747_v29 = vsel %vm708_vm7, %v3730_v17, %v3746_v35 }
 0x8a9   :  { %v3748_v49 = vsel %vm710_vm8, %v3734_v0, %v3747_v29 }
 0x8aa   :  { %v3754_v48 = vsel %vm721_vm9, %v3748_v49, -inf }
 0x8ab   :  { %3755 = vmax.xlane.f32.xlu0 %v3754_v48 }
 0x8b3   :  { %v6807_v43 = vpop.eup %6806 }
 0x8b4   :  { %6524 = vmatmul.mubr.msk.f32.vlgmr.msra.gmra.mxu1 %vm1306_vm13, %v6807_v43 }
 0x8b5   :  { %6538 = vmatpush3.msra.mxu1 %v6937_v28  ;;  %6545 = vmatprep.mubr.msk.f32.mxu1 %vm7031_vm12, %v9672_v37 }
 0x8b6   :  { %6539 = vmatprep.subr.mxu1 %v9672_v37 }
 0x8b7   :  { %6540 = vmatpush3.msra.mxu1 %v6938_v47 }
 0x8b8   :  { %6541 = vmatprep.subr.mxu1 %v9672_v37 }
 0x8b9   :  { %6542 = vmatpush3.msra.mxu1 %v6939_v59 }
 0x8ba   :  { %6543 = vmatprep.subr.mxu1 %v9672_v37 }
 0x8bb   :  { %6544 = vmatpush3.msra.mxu1 %v6940_v23 }
 0x8bc   :  { %6546 = vmatmul.mubr.msk.f32.vlgmr.msra.gmra.mxu1 %vm1306_vm13, %v6807_v43  ;;  %6559 = vmatprep.subr.mxu1 %v9672_v37 }
 0x8bd   :  { %6560 = vmatpush3.msra.mxu1 %v6941_v51  ;;  %6567 = vmatprep.mubr.msk.f32.mxu1 %vm7031_vm12, %v9672_v37 }
 0x8be   :  { %6561 = vmatprep.subr.mxu1 %v9672_v37 }
 0x8bf   :  { %6562 = vmatpush3.msra.mxu1 %v6942_v2 }
 0x8c0   :  { %6563 = vmatprep.subr.mxu1 %v9672_v37 }
 0x8c1   :  { %6564 = vmatpush3.msra.mxu1 %v6943_v44 }
 0x8c2   :  { %6565 = vmatprep.subr.mxu1 %v9672_v37 }
 0x8c3   :  { %6566 = vmatpush3.msra.mxu1 %v6944_v3 }
 0x8c4   :  { %6568 = vmatmul.mubr.msk.f32.vlgmr.msra.gmra.mxu1 %vm1306_vm13, %v6807_v43  ;;  %6581 = vmatprep.subr.mxu1 %v9672_v37 }
 0x8c5   :  { %6582 = vmatpush3.msra.mxu1 %v6945_v62  ;;  %6589 = vmatprep.mubr.msk.f32.mxu1 %vm7031_vm12, %v9672_v37 }
 0x8c6   :  { %6583 = vmatprep.subr.mxu1 %v9672_v37 }
 0x8c7   :  { %6584 = vmatpush3.msra.mxu1 %v6946_v53 }
 0x8c8   :  { %6585 = vmatprep.subr.mxu1 %v9672_v37 }
 0x8c9   :  { %6586 = vmatpush3.msra.mxu1 %v6947_v33 }
 0x8ca   :  { %6587 = vmatprep.subr.mxu1 %v9672_v37 }
 0x8cb   :  { %6588 = vmatpush3.msra.mxu1 %v6948_v45 }
 0x8cc   :  { %6603 = vmatprep.subr.mxu1 %v9672_v37 }
 0x92f   :  { %v3753_v26 = vpop.xlane.xlu1 %3752 }
 0x930   :  { %v3762_v19 = vrot.slane %v3753_v26, %v7151_v6  ;;  %v3766_v21 = vrot.slane %v3753_v26, %v7154_v7  ;;  %v3770_v38 = vrot.slane %v3753_v26, %v7160_v9  ;;  %v3774_v17 = vrot.slane %v3753_v26, %v7163_v10 }
 0x931   :  { %v3778_v59 = vrot.slane %v3753_v26, %v7172_v14  ;;  %v3786_v45 = vrot.slane %v3753_v26, %v7349_v30 }
 0x932   :  { %v3839_v0 = vsub.f32 %v8499_v50, %v3762_v19  ;;  %v3840_v35 = vsub.f32 %v8492_v52, %v3766_v21  ;;  %v3842_v29 = vsub.f32 %v8504_v11, %v3774_v17  ;;  %v3841_v49 = vsub.f32 %v8496_v61, %v3770_v38 }
 0x933   :  { %v3782_v61 = vrot.slane %v3753_v26, %v7177_v16  ;;  %v3843_v44 = vsub.f32 %v8553_v58, %v3778_v59  ;;  %v3790_v38 = vrot.slane %v3753_v26, %v7336_v15  ;;  %v3845_v17 = vsub.f32 %v8561_v31, %v3786_v45 }
 0x934   :  { %v3855_v48 = vmul.f32 1.442695, %v3839_v0  ;;  %v3857_v43 = vmul.f32 1.442695, %v3840_v35  ;;  %v3756_v28 = vpop.xlane.xlu0 %3755  ;;  %v3861_v23 = vmul.f32 1.442695, %v3842_v29 }
 0x935   :  { %v3794_v47 = vrot.slane %v3756_v28, %v7151_v6  ;;  %v3798_v51 = vrot.slane %v3756_v28, %v7154_v7  ;;  %v3859_v2 = vmul.f32 1.442695, %v3841_v49  ;;  %v3802_v50 = vrot.slane %v3756_v28, %v7160_v9 }
 0x936   :  { %6808 = vpow2.f32 %v3855_v48  ;;  %v3806_v3 = vrot.slane %v3756_v28, %v7163_v10  ;;  %v3844_v19 = vsub.f32 %v8557_v40, %v3782_v61  ;;  %v3863_v21 = vmul.f32 1.442695, %v3843_v44 }
 0x937   :  { %6810 = vpow2.f32 %v3857_v43  ;;  %v3847_v52 = vsub.f32 %v8549_v25, %v3794_v47  ;;  %v3848_v11 = vsub.f32 %v8508_v60, %v3798_v51  ;;  %v3849_v62 = vsub.f32 %v8512_v57, %v3802_v50 }
 0x938   :  { %6812 = vpow2.f32 %v3861_v23  ;;  %v3810_v60 = vrot.slane %v3756_v28, %v7172_v14  ;;  %v3850_v25 = vsub.f32 %v8516_v22, %v3806_v3  ;;  %v3865_v57 = vmul.f32 1.442695, %v3844_v19 }
 0x939   :  { %6814 = vpow2.f32 %v3859_v2  ;;  %v3871_v53 = vmul.f32 1.442695, %v3847_v52  ;;  %v3873_v33 = vmul.f32 1.442695, %v3848_v11  ;;  %v3875_v58 = vmul.f32 1.442695, %v3849_v62 }
 0x93a   :  { %v3814_v35 = vrot.slane %v3756_v28, %v7177_v16  ;;  %v3851_v40 = vsub.f32 %v8523_v36, %v3810_v60  ;;  %v3877_v29 = vmul.f32 1.442695, %v3850_v25  ;;  %v3846_v22 = vsub.f32 %v8565_v39, %v3790_v38  ;;  %v6949_v25 = vld [vmem:[%s9628_s12] ss:$0 sm:$0xff] }
 0x93b   :  { %6816 = vpow2.f32 %v3871_v53  ;;  %v3867_v31 = vmul.f32 1.442695, %v3845_v17  ;;  %v3818_v26 = vrot.slane %v3756_v28, %v7349_v30  ;;  %v3822_v43 = vrot.slane %v3756_v28, %v7336_v15 }
 0x93c   :  { %6818 = vpow2.f32 %v3873_v33  ;;  %v3852_v36 = vsub.f32 %v8532_v12, %v3814_v35  ;;  %v3879_v47 = vmul.f32 1.442695, %v3851_v40  ;;  %v3869_v39 = vmul.f32 1.442695, %v3846_v22 }
 0x93d   :  { %6820 = vpow2.f32 %v3863_v21  ;;  %v3853_v23 = vsub.f32 %v8569_v18, %v3818_v26  ;;  %v3854_v2 = vsub.f32 %v8542_v20, %v3822_v43  ;;  %v7033_v17 = vmov 3  }
 0x93e   :  { %6822 = vpow2.f32 %v3875_v58  ;;  %v3881_v28 = vmul.f32 1.442695, %v3852_v36  ;;  %v6950_v36 = vld [vmem:[%s9627_s11 + $0x18] sm:$0xff] }
 0x93f   :  { %6824 = vpow2.f32 %v3865_v57  ;;  %v3883_v12 = vmul.f32 1.442695, %v3853_v23  ;;  %v3885_v11 = vmul.f32 1.442695, %v3854_v2  ;;  %v6953_v23 = vld [vmem:[%s9627_s11] sm:$0xff] }
 0x940   :  { %6826 = vpow2.f32 %v3877_v29 }
 0x941   :  { %6828 = vpow2.f32 %v3867_v31 }
 0x942   :  { %6830 = vpow2.f32 %v3879_v47  ;;  %v6951_v47 = vld [vmem:[%s9627_s11 + $0x10] sm:$0xff] }
 0x943   :  { %v8690_v0 = vpop.eup %6808  ;;  %6832 = vpow2.f32 %v3869_v39  ;;  %v6952_v39 = vld [vmem:[%s9627_s11 + $0x8] sm:$0xff] }
 0x944   :  { %v8694_v49 = vpop.eup %6810  ;;  %3904 = vperm.xlu0 %6710, %v8690_v0   ;;  %6834 = vpow2.f32 %v3881_v28 }
 0x945   :  { %3907 = vperm.xlu1 %6715, %v8694_v49   ;;  %v8700_v48 = vpop.eup %6812  ;;  %6836 = vpow2.f32 %v3883_v12 }
 0x946   :  { %v8704_v59 = vpop.eup %6814  ;;  %6838 = vpow2.f32 %v3885_v11 }
 0x948   :  { %3913 = vperm.xlu0 %6710, %v8700_v48   ;;  %v8709_v51 = vpop.eup %6816 }
 0x949   :  { %3910 = vperm.xlu1 %6715, %v8704_v59   ;;  %v8712_v50 = vpop.eup %6818 }
 0x94a   :  { %v8716_v52 = vpop.eup %6820 }
 0x94b   :  { %v8718_v61 = vpop.eup %6822 }
 0x94c   :  { %3931 = vperm.xlu0 %6710, %v8712_v50   ;;  %v8722_v20 = vpop.eup %6824 }
 0x94d   :  { %3928 = vperm.xlu1 %6715, %v8709_v51   ;;  %v8724_v18 = vpop.eup %6826 }
 0x94e   :  { %v8728_v44 = vpop.eup %6828 }
 0x94f   :  { %v8730_v3 = vpop.eup %6830 }
 0x950   :  { %3934 = vperm.xlu0 %6710, %v8718_v61   ;;  %v8734_v62 = vpop.eup %6832 }
 0x951   :  { %3916 = vperm.xlu1 %6715, %v8716_v52   ;;  %v8736_v53 = vpop.eup %6834 }
 0x952   :  { %v8740_v33 = vpop.eup %6836 }
 0x953   :  { %v8742_v45 = vpop.eup %6838 }
 0x954   :  { %3937 = vperm.xlu0 %6710, %v8724_v18  }
 0x955   :  { %3919 = vperm.xlu1 %6715, %v8722_v20  }
 0x958   :  { %3940 = vperm.xlu0 %6710, %v8730_v3  }
 0x959   :  { %3922 = vperm.xlu1 %6715, %v8728_v44  }
 0x95c   :  { %3943 = vperm.xlu0 %6710, %v8736_v53  }
 0x95d   :  { %3925 = vperm.xlu1 %6715, %v8734_v62  }
 0x960   :  { %3949 = vperm.xlu0 %6710, %v8742_v45  }
 0x961   :  { %3946 = vperm.xlu1 %6715, %v8740_v33  }
 0x965   :  { %6716 = vset.pattern.permute.xlu1 %v7033_v17 }
 0x974   :  { %v2965_v19 = vpop.f32.mrf.mxu1 }
 0x975   :  { %v2966_v21 = vadd.f32 %v2965_v19, %v8487_v5 }
 0x976   :  { %v6525_v60 = vpop.f32.mrf.mxu1 }
 0x977   :  { %v2969_v58 = vadd.f32 %v6949_v25, %v2966_v21 }
 0x979   :  { %v2970_v38 = vsub.f32 0.0, %v2969_v58 }
 0x97b   :  { %v2971_v57 = vmul.f32 1.442695, %v2970_v38 }
 0x97c   :  { %v8750_v35 = vpop.f32.mrf.mxu1 }
 0x97d   :  { %6840 = vpow2.f32 %v2971_v57 }
 0x97e   :  { %v6547_v40 = vpop.f32.mrf.mxu1 }
 0x984   :  { %v8752_v29 = vpop.f32.mrf.mxu1 }
 0x986   :  { %v6569_v22 = vpop.f32.mrf.mxu1 }
 0x98a   :  { %v6841_v31 = vpop.eup %6840 }
 0x98b   :  { %v2973_v26 = vadd.f32 1.0, %v6841_v31 }
 0x98d   :  { %6842 = vrcp.f32 %v2973_v26 }
 0x99a   :  { %v6843_v5 = vpop.eup %6842 }
 0x99b   :  { %v3121_v43 = vmul.f32 %v6843_v5, %v8258_v13 }
 0x99d   :  { %6557 = vmatmul.mubr.msk.f32.vlgmr.msra.gmra.mxu0 %vm1306_vm13, %v3121_v43 }
 0x99e   :  { %6571 = vmatpush3.msra.mxu0 %v6950_v36  ;;  %6578 = vmatprep.mubr.msk.f32.mxu0 %vm7031_vm12, %v9672_v37 }
 0x99f   :  { %6572 = vmatprep.subr.mxu0 %v9672_v37 }
 0x9a0   :  { %6573 = vmatpush3.msra.mxu0 %v6951_v47 }
 0x9a1   :  { %6574 = vmatprep.subr.mxu0 %v9672_v37 }
 0x9a2   :  { %6575 = vmatpush3.msra.mxu0 %v6952_v39 }
 0x9a3   :  { %6576 = vmatprep.subr.mxu0 %v9672_v37 }
 0x9a4   :  { %6577 = vmatpush3.msra.mxu0 %v6953_v23 }
 0x9a5   :  { %6592 = vmatprep.subr.mxu0 %v9672_v37 }
 0x9bf   :  { %v3905_v2 = vpop.permute.xlu0 %3904 }
 0x9c0   :  { %v3908_v28 = vpop.permute.xlu1 %3907  ;;  %v3954_v38 = vrot.slane %v3905_v2, %v7157_v8 }
 0x9c1   :  { %v3958_v58 = vrot.slane %v3908_v28, %v7157_v8 }
 0x9c3   :  { %v3914_v12 = vpop.permute.xlu0 %3913  ;;  %v4015_v22 = vsel %vm698_vm2, %v3958_v58, %v3954_v38 }
 0x9c4   :  { %v3911_v11 = vpop.permute.xlu1 %3910  ;;  %v3966_v31 = vrot.slane %v3914_v12, %v7157_v8 }
 0x9c5   :  { %v3962_v17 = vrot.slane %v3911_v11, %v7157_v8 }
 0x9c7   :  { %v3932_v21 = vpop.permute.xlu0 %3931  ;;  %v4016_v26 = vsel %vm700_vm3, %v3962_v17, %v4015_v22 }
 0x9c8   :  { %v3929_v19 = vpop.permute.xlu1 %3928  ;;  %v3990_v23 = vrot.slane %v3932_v21, %v7157_v8  ;;  %v4017_v28 = vsel %vm702_vm4, %v3966_v31, %v4016_v26 }
 0x9c9   :  { %v3986_v39 = vrot.slane %v3929_v19, %v7157_v8 }
 0x9cb   :  { %v3935_v25 = vpop.permute.xlu0 %3934  ;;  %v4022_v21 = vsel %vm698_vm2, %v3990_v23, %v3986_v39 }
 0x9cc   :  { %v3917_v60 = vpop.permute.xlu1 %3916  ;;  %v3994_v11 = vrot.slane %v3935_v25, %v7157_v8 }
 0x9cd   :  { %v3970_v5 = vrot.slane %v3917_v60, %v7157_v8 }
 0x9ce   :  { %v4023_v25 = vsel %vm700_vm3, %v3994_v11, %v4022_v21 }
 0x9cf   :  { %v3938_v40 = vpop.permute.xlu0 %3937  ;;  %v4018_v12 = vsel %vm704_vm5, %v3970_v5, %v4017_v28 }
 0x9d0   :  { %v3920_v57 = vpop.permute.xlu1 %3919  ;;  %v3998_v58 = vrot.slane %v3938_v40, %v7157_v8 }
 0x9d1   :  { %v3974_v47 = vrot.slane %v3920_v57, %v7157_v8 }
 0x9d2   :  { %v4024_v40 = vsel %vm702_vm4, %v3998_v58, %v4023_v25  ;;  %v6954_v58 = vld [vmem:[%s9661_s20] sm:$0xff] }
 0x9d3   :  { %v3941_v36 = vpop.permute.xlu0 %3940  ;;  %v4019_v17 = vsel %vm706_vm6, %v3974_v47, %v4018_v12 }
 0x9d4   :  { %v3923_v43 = vpop.permute.xlu1 %3922  ;;  %v4002_v57 = vrot.slane %v3941_v36, %v7157_v8 }
 0x9d5   :  { %v3978_v2 = vrot.slane %v3923_v43, %v7157_v8 }
 0x9d6   :  { %v4025_v36 = vsel %vm704_vm5, %v4002_v57, %v4024_v40  ;;  %v6956_v57 = vld [vmem:[%s9631_s15] ss:$0 sm:$0xff] }
 0x9d7   :  { %v3944_v60 = vpop.permute.xlu0 %3943  ;;  %v4020_v31 = vsel %vm708_vm7, %v3978_v2, %v4019_v17  ;;  %v3112_v17 = vadd.f32 %v8750_v35, %v8489_v41 }
 0x9d8   :  { %v3926_v38 = vpop.permute.xlu1 %3925  ;;  %v4006_v22 = vrot.slane %v3944_v60, %v7157_v8 }
 0x9d9   :  { %v3982_v19 = vrot.slane %v3926_v38, %v7157_v8  ;;  %v6955_v38 = vld [vmem:[%s9670_s0] sm:$0xf] }
 0x9da   :  { %v4026_v23 = vsel %vm706_vm6, %v4006_v22, %v4025_v36  ;;  %v4140_v60 = vrot.slane %v6955_v38, %v7160_v9 }
 0x9db   :  { %v4021_v26 = vsel %vm710_vm8, %v3982_v19, %v4020_v31  ;;  %v3950_v43 = vpop.permute.xlu0 %3949  ;;  %v3115_v19 = vadd.f32 %v6956_v57, %v3112_v17  ;;  %v6959_v17 = vld [vmem:[%s9630_s14 + $0x10] sm:$0xff] }
 0x9dc   :  { %v3947_v5 = vpop.permute.xlu1 %3946  ;;  %v4031_v47 = vsel %vm721_vm9, %v4021_v26, 0.0  ;;  %v4014_v39 = vrot.slane %v3950_v43, %v7157_v8 }
 0x9dd   :  { %v4010_v28 = vrot.slane %v3947_v5, %v7157_v8  ;;  %4032 = vadd.xlane.f32.xlu1 %v4031_v47  ;;  %v3116_v21 = vsub.f32 0.0, %v3115_v19  ;;  %v6957_v5 = vld [vmem:[%s9634_s18] ss:$0 sm:$0xff] }
 0x9df   :  { %v4027_v2 = vsel %vm708_vm7, %v4010_v28, %v4026_v23  ;;  %v3117_v22 = vmul.f32 1.442695, %v3116_v21 }
 0x9e0   :  { %v4028_v11 = vsel %vm710_vm8, %v4014_v39, %v4027_v2 }
 0x9e1   :  { %v4034_v12 = vsel %vm721_vm9, %v4028_v11, 0.0  ;;  %6844 = vpow2.f32 %v3117_v22  ;;  %v6958_v11 = vld [vmem:[%s9630_s14 + $0x18] sm:$0xff]  ;;  %v6960_v22 = vld [vmem:[%s9630_s14 + $0x8] sm:$0xff] }
 0x9e2   :  { %4035 = vadd.xlane.f32.xlu0 %v4034_v12 }
 0x9ee   :  { %4770 = vperm.xlu1 %6716, %v6954_v58   ;;  %v6845_v31 = vpop.eup %6844 }
 0x9f2   :  { %6717 = vset.pattern.permute.xlu1 %v9673_v55  ;;  %v3119_v55 = vadd.f32 1.0, %v6845_v31 }
 0x9f4   :  { %6846 = vrcp.f32 %v3119_v55 }
 0x9f8   :  { %4143 = vbcast.lane.b32.xlu0 %v4140_v60, 256 }
 0xa01   :  { %v6847_v43 = vpop.eup %6846 }
 0xa02   :  { %v3268_v36 = vsub.f32 1.0, %v6847_v43  ;;  %v3267_v39 = vmul.f32 %v6847_v43, %v8258_v13 }
 0xa5d   :  { %v3191_v25 = vpop.f32.mrf.mxu0 }
 0xa5e   :  { %v3262_v26 = vadd.f32 %v8752_v29, %v3191_v25 }
 0xa5f   :  { %v6558_v40 = vpop.f32.mrf.mxu0 }
 0xa60   :  { %v3265_v41 = vadd.f32 %v6957_v5, %v3262_v26  ;;  %v6961_v40 = vld [vmem:[%s9630_s14] sm:$0xff] }
 0xa62   :  { %6848 = vtanh.f32 %v3265_v41 }
 0xa66   :  { %v4033_v35 = vpop.xlane.xlu1 %4032 }
 0xa67   :  { %6850 = vrcp.f32 %v4033_v35 }
 0xa6b   :  { %v4036_v47 = vpop.xlane.xlu0 %4035 }
 0xa6c   :  { %6852 = vrcp.f32 %v4036_v47  ;;  %v6962_v47 = vld [vmem:[%s9633_s17 + $0x18] sm:$0xff] }
 0xa6f   :  { %v6849_v28 = vpop.eup %6848  ;;  %v8842_v38 = vpop.permute.xlu0 %4143 }
 0xa70   :  { %v3269_v23 = vmul.f32 %v6849_v28, %v3268_v36 }
 0xa72   :  { %v8824_v2 = vadd.f32 %v3269_v23, %v3267_v39 }
 0xa74   :  { %v8826_v29 = vpop.eup %6850  ;;  %6579 = vmatmul.mubr.msk.f32.vlgmr.msra.gmra.mxu0 %vm1306_vm13, %v8824_v2 }
 0xa75   :  { %6593 = vmatpush3.msra.mxu0 %v6958_v11  ;;  %6600 = vmatprep.mubr.msk.f32.mxu0 %vm7031_vm12, %v9672_v37  ;;  %v4048_v12 = vrot.slane %v8826_v29, %v7154_v7  ;;  %v4044_v13 = vrot.slane %v8826_v29, %v7151_v6  ;;  %v4056_v58 = vrot.slane %v8826_v29, %v7163_v10  ;;  %v6963_v11 = vld [vmem:[%s9633_s17 + $0x10] sm:$0xff] }
 0xa76   :  { %6594 = vmatprep.subr.mxu0 %v9672_v37  ;;  %v4052_v60 = vrot.slane %v8826_v29, %v7160_v9  ;;  %v4060_v43 = vrot.slane %v8826_v29, %v7172_v14  ;;  %v4064_v23 = vrot.slane %v8826_v29, %v7177_v16 }
 0xa77   :  { %6595 = vmatpush3.msra.mxu0 %v6959_v17  ;;  %v4122_v57 = vmul.f32 %v8694_v49, %v4048_v12  ;;  %v4121_v19 = vmul.f32 %v8690_v0, %v4044_v13  ;;  %v4124_v25 = vmul.f32 %v8700_v48, %v4056_v58  ;;  %v4068_v17 = vrot.slane %v8826_v29, %v7349_v30 }
 0xa78   :  { %6596 = vmatprep.subr.mxu0 %v9672_v37  ;;  %v4123_v49 = vmul.f32 %v8704_v59, %v4052_v60  ;;  %v4125_v39 = vmul.f32 %v8716_v52, %v4060_v43  ;;  %v4126_v60 = vmul.f32 %v8722_v20, %v4064_v23 }
 0xa79   :  { %v8852_v21 = vpop.eup %6852  ;;  %6597 = vmatpush3.msra.mxu0 %v6960_v22  ;;  %v4147_v31 = vmul.f32 %v8842_v38, %v4122_v57  ;;  %v4146_v55 = vmul.f32 %v8842_v38, %v4121_v19  ;;  %v4149_v48 = vmul.f32 %v8842_v38, %v4124_v25  ;;  %v6965_v57 = vld [vmem:[%s9633_s17] sm:$0xff] }
 0xa7a   :  { %6598 = vmatprep.subr.mxu0 %v9672_v37  ;;  %v4080_v0 = vrot.slane %v8852_v21, %v7154_v7  ;;  %v4076_v26 = vrot.slane %v8852_v21, %v7151_v6  ;;  %v4084_v5 = vrot.slane %v8852_v21, %v7160_v9  ;;  %v4148_v41 = vmul.f32 %v8842_v38, %v4123_v49 }
 0xa7b   :  { %6599 = vmatpush3.msra.mxu0 %v6961_v40  ;;  %4182 = vperm.xlu0 %6710, %v4147_v31   ;;  %v4088_v28 = vrot.slane %v8852_v21, %v7163_v10  ;;  %v4092_v13 = vrot.slane %v8852_v21, %v7172_v14  ;;  %v4150_v58 = vmul.f32 %v8842_v38, %v4125_v39 }
 0xa7c   :  { %4179 = vperm.xlu1 %6717, %v4146_v55   ;;  %6601 = vmatmul.mubr.msk.f32.vlgmr.msra.gmra.mxu0 %vm1306_vm13, %v8824_v2  ;;  %v4130_v59 = vmul.f32 %v8712_v50, %v4080_v0  ;;  %v4129_v35 = vmul.f32 %v8709_v51, %v4076_v26  ;;  %v4131_v36 = vmul.f32 %v8718_v61, %v4084_v5  ;;  %v6964_v61 = vld [vmem:[%s9633_s17 + $0x8] sm:$0xff] }
 0xa7d   :  { %6614 = vmatprep.subr.mxu0 %v9672_v37  ;;  %6622 = vmatprep.mubr.msk.f32.mxu0 %vm7031_vm12, %v9672_v37  ;;  %v4132_v12 = vmul.f32 %v8724_v18, %v4088_v28  ;;  %v4133_v19 = vmul.f32 %v8730_v3, %v4092_v13  ;;  %v4096_v22 = vrot.slane %v8852_v21, %v7177_v16  ;;  %v6969_v28 = vld [vmem:[%s9663_s30] ss:$0 sm:$0xff]  ;;  %v6972_v13 = vld [vmem:[%s9663_s30 + $0x1] ss:$0 sm:$0xff] }
 0xa7e   :  { %6615 = vmatpush3.msra.mxu0 %v6962_v47  ;;  %v4155_v50 = vmul.f32 %v8842_v38, %v4130_v59  ;;  %v4154_v51 = vmul.f32 %v8842_v38, %v4129_v35  ;;  %v4156_v52 = vmul.f32 %v8842_v38, %v4131_v36  ;;  %v4151_v20 = vmul.f32 %v8842_v38, %v4126_v60 }
 0xa7f   :  { %4188 = vperm.xlu0 %6710, %v4149_v48   ;;  %6616 = vmatprep.subr.mxu0 %v9672_v37  ;;  %v4157_v18 = vmul.f32 %v8842_v38, %v4132_v12  ;;  %v4127_v31 = vmul.f32 %v8728_v44, %v4068_v17  ;;  %v4072_v55 = vrot.slane %v8826_v29, %v7336_v15  ;;  %v4771_v44 = vpop.permute.xlu1 %4770 }
 0xa80   :  { %4185 = vperm.xlu1 %6717, %v4148_v41   ;;  %6617 = vmatpush3.msra.mxu0 %v6963_v11  ;;  %v4158_v25 = vmul.f32 %v8842_v38, %v4133_v19  ;;  %v4134_v49 = vmul.f32 %v8736_v53, %v4096_v22  ;;  %v4104_v0 = vrot.slane %v8852_v21, %v7336_v15  ;;  %v6966_v53 = vld [vmem:[%s9621_s5] ss:$0 sm:$0xff] }
 0xa81   :  { %6618 = vmatprep.subr.mxu0 %v9672_v37  ;;  %v4152_v3 = vmul.f32 %v8842_v38, %v4127_v31  ;;  %v4128_v26 = vmul.f32 %v8734_v62, %v4072_v55  ;;  %v4100_v40 = vrot.slane %v8852_v21, %v7349_v30  ;;  %v4777_v59 = vmul.f32 %v6966_v53, %v4771_v44  ;;  %v6967_v21 = vld [vmem:[%s9622_s6] ss:$0 sm:$0xff] }
 0xa82   :  { %6619 = vmatpush3.msra.mxu0 %v6964_v61  ;;  %v4159_v29 = vmul.f32 %v8842_v38, %v4134_v49  ;;  %v4136_v48 = vmul.f32 %v8742_v45, %v4104_v0  ;;  %v6971_v61 = vld [vmem:[%s9620_s4] ss:$0 sm:$0xff] }
 0xa83   :  { %4206 = vperm.xlu0 %6710, %v4155_v50   ;;  %6620 = vmatprep.subr.mxu0 %v9672_v37  ;;  %v4153_v5 = vmul.f32 %v8842_v38, %v4128_v26  ;;  %v4135_v41 = vmul.f32 %v8740_v33, %v4100_v40  ;;  %v4779_v35 = vadd.f32 %v6967_v21, %v4777_v59  ;;  %v6968_v33 = vld [vmem:[%s9621_s5 + $0x1] ss:$0 sm:$0xff] }
 0xa84   :  { %4203 = vperm.xlu1 %6717, %v4154_v51   ;;  %6621 = vmatpush3.msra.mxu0 %v6965_v57  ;;  %v4161_v62 = vmul.f32 %v8842_v38, %v4136_v48  ;;  %v4778_v50 = vmul.f32 %v6968_v33, %v4771_v44  ;;  %v4773_v51 = vmul.f32 %v6969_v28, %v4771_v44 }
 0xa85   :  { %6636 = vmatprep.subr.mxu0 %v9672_v37  ;;  %v4160_v45 = vmul.f32 %v8842_v38, %v4135_v41  ;;  %v4790_v43 = vrot.slane %v4779_v35, %v7200_v27  ;;  %v6970_v38 = vld [vmem:[%s9622_s6 + $0x1] ss:$0 sm:$0xff]  ;;  %v4783_v17 = vcombine.high %v4779_v35, %v4779_v35 }
 0xa86   :  { %v4780_v23 = vadd.f32 %v6970_v38, %v4778_v50 }
 0xa87   :  { %4209 = vperm.xlu0 %6710, %v4156_v52   ;;  %v4798_v47 = vcombine.high %v4790_v43, %v4790_v43  ;;  %v4806_v36 = vrot.slane %v4790_v43, %v7200_v27  ;;  %v8957_v52 = vadd.f32 %v6971_v61, %v4773_v51 }
 0xa88   :  { %4191 = vperm.xlu1 %6717, %v4150_v58   ;;  %v4774_v58 = vmul.f32 %v6972_v13, %v4771_v44  ;;  %v4839_v60 = vrot.slane %v4780_v23, %v7200_v27  ;;  %v4832_v35 = vcombine.high %v4780_v23, %v4780_v23 }
 0xa89   :  { %v4820_v39 = vrot.slane %v4798_v47, %v7200_v27  ;;  %v4828_v11 = vcombine.high %v4806_v36, %v4806_v36  ;;  %v4884_v19 = vrot.slane %v4806_v36, %v7151_v6  ;;  %v8988_v36 = vld [vmem:[%s9623_s7] ss:$0 sm:$0xff] }
 0xa8a   :  { %v4855_v57 = vrot.slane %v4839_v60, %v7200_v27  ;;  %v4847_v0 = vcombine.high %v4839_v60, %v4839_v60  ;;  %v4846_v61 = vrot.slane %v4832_v35, %v7200_v27 }
 0xa8b   :  { %4212 = vperm.xlu0 %6710, %v4157_v18   ;;  %v4888_v12 = vrot.slane %v4820_v39, %v7151_v6  ;;  %v4892_v18 = vrot.slane %v4828_v11, %v7151_v6  ;;  %v4830_v49 = vcombine.high %v4820_v39, %v4820_v39  ;;  %v4961_v26 = vadd.f32 %v4884_v19, %v8957_v52 }
 0xa8c   :  { %4194 = vperm.xlu1 %6717, %v4151_v20   ;;  %v6973_v20 = vld [vmem:[%s9620_s4 + $0x1] ss:$0 sm:$0xff]  ;;  %v4916_v55 = vrot.slane %v4855_v57, %v7151_v6  ;;  %v4877_v47 = vcombine.high %v4855_v57, %v4855_v57 }
 0xa8d   :  { %v4962_v22 = vadd.f32 %v4888_v12, %v8957_v52  ;;  %v8971_v31 = vadd.f32 %v6973_v20, %v4774_v58  ;;  %v4896_v53 = vrot.slane %v4830_v49, %v7151_v6  ;;  %vm4977_vm10 = vcmp.gt.f32.partialorder %v4961_v26, 0.0 }
 0xa8e   :  { %v4924_v58 = vrot.slane %v4877_v47, %v7151_v6  ;;  %v4862_v49 = vrot.slane %v4846_v61, %v7200_v27 }
 0xa8f   :  { %4215 = vperm.xlu0 %6710, %v4158_v25   ;;  %v4797_v25 = vrot.slane %v4783_v17, %v7200_v27  ;;  %v4994_v40 = vmul.f32 0.2, %v4962_v22  ;;  %vm4978_vm15 = vcmp.gt.f32.partialorder %v4962_v22, 0.0  ;;  %v4969_v44 = vadd.f32 %v4916_v55, %v8971_v31 }
 0xa90   :  { %4197 = vperm.xlu1 %6717, %v4152_v3   ;;  %v4963_v3 = vadd.f32 %v4892_v18, %v8957_v52  ;;  %v4964_v33 = vadd.f32 %v4896_v53, %v8957_v52  ;;  %v9009_v53 = vld [vmem:[%s9623_s7 + $0x1] ss:$0 sm:$0xff]  ;;  %v4878_v35 = vcombine.high %v4862_v49, %v4862_v49 }
 0xa91   :  { %v4799_v48 = vcombine.high %v4797_v25, %v4797_v25  ;;  %v5010_v21 = vsel %vm4978_vm15, %v4962_v22, %v4994_v40  ;;  %vm4985_vm11 = vcmp.gt.f32.partialorder %v4969_v44, 0.0 }
 0xa92   :  { %v4995_v59 = vmul.f32 0.2, %v4963_v3  ;;  %vm4979_vm1 = vcmp.gt.f32.partialorder %v4963_v3, 0.0  ;;  %v5026_v28 = vmul.f32 %v8988_v36, %v5010_v21  ;;  %v4996_v57 = vmul.f32 0.2, %v4964_v33 }
 0xa93   :  { %4218 = vperm.xlu0 %6710, %v4159_v29   ;;  %v4813_v29 = vrot.slane %v4797_v25, %v7200_v27  ;;  %v4827_v50 = vrot.slane %v4799_v48, %v7200_v27  ;;  %vm4980_vm14 = vcmp.gt.f32.partialorder %v4964_v33, 0.0 }
 0xa94   :  { %4200 = vperm.xlu1 %6717, %v4153_v5   ;;  %v4993_v5 = vmul.f32 0.2, %v4961_v26  ;;  %v5011_v51 = vsel %vm4979_vm1, %v4963_v3, %v4995_v59  ;;  %v5044_v19 = vsel %vm438_vm0, %v5026_v28, 0.0  ;;  %v4971_v3 = vadd.f32 %v4924_v58, %v8971_v31 }
 0xa95   :  { %v4900_v41 = vrot.slane %v4813_v29, %v7151_v6  ;;  %v4904_v23 = vrot.slane %v4827_v50, %v7151_v6  ;;  %v4829_v11 = vcombine.high %v4813_v29, %v4813_v29  ;;  %v5027_v60 = vmul.f32 %v8988_v36, %v5011_v51 }
 0xa96   :  { %v5009_v39 = vsel %vm4977_vm10, %v4961_v26, %v4993_v5  ;;  %v4831_v25 = vcombine.high %v4827_v50, %v4827_v50  ;;  %v4848_v26 = vcombine.high %v4846_v61, %v4846_v61  ;;  %v5012_v40 = vsel %vm4980_vm14, %v4964_v33, %v4996_v57 }
 0xa97   :  { %4224 = vperm.xlu0 %6710, %v4161_v62   ;;  %v4869_v62 = vrot.slane %v4847_v0, %v7200_v27  ;;  %v4965_v38 = vadd.f32 %v4900_v41, %v8957_v52  ;;  %v5025_v17 = vmul.f32 %v8988_v36, %v5009_v39  ;;  %v4966_v20 = vadd.f32 %v4904_v23, %v8957_v52 }
 0xa98   :  { %4221 = vperm.xlu1 %6717, %v4160_v45   ;;  %v5001_v45 = vmul.f32 0.2, %v4969_v44  ;;  %v4908_v55 = vrot.slane %v4829_v11, %v7151_v6  ;;  %v5047_v29 = vsel %vm438_vm0, %v5027_v60, 0.0  ;;  %v4912_v21 = vrot.slane %v4831_v25, %v7151_v6 }
 0xa99   :  { %v4920_v43 = vrot.slane %v4869_v62, %v7151_v6  ;;  %v4879_v18 = vcombine.high %v4869_v62, %v4869_v62  ;;  %vm4981_vm15 = vcmp.gt.f32.partialorder %v4965_v38, 0.0  ;;  %v4997_v22 = vmul.f32 0.2, %v4965_v38 }
 0xa9a   :  { %v5017_v12 = vsel %vm4985_vm11, %v4969_v44, %v5001_v45  ;;  %v5041_v48 = vsel %vm438_vm0, %v5025_v17, 0.0  ;;  %v4998_v41 = vmul.f32 0.2, %v4966_v20  ;;  %v4967_v62 = vadd.f32 %v4908_v55, %v8957_v52 }
 0xa9b   :  { %v4970_v13 = vadd.f32 %v4920_v43, %v8971_v31  ;;  %v4928_v44 = vrot.slane %v4879_v18, %v7151_v6  ;;  %v5033_v59 = vmul.f32 %v9009_v53, %v5017_v12  ;;  %v5013_v5 = vsel %vm4981_vm15, %v4965_v38, %v4997_v22 }
 0xa9c   :  { %v5028_v45 = vmul.f32 %v8988_v36, %v5012_v40  ;;  %vm4982_vm10 = vcmp.gt.f32.partialorder %v4966_v20, 0.0  ;;  %v5003_v47 = vmul.f32 0.2, %v4971_v3  ;;  %vm4987_vm11 = vcmp.gt.f32.partialorder %v4971_v3, 0.0 }
 0xa9d   :  { %v5002_v0 = vmul.f32 0.2, %v4970_v13  ;;  %vm4986_vm1 = vcmp.gt.f32.partialorder %v4970_v13, 0.0  ;;  %v4972_v33 = vadd.f32 %v4928_v44, %v8971_v31  ;;  %v4932_v50 = vrot.slane %v4862_v49, %v7151_v6 }
 0xa9e   :  { %v4876_v28 = vrot.slane %v4848_v26, %v7200_v27  ;;  %v5065_v51 = vsel %vm438_vm0, %v5033_v59, 0.0  ;;  %v5029_v39 = vmul.f32 %v8988_v36, %v5013_v5  ;;  %v5014_v38 = vsel %vm4982_vm10, %v4966_v20, %v4998_v41 }
 0xa9f   :  { %v5018_v43 = vsel %vm4986_vm1, %v4970_v13, %v5002_v0  ;;  %v4999_v23 = vmul.f32 0.2, %v4967_v62  ;;  %v4968_v11 = vadd.f32 %v4912_v21, %v8957_v52  ;;  %v4940_v61 = vrot.slane %v4878_v35, %v7151_v6 }
 0xaa0   :  { %v5050_v12 = vsel %vm438_vm0, %v5028_v45, 0.0  ;;  %v5034_v13 = vmul.f32 %v9009_v53, %v5018_v43  ;;  %v5019_v58 = vsel %vm4987_vm11, %v4971_v3, %v5003_v47  ;;  %vm4983_vm14 = vcmp.gt.f32.partialorder %v4967_v62, 0.0 }
 0xaa1   :  { %v5004_v60 = vmul.f32 0.2, %v4972_v33  ;;  %v4973_v27 = vadd.f32 %v4932_v50, %v8971_v31  ;;  %v4936_v17 = vrot.slane %v4876_v28, %v7151_v6  ;;  %v4880_v57 = vcombine.high %v4876_v28, %v4876_v28 }
 0xaa2   :  { %v5053_v18 = vsel %vm438_vm0, %v5029_v39, 0.0  ;;  %vm4988_vm15 = vcmp.gt.f32.partialorder %v4972_v33, 0.0  ;;  %v5015_v52 = vsel %vm4983_vm14, %v4967_v62, %v4999_v23  ;;  %v5000_v22 = vmul.f32 0.2, %v4968_v11 }
 0xaa3   :  { %v4975_v20 = vadd.f32 %v4940_v61, %v8971_v31  ;;  %v5068_v55 = vsel %vm438_vm0, %v5034_v13, 0.0  ;;  %v5035_v25 = vmul.f32 %v9009_v53, %v5019_v58  ;;  %vm4984_vm1 = vcmp.gt.f32.partialorder %v4968_v11, 0.0 }
 0xaa4   :  { %v5020_v49 = vsel %vm4988_vm15, %v4972_v33, %v5004_v60  ;;  %v5005_v0 = vmul.f32 0.2, %v4973_v27  ;;  %v4974_v3 = vadd.f32 %v4936_v17, %v8971_v31  ;;  %v4944_v26 = vrot.slane %v4880_v57, %v7151_v6 }
 0xaa5   :  { %v5031_v44 = vmul.f32 %v8988_v36, %v5015_v52  ;;  %vm4989_vm10 = vcmp.gt.f32.partialorder %v4973_v27, 0.0  ;;  %v5071_v59 = vsel %vm438_vm0, %v5035_v25, 0.0  ;;  %v5036_v5 = vmul.f32 %v9009_v53, %v5020_v49 }
 0xaa6   :  { %vm4991_vm11 = vcmp.gt.f32.partialorder %v4975_v20, 0.0  ;;  %v5021_v41 = vsel %vm4989_vm10, %v4973_v27, %v5005_v0  ;;  %v5006_v62 = vmul.f32 0.2, %v4974_v3  ;;  %v4976_v21 = vadd.f32 %v4944_v26, %v8971_v31 }
 0xaa7   :  { %v5059_v35 = vsel %vm438_vm0, %v5031_v44, 0.0  ;;  %vm4990_vm14 = vcmp.gt.f32.partialorder %v4974_v3, 0.0  ;;  %v5074_v47 = vsel %vm438_vm0, %v5036_v5, 0.0  ;;  %v5037_v33 = vmul.f32 %v9009_v53, %v5021_v41 }
 0xaa8   :  { %v5022_v50 = vsel %vm4990_vm14, %v4974_v3, %v5006_v62  ;;  %v5008_v28 = vmul.f32 0.2, %v4976_v21  ;;  %vm4992_vm15 = vcmp.gt.f32.partialorder %v4976_v21, 0.0 }
 0xaa9   :  { %v5077_v31 = vsel %vm438_vm0, %v5037_v33, 0.0 }
 0xab6   :  { %5045 = vadd.xlane.f32.xlu0 %v5044_v19  ;;  %v5030_v19 = vmul.f32 %v8988_v36, %v5014_v38  ;;  %v5024_v38 = vsel %vm4992_vm15, %v4976_v21, %v5008_v28 }
 0xab7   :  { %v5040_v61 = vmul.f32 %v9009_v53, %v5024_v38 }
 0xab8   :  { %v5056_v40 = vsel %vm438_vm0, %v5030_v19, 0.0 }
 0xaba   :  { %5048 = vadd.xlane.f32.xlu0 %v5047_v29  ;;  %v5016_v29 = vsel %vm4984_vm1, %v4968_v11, %v5000_v22 }
 0xabb   :  { %v5032_v45 = vmul.f32 %v8988_v36, %v5016_v29  ;;  %v5038_v36 = vmul.f32 %v9009_v53, %v5022_v50 }
 0xabc   :  { %5042 = vadd.xlane.f32.xlu1 %v5041_v48  ;;  %v5007_v48 = vmul.f32 0.2, %v4975_v20 }
 0xabd   :  { %v5080_v11 = vsel %vm438_vm0, %v5038_v36, 0.0 }
 0xabe   :  { %5066 = vadd.xlane.f32.xlu0 %v5065_v51  ;;  %v5023_v43 = vsel %vm4991_vm11, %v4975_v20, %v5007_v48  ;;  %v5062_v51 = vsel %vm438_vm0, %v5032_v45, 0.0 }
 0xabf   :  { %v5039_v39 = vmul.f32 %v9009_v53, %v5023_v43 }
 0xac0   :  { %5051 = vadd.xlane.f32.xlu1 %v5050_v12  ;;  %v5086_v12 = vsel %vm438_vm0, %v5040_v61, 0.0 }
 0xac1   :  { %v5083_v23 = vsel %vm438_vm0, %v5039_v39, 0.0 }
 0xac2   :  { %5054 = vadd.xlane.f32.xlu0 %v5053_v18 }
 0xac4   :  { %5069 = vadd.xlane.f32.xlu1 %v5068_v55 }
 0xac6   :  { %5057 = vadd.xlane.f32.xlu0 %v5056_v40 }
 0xac8   :  { %5072 = vadd.xlane.f32.xlu1 %v5071_v59 }
 0xaca   :  { %5060 = vadd.xlane.f32.xlu0 %v5059_v35 }
 0xacc   :  { %5075 = vadd.xlane.f32.xlu1 %v5074_v47 }
 0xace   :  { %5063 = vadd.xlane.f32.xlu0 %v5062_v51 }
 0xad0   :  { %5078 = vadd.xlane.f32.xlu1 %v5077_v31 }
 0xad2   :  { %5084 = vadd.xlane.f32.xlu0 %v5083_v23 }
 0xad4   :  { %5081 = vadd.xlane.f32.xlu1 %v5080_v11 }
 0xad8   :  { %5087 = vadd.xlane.f32.xlu1 %v5086_v12 }
 0xaf6   :  { %v4183_v27 = vpop.permute.xlu0 %4182 }
 0xaf7   :  { %v4180_v13 = vpop.permute.xlu1 %4179  ;;  %v4233_v57 = vrot.slane %v4183_v27, %v7157_v8 }
 0xaf8   :  { %v4229_v18 = vrot.slane %v4180_v13, %v7157_v8 }
 0xafa   :  { %v4189_v19 = vpop.permute.xlu0 %4188  ;;  %v4290_v53 = vsel %vm698_vm2, %v4233_v57, %v4229_v18 }
 0xafb   :  { %v4186_v58 = vpop.permute.xlu1 %4185  ;;  %v4241_v20 = vrot.slane %v4189_v19, %v7157_v8 }
 0xafc   :  { %v4237_v52 = vrot.slane %v4186_v58, %v7157_v8 }
 0xafe   :  { %v4291_v55 = vsel %vm700_vm3, %v4237_v52, %v4290_v53  ;;  %v4207_v62 = vpop.permute.xlu0 %4206 }
 0xaff   :  { %v9051_v60 = vpop.permute.xlu1 %4203  ;;  %v4292_v26 = vsel %vm702_vm4, %v4241_v20, %v4291_v55 }
 0xb02   :  { %v4210_v21 = vpop.permute.xlu0 %4209 }
 0xb03   :  { %v4192_v17 = vpop.permute.xlu1 %4191 }
 0xb04   :  { %v4245_v25 = vrot.slane %v4192_v17, %v7157_v8 }
 0xb06   :  { %v4293_v40 = vsel %vm704_vm5, %v4245_v25, %v4292_v26  ;;  %v4213_v35 = vpop.permute.xlu0 %4212 }
 0xb07   :  { %v4195_v22 = vpop.permute.xlu1 %4194  ;;  %v4273_v20 = vrot.slane %v4213_v35, %v7157_v8 }
 0xb08   :  { %v4249_v0 = vrot.slane %v4195_v22, %v7157_v8  ;;  %v4265_v22 = vrot.slane %v4207_v62, %v7157_v8 }
 0xb0a   :  { %v4294_v29 = vsel %vm706_vm6, %v4249_v0, %v4293_v40  ;;  %v4216_v45 = vpop.permute.xlu0 %4215 }
 0xb0b   :  { %v4198_v49 = vpop.permute.xlu1 %4197 }
 0xb0c   :  { %v4253_v3 = vrot.slane %v4198_v49, %v7157_v8 }
 0xb0e   :  { %v4295_v59 = vsel %vm708_vm7, %v4253_v3, %v4294_v29  ;;  %v4219_v47 = vpop.permute.xlu0 %4218 }
 0xb0f   :  { %v4201_v44 = vpop.permute.xlu1 %4200  ;;  %v4281_v49 = vrot.slane %v4219_v47, %v7157_v8 }
 0xb10   :  { %v4257_v48 = vrot.slane %v4201_v44, %v7157_v8 }
 0xb12   :  { %v4296_v5 = vsel %vm710_vm8, %v4257_v48, %v4295_v59  ;;  %v4225_v50 = vpop.permute.xlu0 %4224 }
 0xb13   :  { %v4306_v41 = vsel %vm721_vm9, %v4296_v5, 0.0  ;;  %v4222_v36 = vpop.permute.xlu1 %4221  ;;  %v4289_v48 = vrot.slane %v4225_v50, %v7157_v8 }
 0xb14   :  { %4307 = vadd.xlane.f32.xlu0 %v4306_v41  ;;  %v4285_v3 = vrot.slane %v4222_v36, %v7157_v8 }
 0xb34   :  { %v9069_v43 = vpop.f32.mrf.mxu0 }
 0xb36   :  { %v6580_v33 = vpop.f32.mrf.mxu0 }
 0xb3c   :  { %v9071_v28 = vpop.f32.mrf.mxu0 }
 0xb3e   :  { %v6602_v51 = vpop.f32.mrf.mxu0 }
 0xb3f   :  { %v5046_v39 = vpop.xlane.xlu0 %5045 }
 0xb40   :  { %v9074_v31 = vadd.f32 %v5046_v39, %v7353_v32 }
 0xb42   :  { %5125 = vperm.xlu1 %6717, %v9074_v31  }
 0xb43   :  { %v5049_v38 = vpop.xlane.xlu0 %5048 }
 0xb44   :  { %v9078_v23 = vadd.f32 %v5049_v38, %v7357_v34 }
 0xb45   :  { %v5043_v11 = vpop.xlane.xlu1 %5042 }
 0xb46   :  { %v9081_v61 = vadd.f32 %v5043_v11, %v9674_v1  ;;  %5128 = vperm.xlu1 %6717, %v9078_v23  }
 0xb48   :  { %5122 = vperm.xlu0 %6710, %v9081_v61  }
 0xb49   :  { %v5052_v12 = vpop.xlane.xlu1 %5051 }
 0xb4a   :  { %v9086_v13 = vadd.f32 %v5052_v12, %v9675_v46 }
 0xb4c   :  { %5131 = vperm.xlu0 %6710, %v9086_v13  }
 0xb4d   :  { %v5070_v58 = vpop.xlane.xlu1 %5069 }
 0xb4e   :  { %v9090_v27 = vadd.f32 %v5070_v58, %v7353_v32  ;;  %v4261_v32 = vrot.slane %v9051_v60, %v7157_v8 }
 0xb50   :  { %5149 = vperm.xlu0 %6710, %v9090_v27   ;;  %v4297_v25 = vsel %vm698_vm2, %v4265_v22, %v4261_v32 }
 0xb51   :  { %v5073_v17 = vpop.xlane.xlu1 %5072 }
 0xb52   :  { %v9094_v57 = vadd.f32 %v5073_v17, %v7357_v34  ;;  %v4269_v34 = vrot.slane %v4210_v21, %v7157_v8  ;;  %v5067_v21 = vpop.xlane.xlu0 %5066 }
 0xb53   :  { %v9131_v47 = vadd.f32 %v5067_v21, %v9674_v1 }
 0xb54   :  { %5152 = vperm.xlu0 %6710, %v9094_v57   ;;  %v4298_v60 = vsel %vm700_vm3, %v4269_v34, %v4297_v25 }
 0xb55   :  { %v5076_v18 = vpop.xlane.xlu1 %5075  ;;  %v4299_v26 = vsel %vm702_vm4, %v4273_v20, %v4298_v60 }
 0xb56   :  { %v9098_v19 = vadd.f32 %v5076_v18, %v9675_v46  ;;  %v4277_v46 = vrot.slane %v4216_v45, %v7157_v8  ;;  %v5055_v35 = vpop.xlane.xlu0 %5054 }
 0xb57   :  { %v9135_v33 = vadd.f32 %v5055_v35, %v9676_v63 }
 0xb58   :  { %5155 = vperm.xlu0 %6710, %v9098_v19   ;;  %v4300_v40 = vsel %vm704_vm5, %v4277_v46, %v4299_v26 }
 0xb59   :  { %v5079_v52 = vpop.xlane.xlu1 %5078  ;;  %v4301_v29 = vsel %vm706_vm6, %v4281_v49, %v4300_v40 }
 0xb5a   :  { %v9105_v53 = vadd.f32 %v5079_v52, %v9676_v63  ;;  %v4302_v5 = vsel %vm708_vm7, %v4285_v3, %v4301_v29  ;;  %v5058_v45 = vpop.xlane.xlu0 %5057 }
 0xb5b   :  { %v4303_v41 = vsel %vm710_vm8, %v4289_v48, %v4302_v5  ;;  %v9139_v51 = vadd.f32 %v5058_v45, %v9677_v42 }
 0xb5c   :  { %5158 = vperm.xlu0 %6710, %v9105_v53   ;;  %v4309_v62 = vsel %vm721_vm9, %v4303_v41, 0.0 }
 0xb5d   :  { %v5082_v55 = vpop.xlane.xlu1 %5081 }
 0xb5e   :  { %v9114_v0 = vadd.f32 %v5082_v55, %v9677_v42  ;;  %v5061_v50 = vpop.xlane.xlu0 %5060 }
 0xb5f   :  { %v9143_v36 = vadd.f32 %v5061_v50, %v9679_v4 }
 0xb60   :  { %5161 = vperm.xlu0 %6710, %v9114_v0  }
 0xb61   :  { %v5088_v44 = vpop.xlane.xlu1 %5087 }
 0xb62   :  { %v9124_v59 = vadd.f32 %v5088_v44, %v9678_v54  ;;  %v5064_v39 = vpop.xlane.xlu0 %5063 }
 0xb63   :  { %v9147_v1 = vadd.f32 %v5064_v39, %v9678_v54  ;;  %v9158_v54 = vld [vmem:[%s9625_s9] ss:$0 sm:$0xff] }
 0xb64   :  { %5167 = vperm.xlu0 %6710, %v9124_v59  }
 0xb66   :  { %v5085_v38 = vpop.xlane.xlu0 %5084 }
 0xb67   :  { %v9151_v63 = vadd.f32 %v5085_v38, %v9679_v4 }
 0xb6a   :  { %4310 = vadd.xlane.f32.xlu1 %v4309_v62 }
 0xb7b   :  { %5146 = vperm.xlu1 %6717, %v9131_v47  }
 0xb7f   :  { %5134 = vperm.xlu1 %6717, %v9135_v33  }
 0xb83   :  { %5137 = vperm.xlu1 %6717, %v9139_v51  }
 0xb87   :  { %5140 = vperm.xlu1 %6717, %v9143_v36  }
 0xb8b   :  { %5143 = vperm.xlu1 %6717, %v9147_v1  }
 0xb8f   :  { %5164 = vperm.xlu1 %6717, %v9151_v63  }
 0xb9d   :  { %v4308_v42 = vpop.xlane.xlu0 %4307 }
 0xb9e   :  { %v4312_v52 = vmul.f32 %v4308_v42, %v9680_v24 }
 0xba0   :  { %v4313_v4 = vadd.f32 %v9158_v54, %v4312_v52 }
 0xbbd   :  { %v5126_v58 = vpop.permute.xlu1 %5125 }
 0xbbe   :  { %v5176_v48 = vrot.slane %v5126_v58, %v7157_v8 }
 0xbc1   :  { %v5129_v18 = vpop.permute.xlu1 %5128 }
 0xbc2   :  { %v5180_v35 = vrot.slane %v5129_v18, %v7157_v8 }
 0xbc3   :  { %v5123_v11 = vpop.permute.xlu0 %5122 }
 0xbc4   :  { %v5172_v26 = vrot.slane %v5123_v11, %v7157_v8 }
 0xbc6   :  { %v5233_v41 = vsel %vm698_vm2, %v5176_v48, %v5172_v26 }
 0xbc7   :  { %v5132_v12 = vpop.permute.xlu0 %5131  ;;  %v5234_v11 = vsel %vm700_vm3, %v5180_v35, %v5233_v41  ;;  %v9198_v35 = vld [vmem:[%s9629_s13 + $0x18] sm:$0xff] }
 0xbc8   :  { %v5184_v62 = vrot.slane %v5132_v12, %v7157_v8 }
 0xbca   :  { %v5235_v12 = vsel %vm702_vm4, %v5184_v62, %v5234_v11  ;;  %v9245_v11 = vld [vmem:[%s9632_s16 + $0x8] sm:$0xff] }
 0xbcb   :  { %v5150_v17 = vpop.permute.xlu0 %5149 }
 0xbcc   :  { %v5208_v44 = vrot.slane %v5150_v17, %v7157_v8 }
 0xbcf   :  { %v5153_v22 = vpop.permute.xlu0 %5152 }
 0xbd0   :  { %v5212_v21 = vrot.slane %v5153_v22, %v7157_v8 }
 0xbd3   :  { %v5156_v55 = vpop.permute.xlu0 %5155 }
 0xbd4   :  { %v5216_v58 = vrot.slane %v5156_v55, %v7157_v8 }
 0xbd7   :  { %v5159_v40 = vpop.permute.xlu0 %5158 }
 0xbdb   :  { %v5162_v39 = vpop.permute.xlu0 %5161 }
 0xbf3   :  { %v4311_v32 = vpop.xlane.xlu1 %4310 }
 0xbf4   :  { %v4314_v34 = vmul.f32 %v4311_v32, %v7991_v56  ;;  %v5220_v32 = vrot.slane %v5159_v40, %v7157_v8 }
 0xbf6   :  { %v4315_v20 = vadd.f32 %v4314_v34, %v4313_v4 }
 0xbf7   :  { %v5147_v46 = vpop.permute.xlu1 %5146 }
 0xbf8   :  { %v4316_v25 = vsub.f32 0.0, %v4315_v20  ;;  %v5204_v3 = vrot.slane %v5147_v46, %v7157_v8 }
 0xbfa   :  { %v4317_v49 = vmul.f32 1.442695, %v4316_v25  ;;  %v5240_v5 = vsel %vm698_vm2, %v5208_v44, %v5204_v3  ;;  %v5168_v25 = vpop.permute.xlu0 %5167  ;;  %v5224_v3 = vrot.slane %v5162_v39, %v7157_v8  ;;  %v9221_v39 = vld [vmem:[%s9629_s13] sm:$0xff] }
 0xbfb   :  { %v5135_v60 = vpop.permute.xlu1 %5134  ;;  %v5241_v38 = vsel %vm700_vm3, %v5212_v21, %v5240_v5 }
 0xbfc   :  { %6854 = vpow2.f32 %v4317_v49  ;;  %v5188_v45 = vrot.slane %v5135_v60, %v7157_v8  ;;  %v5242_v52 = vsel %vm702_vm4, %v5216_v58, %v5241_v38  ;;  %v9229_v38 = vld [vmem:[%s9632_s16 + $0x18] sm:$0xff]  ;;  %v9252_v58 = vld [vmem:[%s9632_s16] sm:$0xff] }
 0xbfd   :  { %v5243_v60 = vsel %vm704_vm5, %v5220_v32, %v5242_v52  ;;  %v6987_v52 = vld [vmem:[%s9626_s10 + $0x8] sm:$0xff] }
 0xbfe   :  { %v5236_v18 = vsel %vm704_vm5, %v5188_v45, %v5235_v12  ;;  %v5244_v48 = vsel %vm706_vm6, %v5224_v3, %v5243_v60  ;;  %v9207_v45 = vld [vmem:[%s9629_s13 + $0x10] sm:$0xff] }
 0xbff   :  { %v5138_v29 = vpop.permute.xlu1 %5137  ;;  %v6986_v12 = vld [vmem:[%s9626_s10 + $0x10] sm:$0xff] }
 0xc00   :  { %v5192_v42 = vrot.slane %v5138_v29, %v7157_v8  ;;  %v5232_v29 = vrot.slane %v5168_v25, %v7157_v8 }
 0xc02   :  { %v5237_v4 = vsel %vm706_vm6, %v5192_v42, %v5236_v18  ;;  %v9238_v42 = vld [vmem:[%s9632_s16 + $0x10] sm:$0xff]  ;;  %v6988_v18 = vld [vmem:[%s9626_s10] sm:$0xff] }
 0xc03   :  { %v5141_v50 = vpop.permute.xlu1 %5140 }
 0xc04   :  { %v5196_v17 = vrot.slane %v5141_v50, %v7157_v8  ;;  %v9214_v50 = vld [vmem:[%s9629_s13 + $0x8] sm:$0xff] }
 0xc06   :  { %v5238_v46 = vsel %vm708_vm7, %v5196_v17, %v5237_v4  ;;  %v6985_v17 = vld [vmem:[%s9626_s10 + $0x18] sm:$0xff] }
 0xc07   :  { %v5144_v22 = vpop.permute.xlu1 %5143 }
 0xc08   :  { %v5200_v34 = vrot.slane %v5144_v22, %v7157_v8 }
 0xc09   :  { %v6855_v20 = vpop.eup %6854 }
 0xc0a   :  { %v4319_v55 = vadd.f32 1.0, %v6855_v20  ;;  %v5239_v49 = vsel %vm710_vm8, %v5200_v34, %v5238_v46 }
 0xc0b   :  { %v5165_v26 = vpop.permute.xlu1 %5164  ;;  %v5249_v44 = vsel %vm721_vm9, %v5239_v49, -inf }
 0xc0c   :  { %6856 = vrcp.f32 %v4319_v55  ;;  %v5228_v40 = vrot.slane %v5165_v26, %v7157_v8  ;;  %5250 = vmax.xlane.f32.xlu1 %v5249_v44 }
 0xc0e   :  { %v5245_v5 = vsel %vm708_vm7, %v5228_v40, %v5244_v48 }
 0xc0f   :  { %v5246_v41 = vsel %vm710_vm8, %v5232_v29, %v5245_v5 }
 0xc10   :  { %v5252_v62 = vsel %vm721_vm9, %v5246_v41, -inf }
 0xc11   :  { %5253 = vmax.xlane.f32.xlu0 %v5252_v62 }
 0xc19   :  { %v6857_v21 = vpop.eup %6856 }
 0xc1a   :  { %6590 = vmatmul.mubr.msk.f32.vlgmr.msra.gmra.mxu1 %vm1306_vm13, %v6857_v21 }
 0xc1b   :  { %6604 = vmatpush3.msra.mxu1 %v9198_v35  ;;  %6611 = vmatprep.mubr.msk.f32.mxu1 %vm7031_vm12, %v9672_v37 }
 0xc1c   :  { %6605 = vmatprep.subr.mxu1 %v9672_v37 }
 0xc1d   :  { %6606 = vmatpush3.msra.mxu1 %v9207_v45 }
 0xc1e   :  { %6607 = vmatprep.subr.mxu1 %v9672_v37 }
 0xc1f   :  { %6608 = vmatpush3.msra.mxu1 %v9214_v50 }
 0xc20   :  { %6609 = vmatprep.subr.mxu1 %v9672_v37 }
 0xc21   :  { %6610 = vmatpush3.msra.mxu1 %v9221_v39 }
 0xc22   :  { %6612 = vmatmul.mubr.msk.f32.vlgmr.msra.gmra.mxu1 %vm1306_vm13, %v6857_v21  ;;  %6625 = vmatprep.subr.mxu1 %v9672_v37 }
 0xc23   :  { %6626 = vmatpush3.msra.mxu1 %v9229_v38  ;;  %6633 = vmatprep.mubr.msk.f32.mxu1 %vm7031_vm12, %v9672_v37 }
 0xc24   :  { %6627 = vmatprep.subr.mxu1 %v9672_v37 }
 0xc25   :  { %6628 = vmatpush3.msra.mxu1 %v9238_v42 }
 0xc26   :  { %6629 = vmatprep.subr.mxu1 %v9672_v37 }
 0xc27   :  { %6630 = vmatpush3.msra.mxu1 %v9245_v11 }
 0xc28   :  { %6631 = vmatprep.subr.mxu1 %v9672_v37 }
 0xc29   :  { %6632 = vmatpush3.msra.mxu1 %v9252_v58 }
 0xc2a   :  { %6634 = vmatmul.mubr.msk.f32.vlgmr.msra.gmra.mxu1 %vm1306_vm13, %v6857_v21  ;;  %6647 = vmatprep.subr.mxu1 %v9672_v37 }
 0xc2b   :  { %6648 = vmatpush3.msra.mxu1 %v6985_v17  ;;  %6655 = vmatprep.mubr.msk.f32.mxu1 %vm7031_vm12, %v9672_v37 }
 0xc2c   :  { %6649 = vmatprep.subr.mxu1 %v9672_v37 }
 0xc2d   :  { %6650 = vmatpush3.msra.mxu1 %v6986_v12 }
 0xc2e   :  { %6651 = vmatprep.subr.mxu1 %v9672_v37 }
 0xc2f   :  { %6652 = vmatpush3.msra.mxu1 %v6987_v52 }
 0xc30   :  { %6653 = vmatprep.subr.mxu1 %v9672_v37 }
 0xc31   :  { %6654 = vmatpush3.msra.mxu1 %v6988_v18 }
 0xc32   :  { %6669 = vmatprep.subr.mxu1 %v9672_v37 }
 0xc95   :  { %v5251_v22 = vpop.xlane.xlu1 %5250 }
 0xc96   :  { %v5260_v32 = vrot.slane %v5251_v22, %v7151_v6  ;;  %v5264_v4 = vrot.slane %v5251_v22, %v7154_v7  ;;  %v5268_v34 = vrot.slane %v5251_v22, %v7160_v9  ;;  %v5272_v20 = vrot.slane %v5251_v22, %v7163_v10 }
 0xc97   :  { %v5276_v40 = vrot.slane %v5251_v22, %v7172_v14  ;;  %v5284_v52 = vrot.slane %v5251_v22, %v7349_v30 }
 0xc98   :  { %v5337_v46 = vsub.f32 %v9081_v61, %v5260_v32  ;;  %v5338_v25 = vsub.f32 %v9074_v31, %v5264_v4  ;;  %v5340_v55 = vsub.f32 %v9086_v13, %v5272_v20  ;;  %v5339_v49 = vsub.f32 %v9078_v23, %v5268_v34 }
 0xc99   :  { %v5280_v23 = vrot.slane %v5251_v22, %v7177_v16  ;;  %v5341_v41 = vsub.f32 %v9135_v33, %v5276_v40  ;;  %v5288_v4 = vrot.slane %v5251_v22, %v7336_v15  ;;  %v5343_v34 = vsub.f32 %v9143_v36, %v5284_v52 }
 0xc9a   :  { %v5353_v60 = vmul.f32 1.442695, %v5337_v46  ;;  %v5355_v3 = vmul.f32 1.442695, %v5338_v25  ;;  %v5254_v26 = vpop.xlane.xlu0 %5253  ;;  %v5359_v29 = vmul.f32 1.442695, %v5340_v55 }
 0xc9b   :  { %v5292_v44 = vrot.slane %v5254_v26, %v7151_v6  ;;  %v5296_v48 = vrot.slane %v5254_v26, %v7154_v7  ;;  %v5357_v5 = vmul.f32 1.442695, %v5339_v49  ;;  %v5300_v61 = vrot.slane %v5254_v26, %v7160_v9 }
 0xc9c   :  { %6858 = vpow2.f32 %v5353_v60  ;;  %v5304_v62 = vrot.slane %v5254_v26, %v7163_v10  ;;  %v5342_v18 = vsub.f32 %v9139_v51, %v5280_v23  ;;  %v5361_v32 = vmul.f32 1.442695, %v5341_v41 }
 0xc9d   :  { %6860 = vpow2.f32 %v5355_v3  ;;  %v5345_v31 = vsub.f32 %v9131_v47, %v5292_v44  ;;  %v5346_v13 = vsub.f32 %v9090_v27, %v5296_v48  ;;  %v5347_v21 = vsub.f32 %v9094_v57, %v5300_v61 }
 0xc9e   :  { %6862 = vpow2.f32 %v5359_v29  ;;  %v5308_v27 = vrot.slane %v5254_v26, %v7172_v14  ;;  %v5348_v47 = vsub.f32 %v9098_v19, %v5304_v62  ;;  %v5363_v57 = vmul.f32 1.442695, %v5342_v18 }
 0xc9f   :  { %6864 = vpow2.f32 %v5357_v5  ;;  %v5369_v17 = vmul.f32 1.442695, %v5345_v31  ;;  %v5371_v12 = vmul.f32 1.442695, %v5346_v13  ;;  %v5373_v33 = vmul.f32 1.442695, %v5347_v21 }
 0xca0   :  { %v5312_v46 = vrot.slane %v5254_v26, %v7177_v16  ;;  %v5349_v51 = vsub.f32 %v9105_v53, %v5308_v27  ;;  %v5375_v25 = vmul.f32 1.442695, %v5348_v47  ;;  %v5344_v19 = vsub.f32 %v9147_v1, %v5288_v4  ;;  %v9359_v27 = vld [vmem:[%s9628_s12] ss:$0 sm:$0xff] }
 0xca1   :  { %6866 = vpow2.f32 %v5369_v17  ;;  %v5365_v36 = vmul.f32 1.442695, %v5343_v34  ;;  %v5316_v22 = vrot.slane %v5254_v26, %v7349_v30  ;;  %v5320_v60 = vrot.slane %v5254_v26, %v7336_v15 }
 0xca2   :  { %6868 = vpow2.f32 %v5371_v12  ;;  %v5350_v53 = vsub.f32 %v9114_v0, %v5312_v46  ;;  %v5377_v3 = vmul.f32 1.442695, %v5349_v51  ;;  %v5367_v1 = vmul.f32 1.442695, %v5344_v19 }
 0xca3   :  { %6870 = vpow2.f32 %v5361_v32  ;;  %v5351_v40 = vsub.f32 %v9151_v63, %v5316_v22  ;;  %v5352_v48 = vsub.f32 %v9124_v59, %v5320_v60  ;;  %v6990_v22 = vld [vmem:[%s9627_s11 + $0x18] sm:$0xff]  ;;  %v6991_v60 = vld [vmem:[%s9627_s11 + $0x10] sm:$0xff] }
 0xca4   :  { %6872 = vpow2.f32 %v5373_v33  ;;  %v5379_v26 = vmul.f32 1.442695, %v5350_v53  ;;  %v6992_v53 = vld [vmem:[%s9627_s11 + $0x8] sm:$0xff] }
 0xca5   :  { %6874 = vpow2.f32 %v5363_v57  ;;  %v5381_v0 = vmul.f32 1.442695, %v5351_v40  ;;  %v5383_v31 = vmul.f32 1.442695, %v5352_v48 }
 0xca6   :  { %6876 = vpow2.f32 %v5375_v25 }
 0xca7   :  { %6878 = vpow2.f32 %v5365_v36 }
 0xca8   :  { %6880 = vpow2.f32 %v5377_v3  ;;  %v6993_v3 = vld [vmem:[%s9627_s11] sm:$0xff] }
 0xca9   :  { %v9299_v20 = vpop.eup %6858  ;;  %6882 = vpow2.f32 %v5367_v1 }
 0xcaa   :  { %v9303_v55 = vpop.eup %6860  ;;  %5402 = vperm.xlu0 %6710, %v9299_v20   ;;  %6884 = vpow2.f32 %v5379_v26 }
 0xcab   :  { %5405 = vperm.xlu1 %6717, %v9303_v55   ;;  %v9309_v49 = vpop.eup %6862  ;;  %6886 = vpow2.f32 %v5381_v0 }
 0xcac   :  { %v9313_v44 = vpop.eup %6864  ;;  %6888 = vpow2.f32 %v5383_v31 }
 0xcae   :  { %5411 = vperm.xlu0 %6710, %v9309_v49   ;;  %v9318_v29 = vpop.eup %6866 }
 0xcaf   :  { %5408 = vperm.xlu1 %6717, %v9313_v44   ;;  %v9321_v5 = vpop.eup %6868 }
 0xcb0   :  { %v9325_v61 = vpop.eup %6870 }
 0xcb1   :  { %v9327_v13 = vpop.eup %6872 }
 0xcb2   :  { %5429 = vperm.xlu0 %6710, %v9321_v5   ;;  %v9331_v59 = vpop.eup %6874 }
 0xcb3   :  { %5426 = vperm.xlu1 %6717, %v9318_v29   ;;  %v9333_v63 = vpop.eup %6876 }
 0xcb4   :  { %v9337_v23 = vpop.eup %6878 }
 0xcb5   :  { %v9339_v41 = vpop.eup %6880 }
 0xcb6   :  { %5432 = vperm.xlu0 %6710, %v9327_v13   ;;  %v9343_v62 = vpop.eup %6882 }
 0xcb7   :  { %5414 = vperm.xlu1 %6717, %v9325_v61   ;;  %v9345_v21 = vpop.eup %6884 }
 0xcb8   :  { %v9349_v17 = vpop.eup %6886 }
 0xcb9   :  { %v9351_v12 = vpop.eup %6888 }
 0xcba   :  { %5435 = vperm.xlu0 %6710, %v9333_v63  }
 0xcbb   :  { %5417 = vperm.xlu1 %6717, %v9331_v59  }
 0xcbe   :  { %5438 = vperm.xlu0 %6710, %v9339_v41  }
 0xcbf   :  { %5420 = vperm.xlu1 %6717, %v9337_v23  }
 0xcc2   :  { %5441 = vperm.xlu0 %6710, %v9345_v21  }
 0xcc3   :  { %5423 = vperm.xlu1 %6717, %v9343_v62  }
 0xcc6   :  { %5447 = vperm.xlu0 %6710, %v9351_v12  }
 0xcc7   :  { %5444 = vperm.xlu1 %6717, %v9349_v17  }
 0xcda   :  { %v4463_v52 = vpop.f32.mrf.mxu1 }
 0xcdb   :  { %v4464_v18 = vadd.f32 %v4463_v52, %v9069_v43 }
 0xcdc   :  { %v6591_v32 = vpop.f32.mrf.mxu1 }
 0xcdd   :  { %v4467_v47 = vadd.f32 %v9359_v27, %v4464_v18 }
 0xcdf   :  { %v4468_v33 = vsub.f32 0.0, %v4467_v47 }
 0xce1   :  { %v4469_v4 = vmul.f32 1.442695, %v4468_v33 }
 0xce2   :  { %v9362_v34 = vpop.f32.mrf.mxu1 }
 0xce3   :  { %6890 = vpow2.f32 %v4469_v4 }
 0xce4   :  { %v6613_v57 = vpop.f32.mrf.mxu1 }
 0xcea   :  { %v9364_v46 = vpop.f32.mrf.mxu1 }
 0xcec   :  { %v6635_v51 = vpop.f32.mrf.mxu1 }
 0xcf0   :  { %v6891_v25 = vpop.eup %6890 }
 0xcf1   :  { %v4471_v19 = vadd.f32 1.0, %v6891_v25 }
 0xcf3   :  { %6892 = vrcp.f32 %v4471_v19 }
 0xd00   :  { %v6893_v43 = vpop.eup %6892 }
 0xd01   :  { %v4619_v36 = vmul.f32 %v6893_v43, %v8824_v2 }
 0xd03   :  { %6623 = vmatmul.mubr.msk.f32.vlgmr.msra.gmra.mxu0 %vm1306_vm13, %v4619_v36 }
 0xd04   :  { %6637 = vmatpush3.msra.mxu0 %v6990_v22  ;;  %6644 = vmatprep.mubr.msk.f32.mxu0 %vm7031_vm12, %v9672_v37 }
 0xd05   :  { %6638 = vmatprep.subr.mxu0 %v9672_v37 }
 0xd06   :  { %6639 = vmatpush3.msra.mxu0 %v6991_v60 }
 0xd07   :  { %6640 = vmatprep.subr.mxu0 %v9672_v37 }
 0xd08   :  { %6641 = vmatpush3.msra.mxu0 %v6992_v53 }
 0xd09   :  { %6642 = vmatprep.subr.mxu0 %v9672_v37 }
 0xd0a   :  { %6643 = vmatpush3.msra.mxu0 %v6993_v3 }
 0xd0b   :  { %6658 = vmatprep.subr.mxu0 %v9672_v37 }
 0xd25   :  { %v5403_v1 = vpop.permute.xlu0 %5402 }
 0xd26   :  { %v5406_v40 = vpop.permute.xlu1 %5405  ;;  %v5452_v47 = vrot.slane %v5403_v1, %v7157_v8 }
 0xd27   :  { %v5456_v32 = vrot.slane %v5406_v40, %v7157_v8 }
 0xd29   :  { %v5412_v48 = vpop.permute.xlu0 %5411  ;;  %v5513_v51 = vsel %vm698_vm2, %v5456_v32, %v5452_v47 }
 0xd2a   :  { %v5409_v26 = vpop.permute.xlu1 %5408  ;;  %v5464_v25 = vrot.slane %v5412_v48, %v7157_v8 }
 0xd2b   :  { %v5460_v33 = vrot.slane %v5409_v26, %v7157_v8 }
 0xd2d   :  { %v5430_v31 = vpop.permute.xlu0 %5429  ;;  %v5514_v19 = vsel %vm700_vm3, %v5460_v33, %v5513_v51 }
 0xd2e   :  { %v5427_v0 = vpop.permute.xlu1 %5426  ;;  %v5488_v3 = vrot.slane %v5430_v31, %v7157_v8  ;;  %v5515_v40 = vsel %vm702_vm4, %v5464_v25, %v5514_v19 }
 0xd2f   :  { %v5484_v53 = vrot.slane %v5427_v0, %v7157_v8 }
 0xd31   :  { %v5433_v18 = vpop.permute.xlu0 %5432  ;;  %v5520_v31 = vsel %vm698_vm2, %v5488_v3, %v5484_v53 }
 0xd32   :  { %v5415_v52 = vpop.permute.xlu1 %5414  ;;  %v5492_v26 = vrot.slane %v5433_v18, %v7157_v8 }
 0xd33   :  { %v5468_v43 = vrot.slane %v5415_v52, %v7157_v8 }
 0xd34   :  { %v5521_v18 = vsel %vm700_vm3, %v5492_v26, %v5520_v31 }
 0xd35   :  { %v5436_v57 = vpop.permute.xlu0 %5435  ;;  %v5516_v48 = vsel %vm704_vm5, %v5468_v43, %v5515_v40 }
 0xd36   :  { %v5418_v4 = vpop.permute.xlu1 %5417  ;;  %v5496_v32 = vrot.slane %v5436_v57, %v7157_v8 }
 0xd37   :  { %v5472_v60 = vrot.slane %v5418_v4, %v7157_v8 }
 0xd38   :  { %v5522_v57 = vsel %vm702_vm4, %v5496_v32, %v5521_v18  ;;  %v6994_v32 = vld [vmem:[%s9670_s0] sm:$0xf] }
 0xd39   :  { %v5439_v22 = vpop.permute.xlu0 %5438  ;;  %v5517_v33 = vsel %vm706_vm6, %v5472_v60, %v5516_v48 }
 0xd3a   :  { %v5421_v36 = vpop.permute.xlu1 %5420  ;;  %v5500_v4 = vrot.slane %v5439_v22, %v7157_v8 }
 0xd3b   :  { %v5476_v1 = vrot.slane %v5421_v36, %v7157_v8 }
 0xd3c   :  { %v5523_v22 = vsel %vm704_vm5, %v5500_v4, %v5522_v57 }
 0xd3d   :  { %v5442_v52 = vpop.permute.xlu0 %5441  ;;  %v5518_v25 = vsel %vm708_vm7, %v5476_v1, %v5517_v33  ;;  %v9427_v33 = vld [vmem:[%s9631_s15] ss:$0 sm:$0xff] }
 0xd3e   :  { %v5424_v47 = vpop.permute.xlu1 %5423  ;;  %v5504_v51 = vrot.slane %v5442_v52, %v7157_v8  ;;  %v4610_v52 = vadd.f32 %v9362_v34, %v9071_v28  ;;  %v9434_v28 = vld [vmem:[%s9634_s18] ss:$0 sm:$0xff] }
 0xd3f   :  { %v5480_v0 = vrot.slane %v5424_v47, %v7157_v8  ;;  %v5638_v47 = vrot.slane %v6994_v32, %v7163_v10 }
 0xd40   :  { %v5524_v3 = vsel %vm706_vm6, %v5504_v51, %v5523_v22  ;;  %v4613_v4 = vadd.f32 %v9427_v33, %v4610_v52  ;;  %v6998_v52 = vld [vmem:[%s9630_s14 + $0x10] sm:$0xff] }
 0xd41   :  { %v5519_v19 = vsel %vm710_vm8, %v5480_v0, %v5518_v25  ;;  %v5448_v36 = vpop.permute.xlu0 %5447 }
 0xd42   :  { %v5445_v43 = vpop.permute.xlu1 %5444  ;;  %v5529_v60 = vsel %vm721_vm9, %v5519_v19, 0.0  ;;  %v5512_v53 = vrot.slane %v5448_v36, %v7157_v8  ;;  %v4614_v0 = vsub.f32 0.0, %v4613_v4 }
 0xd43   :  { %v5508_v40 = vrot.slane %v5445_v43, %v7157_v8  ;;  %5530 = vadd.xlane.f32.xlu1 %v5529_v60 }
 0xd44   :  { %v4615_v31 = vmul.f32 1.442695, %v4614_v0 }
 0xd45   :  { %v5525_v1 = vsel %vm708_vm7, %v5508_v40, %v5524_v3 }
 0xd46   :  { %v5526_v26 = vsel %vm710_vm8, %v5512_v53, %v5525_v1  ;;  %6894 = vpow2.f32 %v4615_v31 }
 0xd47   :  { %v5532_v48 = vsel %vm721_vm9, %v5526_v26, 0.0  ;;  %v6997_v26 = vld [vmem:[%s9630_s14 + $0x18] sm:$0xff] }
 0xd48   :  { %5533 = vadd.xlane.f32.xlu0 %v5532_v48 }
 0xd53   :  { %v6895_v51 = vpop.eup %6894 }
 0xd54   :  { %v4617_v25 = vadd.f32 1.0, %v6895_v51  ;;  %v6999_v51 = vld [vmem:[%s9630_s14 + $0x8] sm:$0xff] }
 0xd56   :  { %6896 = vrcp.f32 %v4617_v25 }
 0xd5e   :  { %5641 = vbcast.lane.b32.xlu0 %v5638_v47, 256 }
 0xd63   :  { %v6897_v36 = vpop.eup %6896 }
 0xd64   :  { %v4766_v22 = vsub.f32 1.0, %v6897_v36  ;;  %v4765_v53 = vmul.f32 %v6897_v36, %v8824_v2 }
 0xdc3   :  { %v4689_v18 = vpop.f32.mrf.mxu0 }
 0xdc4   :  { %v4760_v19 = vadd.f32 %v9364_v46, %v4689_v18 }
 0xdc5   :  { %v6624_v57 = vpop.f32.mrf.mxu0 }
 0xdc6   :  { %v4763_v34 = vadd.f32 %v9434_v28, %v4760_v19 }
 0xdc8   :  { %6898 = vtanh.f32 %v4763_v34  ;;  %v7000_v34 = vld [vmem:[%s9630_s14] sm:$0xff] }
 0xdcc   :  { %v5531_v43 = vpop.xlane.xlu1 %5530 }
 0xdcd   :  { %6900 = vrcp.f32 %v5531_v43 }
 0xdd1   :  { %v5534_v60 = vpop.xlane.xlu0 %5533 }
 0xdd2   :  { %6902 = vrcp.f32 %v5534_v60 }
 0xdd5   :  { %v6899_v40 = vpop.eup %6898  ;;  %v9454_v32 = vpop.permute.xlu0 %5641 }
 0xdd6   :  { %v4767_v3 = vmul.f32 %v6899_v40, %v4766_v22 }
 0xdd8   :  { %v9438_v46 = vadd.f32 %v4767_v3, %v4765_v53 }
 0xdda   :  { %v9440_v1 = vpop.eup %6900  ;;  %6645 = vmatmul.mubr.msk.f32.vlgmr.msra.gmra.mxu0 %vm1306_vm13, %v9438_v46 }
 0xddb   :  { %6659 = vmatpush3.msra.mxu0 %v6997_v26  ;;  %6666 = vmatprep.mubr.msk.f32.mxu0 %vm7031_vm12, %v9672_v37  ;;  %v5550_v48 = vrot.slane %v9440_v1, %v7160_v9  ;;  %v5542_v2 = vrot.slane %v9440_v1, %v7151_v6  ;;  %v5546_v47 = vrot.slane %v9440_v1, %v7154_v7 }
 0xddc   :  { %6660 = vmatprep.subr.mxu0 %v9672_v37  ;;  %v5554_v19 = vrot.slane %v9440_v1, %v7163_v10  ;;  %v5558_v57 = vrot.slane %v9440_v1, %v7172_v14  ;;  %v5566_v53 = vrot.slane %v9440_v1, %v7349_v30 }
 0xddd   :  { %6661 = vmatpush3.msra.mxu0 %v6998_v52  ;;  %v5621_v4 = vmul.f32 %v9313_v44, %v5550_v48  ;;  %v5619_v0 = vmul.f32 %v9299_v20, %v5542_v2  ;;  %v5620_v20 = vmul.f32 %v9303_v55, %v5546_v47  ;;  %v7003_v48 = vld [vmem:[%s9633_s17 + $0x8] sm:$0xff]  ;;  %v5570_v47 = vrot.slane %v9440_v1, %v7336_v15 }
 0xdde   :  { %6662 = vmatprep.subr.mxu0 %v9672_v37  ;;  %v5622_v55 = vmul.f32 %v9309_v49, %v5554_v19  ;;  %v5623_v22 = vmul.f32 %v9325_v61, %v5558_v57  ;;  %v7002_v61 = vld [vmem:[%s9633_s17 + $0x10] sm:$0xff]  ;;  %v5625_v2 = vmul.f32 %v9337_v23, %v5566_v53 }
 0xddf   :  { %v9464_v31 = vpop.eup %6902  ;;  %6663 = vmatpush3.msra.mxu0 %v6999_v51  ;;  %v5646_v25 = vmul.f32 %v9454_v32, %v5621_v4  ;;  %v5644_v18 = vmul.f32 %v9454_v32, %v5619_v0  ;;  %v5645_v36 = vmul.f32 %v9454_v32, %v5620_v20  ;;  %v7004_v0 = vld [vmem:[%s9633_s17] sm:$0xff] }
 0xde0   :  { %6664 = vmatprep.subr.mxu0 %v9672_v37  ;;  %v5574_v44 = vrot.slane %v9464_v31, %v7151_v6  ;;  %v5562_v6 = vrot.slane %v9440_v1, %v7177_v16  ;;  %v5578_v40 = vrot.slane %v9464_v31, %v7154_v7  ;;  %v5647_v7 = vmul.f32 %v9454_v32, %v5622_v55 }
 0xde1   :  { %6665 = vmatpush3.msra.mxu0 %v7000_v34  ;;  %5683 = vperm.xlu0 %6710, %v5646_v25   ;;  %v5648_v3 = vmul.f32 %v9454_v32, %v5623_v22  ;;  %v5586_v4 = vrot.slane %v9464_v31, %v7163_v10  ;;  %v5650_v23 = vmul.f32 %v9454_v32, %v5625_v2 }
 0xde2   :  { %5677 = vperm.xlu1 %6717, %v5644_v18   ;;  %6667 = vmatmul.mubr.msk.f32.vlgmr.msra.gmra.mxu0 %vm1306_vm13, %v9438_v46  ;;  %v5627_v43 = vmul.f32 %v9318_v29, %v5574_v44  ;;  %v7001_v29 = vld [vmem:[%s9633_s17 + $0x18] sm:$0xff]  ;;  %v5624_v49 = vmul.f32 %v9331_v59, %v5562_v6  ;;  %v5628_v26 = vmul.f32 %v9321_v5, %v5578_v40  ;;  %s7034_s17 = smov [#allocation2]  }
 0xde3   :  { %6680 = vmatprep.subr.mxu0 %v9672_v37  ;;  %6688 = vmatprep.mubr.msk.f32.mxu0 %vm7031_vm12, %v9672_v37  ;;  %v5582_v59 = vrot.slane %v9464_v31, %v7160_v9  ;;  %v5626_v1 = vmul.f32 %v9343_v62, %v5570_v47  ;;  %v5630_v25 = vmul.f32 %v9333_v63, %v5586_v4  ;;  %s6274_s8 = sshll.u32 %s7034_s17, 4  ;;  %s6275_s8 = int_to_ptr.vmem [resolvable:$true] %s6274_s8 }
 0xde4   :  { %v5652_v60 = vmul.f32 %v9454_v32, %v5627_v43  ;;  %6681 = vmatpush3.msra.mxu0 %v7001_v29  ;;  %v5653_v5 = vmul.f32 %v9454_v32, %v5628_v26  ;;  %v5649_v9 = vmul.f32 %v9454_v32, %v5624_v49  ;;  %v5598_v10 = vrot.slane %v9464_v31, %v7349_v30  ;;  %s7005_s23 = scalar_lea.vmem %s6275_s8, 128  ;;  %p7010_p1 = scmp.lt.s32.totalorder %s6275_s8, %s6275_s8 }
 0xde5   :  { %6682 = vmatprep.subr.mxu0 %v9672_v37  ;;  %v5629_v52 = vmul.f32 %v9327_v13, %v5582_v59  ;;  %v5590_v13 = vrot.slane %v9464_v31, %v7172_v14  ;;  %v5651_v18 = vmul.f32 %v9454_v32, %v5626_v1  ;;  %v5655_v19 = vmul.f32 %v9454_v32, %v5630_v25  ;;  %p7006_p0 = scmp.ne.s32.totalorder %s6275_s8, %s7005_s23  ;;  %p7011_p2 = scmp.lt.s32.totalorder %s7005_s23, %s7005_s23 }
 0xde6   :  { %5680 = vperm.xlu1 %6717, %v5645_v36   ;;  %5701 = vperm.xlu0 %6710, %v5652_v60   ;;  %v5633_v62 = vmul.f32 %v9349_v17, %v5598_v10  ;;  %v5594_v44 = vrot.slane %v9464_v31, %v7177_v16  ;;  %v5602_v57 = vrot.slane %v9464_v31, %v7336_v15 }
 0xde7   :  { %6683 = vmatpush3.msra.mxu0 %v7002_v61  ;;  %v5654_v51 = vmul.f32 %v9454_v32, %v5629_v52  ;;  %v5631_v20 = vmul.f32 %v9339_v41, %v5590_v13  ;;  %p7012_p3 = por %p7011_p2, %p7010_p1 }
 0xde8   :  { %6684 = vmatprep.subr.mxu0 %v9672_v37  ;;  %v5658_v63 = vmul.f32 %v9454_v32, %v5633_v62  ;;  %v5632_v30 = vmul.f32 %v9345_v21, %v5594_v44  ;;  %v5634_v17 = vmul.f32 %v9351_v12, %v5602_v57 }
 0xde9   :  { %6685 = vmatpush3.msra.mxu0 %v7003_v48  ;;  %v5656_v14 = vmul.f32 %v9454_v32, %v5631_v20  ;;  %p7013_p4 = pnand %p7012_p3, %p7006_p0 }
 0xdea   :  { %5686 = vperm.xlu1 %6717, %v5647_v7   ;;  %5689 = vperm.xlu0 %6710, %v5648_v3   ;;  %v5657_v41 = vmul.f32 %v9454_v32, %v5632_v30  ;;  %v5659_v16 = vmul.f32 %v9454_v32, %v5634_v17 }
 0xdeb   :  { %6686 = vmatprep.subr.mxu0 %v9672_v37 }
 0xdec   :  { %6687 = vmatpush3.msra.mxu0 %v7004_v0 }
 0xdee   :  { %5704 = vperm.xlu1 %6717, %v5653_v5   ;;  %5692 = vperm.xlu0 %6710, %v5649_v9  }
 0xdf2   :  { %5707 = vperm.xlu1 %6717, %v5654_v51   ;;  %5695 = vperm.xlu0 %6710, %v5650_v23  }
 0xdf6   :  { %5710 = vperm.xlu1 %6717, %v5655_v19   ;;  %5698 = vperm.xlu0 %6710, %v5651_v18  }
 0xdfa   :  { %5713 = vperm.xlu1 %6717, %v5656_v14   ;;  %5719 = vperm.xlu0 %6710, %v5658_v63  }
 0xdfe   :  { %5716 = vperm.xlu1 %6717, %v5657_v41  }
 0xe02   :  { %5722 = vperm.xlu1 %6717, %v5659_v16  }
 0xe5c   :  { %v5684_v34 = vpop.permute.xlu0 %5683 }
 0xe5d   :  { %v5678_v43 = vpop.permute.xlu1 %5677  ;;  %v5735_v29 = vrot.slane %v5684_v34, %v7157_v8 }
 0xe5e   :  { %v5727_v15 = vrot.slane %v5678_v43, %v7157_v8 }
 0xe61   :  { %v5681_v55 = vpop.permute.xlu1 %5680  ;;  %v5702_v6 = vpop.permute.xlu0 %5701 }
 0xe62   :  { %v5731_v21 = vrot.slane %v5681_v55, %v7157_v8  ;;  %v5759_v51 = vrot.slane %v5702_v6, %v7157_v8 }
 0xe64   :  { %v5788_v40 = vsel %vm698_vm2, %v5731_v21, %v5727_v15 }
 0xe65   :  { %v5687_v36 = vpop.permute.xlu1 %5686  ;;  %v5690_v60 = vpop.permute.xlu0 %5689  ;;  %v5789_v32 = vsel %vm700_vm3, %v5735_v29, %v5788_v40 }
 0xe66   :  { %v5739_v12 = vrot.slane %v5687_v36, %v7157_v8  ;;  %v5743_v49 = vrot.slane %v5690_v60, %v7157_v8 }
 0xe68   :  { %v5790_v7 = vsel %vm702_vm4, %v5739_v12, %v5789_v32 }
 0xe69   :  { %v5705_v31 = vpop.permute.xlu1 %5704  ;;  %v5693_v22 = vpop.permute.xlu0 %5692  ;;  %v5791_v59 = vsel %vm704_vm5, %v5743_v49, %v5790_v7 }
 0xe6a   :  { %v5747_v3 = vrot.slane %v5693_v22, %v7157_v8  ;;  %v5763_v52 = vrot.slane %v5705_v31, %v7157_v8 }
 0xe6c   :  { %v5792_v47 = vsel %vm706_vm6, %v5747_v3, %v5791_v59  ;;  %v5795_v10 = vsel %vm698_vm2, %v5763_v52, %v5759_v51 }
 0xe6d   :  { %v5708_v53 = vpop.permute.xlu1 %5707  ;;  %v5696_v61 = vpop.permute.xlu0 %5695 }
 0xe6e   :  { %v5751_v26 = vrot.slane %v5696_v61, %v7157_v8  ;;  %v5767_v0 = vrot.slane %v5708_v53, %v7157_v8 }
 0xe70   :  { %v5793_v9 = vsel %vm708_vm7, %v5751_v26, %v5792_v47  ;;  %v5796_v18 = vsel %vm700_vm3, %v5767_v0, %v5795_v10 }
 0xe71   :  { %v5711_v48 = vpop.permute.xlu1 %5710  ;;  %v5699_v2 = vpop.permute.xlu0 %5698 }
 0xe72   :  { %v5755_v5 = vrot.slane %v5699_v2, %v7157_v8  ;;  %v5771_v25 = vrot.slane %v5711_v48, %v7157_v8 }
 0xe74   :  { %v5794_v4 = vsel %vm710_vm8, %v5755_v5, %v5793_v9  ;;  %v5797_v20 = vsel %vm702_vm4, %v5771_v25, %v5796_v18 }
 0xe75   :  { %v5714_v23 = vpop.permute.xlu1 %5713  ;;  %v5804_v1 = vsel %vm721_vm9, %v5794_v4, 0.0  ;;  %v5720_v62 = vpop.permute.xlu0 %5719 }
 0xe76   :  { %5805 = vadd.xlane.f32.xlu0 %v5804_v1  ;;  %v5775_v13 = vrot.slane %v5714_v23, %v7157_v8  ;;  %v5783_v30 = vrot.slane %v5720_v62, %v7157_v8 }
 0xe78   :  { %v5798_v14 = vsel %vm704_vm5, %v5775_v13, %v5797_v20 }
 0xe79   :  { %v5717_v19 = vpop.permute.xlu1 %5716 }
 0xe7a   :  { %v5779_v44 = vrot.slane %v5717_v19, %v7157_v8 }
 0xe7c   :  { %v5799_v63 = vsel %vm706_vm6, %v5779_v44, %v5798_v14 }
 0xe7d   :  { %v5723_v57 = vpop.permute.xlu1 %5722  ;;  %v5800_v17 = vsel %vm708_vm7, %v5783_v30, %v5799_v63 }
 0xe7e   :  { %v5787_v41 = vrot.slane %v5723_v57, %v7157_v8 }
 0xe80   :  { %v5801_v16 = vsel %vm710_vm8, %v5787_v41, %v5800_v17 }
 0xe81   :  { %v5807_v34 = vsel %vm721_vm9, %v5801_v16, 0.0 }
 0xe82   :  { %5808 = vadd.xlane.f32.xlu1 %v5807_v34 }
 0xe9a   :  { %v5888_v43 = vpop.f32.mrf.mxu0 }
 0xe9c   :  { %v6646_v55 = vpop.f32.mrf.mxu0 }
 0xea2   :  { %v6037_v6 = vpop.f32.mrf.mxu0 }
 0xea4   :  { %v6668_v36 = vpop.f32.mrf.mxu0 }
 0xeff   :  { %v5806_v60 = vpop.xlane.xlu0 %5805 }
 0xf00   :  { %v5810_v21 = vmul.f32 %v5806_v60, %v9680_v24 }
 0xf02   :  { %v5811_v31 = vadd.f32 %v9158_v54, %v5810_v21 }
 0xf0b   :  { %v5809_v15 = vpop.xlane.xlu1 %5808 }
 0xf0c   :  { %v5812_v22 = vmul.f32 %v5809_v15, %v7991_v56 }
 0xf0e   :  { %v5813_v8 = vadd.f32 %v5812_v22, %v5811_v31 }
 0xf10   :  { %v5814_v40 = vsub.f32 0.0, %v5813_v8 }
 0xf12   :  { %v5815_v12 = vmul.f32 1.442695, %v5814_v40 }
 0xf14   :  { %6904 = vpow2.f32 %v5815_v12 }
 0xf21   :  { %v6905_v29 = vpop.eup %6904 }
 0xf22   :  { %v5817_v32 = vadd.f32 1.0, %v6905_v29 }
 0xf24   :  { %6906 = vrcp.f32 %v5817_v32 }
 0xf31   :  { %v6907_v49 = vpop.eup %6906 }
 0xf32   :  { %6656 = vmatmul.mubr.msk.f32.vlgmr.msra.gmra.mxu1 %vm1306_vm13, %v6907_v49 }
 0xf33   :  { %6670 = vmatpush3.msra.mxu1 %v9198_v35  ;;  %6677 = vmatprep.mubr.msk.f32.mxu1 %vm7031_vm12, %v9672_v37 }
 0xf34   :  { %6671 = vmatprep.subr.mxu1 %v9672_v37 }
 0xf35   :  { %6672 = vmatpush3.msra.mxu1 %v9207_v45 }
 0xf36   :  { %6673 = vmatprep.subr.mxu1 %v9672_v37 }
 0xf37   :  { %6674 = vmatpush3.msra.mxu1 %v9214_v50 }
 0xf38   :  { %6675 = vmatprep.subr.mxu1 %v9672_v37 }
 0xf39   :  { %6676 = vmatpush3.msra.mxu1 %v9221_v39 }
 0xf3a   :  { %6678 = vmatmul.mubr.msk.f32.vlgmr.msra.gmra.mxu1 %vm1306_vm13, %v6907_v49  ;;  %6691 = vmatprep.subr.mxu1 %v9672_v37 }
 0xf3b   :  { %6692 = vmatpush3.msra.mxu1 %v9229_v38  ;;  %6699 = vmatprep.mubr.msk.f32.mxu1 %vm7031_vm12, %v9672_v37 }
 0xf3c   :  { %6693 = vmatprep.subr.mxu1 %v9672_v37 }
 0xf3d   :  { %6694 = vmatpush3.msra.mxu1 %v9238_v42 }
 0xf3e   :  { %6695 = vmatprep.subr.mxu1 %v9672_v37 }
 0xf3f   :  { %6696 = vmatpush3.msra.mxu1 %v9245_v11 }
 0xf40   :  { %6697 = vmatprep.subr.mxu1 %v9672_v37 }
 0xf41   :  { %6698 = vmatpush3.msra.mxu1 %v9252_v58 }
 0xf42   :  { %6700 = vmatmul.mubr.msk.f32.vlgmr.msra.gmra.mxu1 %vm1306_vm13, %v6907_v49 }
 0xff2   :  { %v5961_v56 = vpop.f32.mrf.mxu1 }
 0xff3   :  { %v5962_v24 = vadd.f32 %v5961_v56, %v5888_v43 }
 0xff4   :  { %v6657_v54 = vpop.f32.mrf.mxu1 }
 0xff5   :  { %v5965_v35 = vadd.f32 %v9359_v27, %v5962_v24 }
 0xff7   :  { %v5966_v45 = vsub.f32 0.0, %v5965_v35 }
 0xff9   :  { %v5967_v50 = vmul.f32 1.442695, %v5966_v45 }
 0xffa   :  { %v6107_v39 = vpop.f32.mrf.mxu1 }
 0xffb   :  { %6908 = vpow2.f32 %v5967_v50  ;;  %v6108_v7 = vadd.f32 %v6107_v39, %v6037_v6 }
 0xffc   :  { %v6679_v38 = vpop.f32.mrf.mxu1 }
 0xffd   :  { %v6111_v3 = vadd.f32 %v9427_v33, %v6108_v7 }
 0xfff   :  { %v6112_v26 = vsub.f32 0.0, %v6111_v3 }
0x1001   :  { %v6113_v27 = vmul.f32 1.442695, %v6112_v26 }
0x1002   :  { %v6257_v42 = vpop.f32.mrf.mxu1 }
0x1004   :  { %v6701_v53 = vpop.f32.mrf.mxu1 }
0x1008   :  { %v6909_v61 = vpop.eup %6908 }
0x1009   :  { %v5969_v11 = vadd.f32 1.0, %v6909_v61 }
0x100b   :  { %6910 = vrcp.f32 %v5969_v11 }
0x100c   :  { %6912 = vpow2.f32 %v6113_v27 }
0x1018   :  { %v6911_v37 = vpop.eup %6910 }
0x1019   :  { %v6117_v58 = vmul.f32 %v6911_v37, %v9438_v46  ;;  %v6913_v59 = vpop.eup %6912 }
0x101a   :  { %v6115_v48 = vadd.f32 1.0, %v6913_v59 }
0x101b   :  { %6689 = vmatmul.mubr.msk.f32.vlgmr.msra.gmra.mxu0 %vm1306_vm13, %v6117_v58 }
0x101c   :  { %6914 = vrcp.f32 %v6115_v48 }
0x1029   :  { %v6915_v52 = vpop.eup %6914 }
0x102a   :  { %v6264_v4 = vsub.f32 1.0, %v6915_v52  ;;  %v6263_v23 = vmul.f32 %v6915_v52, %v9438_v46 }
0x10db   :  { %v6187_v2 = vpop.f32.mrf.mxu0 }
0x10dc   :  { %v6258_v47 = vadd.f32 %v6257_v42, %v6187_v2 }
0x10dd   :  { %v6690_v5 = vpop.f32.mrf.mxu0 }
0x10de   :  { %v6261_v9 = vadd.f32 %v9434_v28, %v6258_v47 }
0x10e0   :  { %6916 = vtanh.f32 %v6261_v9 }
0x10ed   :  { %v6917_v0 = vpop.eup %6916 }
0x10ee   :  { %v6265_v33 = vmul.f32 %v6917_v0, %v6264_v4 }
0x10f0   :  { %v6266_v1 = vadd.f32 %v6265_v33, %v6263_v23 }
0x10f2   :  { %6267 = vst.msk [vmem:[#allocation2] sm:$0xff] %vm1306_vm13, %v6266_v1 }
0x10f3   :  { %7016 = shalt.err (!%p7013_p4)
}
0x10f4   :  { %6277 = dma.vmem_to_hbm [thread:$0]  %s6275_s8, 128, %s9635_s19, [#allocation3]  }
0x10f5   :  { %7025 = dma.done.wait [#allocation3], 128  }
0x10f6   :  { %7026 = vsyncadd [#allocation3], 4294967168 }
0x10f7   :  { %6281 = vsyncpa [#allocation3], 1 }

</bundles_post_ra>
